<compile_context>
chip_gen: v7x
topology: tpu7x:2x2x1
jax: 0.10.0
libtpu: 0.0.40
codegen_flags: <defaults>
</compile_context>

<pallas_src>
import math
import jax
import jax.numpy as jnp
from jax.experimental import pallas as pl
from jax.experimental.pallas import tpu as pltpu

N_INPUTS = 32
N_HIDDEN = 103          # matches n_hidden = 103 in the PyTorch script
HIDDEN_PAD = 128        # lane-aligned hidden dim (zero padded, exact math)
N_OUTPUTS = 16
PACK = 8                # logical rows per packed row: 8 * 16 = 128 out lanes
TILE_M = 2048           # logical batch rows per grid step (amortises step cost)
BATCH = 1024            # demo batch; any batch size works (wrapper pads)

MATMUL_DTYPE = jnp.float32   # jnp.bfloat16 on v6e/v7x halves streamed bytes


def _round_up(n, m):
    return ((n + m - 1) // m) * m


def ff_kernel(xp_ref, l1_ref, l2_ref, o_ref):
    """xp_ref: (tm8, PACK*n_in) row-packed inputs.
       l1_ref: (pad, 128)  rows [0:n_in]=W1, row n_in = b1.
       l2_ref: (pad, 16)   rows [0:128]=W2 (zero padded), row 128 = b2.
       o_ref : (tm8, PACK*n_out) row-packed outputs (lane-dense, 128 wide)."""
    n_in = xp_ref.shape[1] // PACK
    n_out = o_ref.shape[1] // PACK
    hid = l1_ref.shape[1]

    w1 = l1_ref[:n_in, :]                               # (n_in, 128)
    b1 = l1_ref[n_in:n_in + 1, :].astype(jnp.float32)   # (1, 128)
    w2 = l2_ref[:hid, :]                                # (128, 16)
    b2 = l2_ref[hid:hid + 1, :].astype(jnp.float32)     # (1, 16)

    # Unrolled over the 8 interleaved logical rows of each packed row.
    # MACs are identical to the unpacked formulation; the MXU is nowhere near
    # the bottleneck here, the win is dense DMA/store layout.
    for j in range(PACK):
        xj = xp_ref[:, j * n_in:(j + 1) * n_in]          # (tm8, n_in)
        h = jnp.tanh(                                    # f32 accumulate + EUP tanh
            jnp.dot(xj, w1, preferred_element_type=jnp.float32) + b1
        )
        yj = (
            jnp.dot(h.astype(w2.dtype), w2, preferred_element_type=jnp.float32)
            + b2
        )
        o_ref[:, j * n_out:(j + 1) * n_out] = jnp.maximum(yj, 0.0).astype(o_ref.dtype)


def pack_params(w1, b1, w2, b2, dtype=jnp.float32):
    """Pack (W1,b1) and (W2,b2) into two resident, zero-padded VMEM slabs."""
    n_in, n_hid = w1.shape
    n_out = w2.shape[1]

    l1_rows = _round_up(n_in + 1, 8)
    l1 = jnp.zeros((l1_rows, HIDDEN_PAD), jnp.float32)
    l1 = l1.at[:n_in, :n_hid].set(w1)
    l1 = l1.at[n_in, :n_hid].set(b1.reshape(-1))

    l2_rows = _round_up(HIDDEN_PAD + 1, 8)
    l2 = jnp.zeros((l2_rows, n_out), jnp.float32)
    l2 = l2.at[:n_hid, :].set(w2)
    l2 = l2.at[HIDDEN_PAD, :].set(b2.reshape(-1))

    return l1.astype(dtype), l2.astype(dtype)


def _is_v7x():
    try:
        return "v7" in jax.devices()[0].device_kind.lower()
    except Exception:
        return False


def ff_forward(x, l1, l2, *, tile_m=TILE_M):
    m, n_in = x.shape
    n_out = N_OUTPUTS

    # Keep the tile a multiple of 256 (so tm8 is sublane-aligned for f32/bf16)
    # and no larger than the padded batch.
    tile_m = max(256, min(tile_m, _round_up(max(m, 1), 256)))
    m_pad = _round_up(max(m, 1), tile_m)

    core_parallel = _is_v7x()
    if core_parallel:
        # v7x has 2 TensorCores: keep the batch grid an even length.
        while (m_pad // tile_m) % 2 and tile_m > 256:
            tile_m //= 2
            m_pad = _round_up(max(m, 1), tile_m)

    if m_pad != m:
        x = jnp.pad(x, ((0, m_pad - m), (0, 0)))
    x = x.astype(l1.dtype)

    # Free row-major reshape: 8 logical rows per packed row -> lane-dense x.
    xp = x.reshape(m_pad // PACK, PACK * n_in)
    tm8 = tile_m // PACK
    grid = (m_pad // tile_m,)

    out = pl.pallas_call(
        ff_kernel,
        out_shape=jax.ShapeDtypeStruct((m_pad // PACK, PACK * n_out), jnp.float32),
        grid_spec=pltpu.PrefetchScalarGridSpec(
            num_scalar_prefetch=0,
            grid=grid,
            in_specs=[
                # x streams per batch tile (lane-dense 256-wide rows);
                # weight slabs stay resident (same block every step).
                pl.BlockSpec((tm8, PACK * n_in), lambda i: (i, 0)),
                pl.BlockSpec(l1.shape, lambda i: (0, 0)),
                pl.BlockSpec(l2.shape, lambda i: (0, 0)),
            ],
            # Lane-dense (128-wide) output block -> unmasked HBM writeback.
            out_specs=pl.BlockSpec((tm8, PACK * n_out), lambda i: (i, 0)),
        ),
        compiler_params=pltpu.CompilerParams(
            dimension_semantics=(
                (pltpu.CORE_PARALLEL,) if core_parallel else ("parallel",)
            ),
        ),
    )(xp, l1, l2)

    # Free reshape back to the logical (batch, n_out) layout.
    return out.reshape(m_pad, n_out)[:m]


def init_params(key, n_inputs, n_hidden, n_outputs):
    # Deterministic init mimicking nn.Linear's default U(-1/sqrt(fan_in), +...)
    k1, k2, k3, k4 = jax.random.split(key, 4)
    bound1 = 1.0 / math.sqrt(n_inputs)
    bound2 = 1.0 / math.sqrt(n_hidden)
    w1 = jax.random.uniform(k1, (n_inputs, n_hidden), jnp.float32,
                            minval=-bound1, maxval=bound1)
    b1 = jax.random.uniform(k2, (1, n_hidden), jnp.float32,
                            minval=-bound1, maxval=bound1)
    w2 = jax.random.uniform(k3, (n_hidden, n_outputs), jnp.float32,
                            minval=-bound2, maxval=bound2)
    b2 = jax.random.uniform(k4, (1, n_outputs), jnp.float32,
                            minval=-bound2, maxval=bound2)
    return w1, b1, w2, b2


if __name__ == "__main__":
    key = jax.random.PRNGKey(0)
    kx, kp = jax.random.split(key)
    w1, b1, w2, b2 = init_params(kp, N_INPUTS, N_HIDDEN, N_OUTPUTS)

    # --- exact f32 path (matches the PyTorch forward) --------------------
    l1_f32, l2_f32 = pack_params(w1, b1, w2, b2, dtype=jnp.float32)
    for batch in (BATCH, 37):          # tile-aligned and ragged batches
        x = jax.random.normal(jax.random.fold_in(kx, batch),
                              (batch, N_INPUTS), jnp.float32)
        out = ff_forward(x, l1_f32, l2_f32)
        jax.block_until_ready(out)
        ref = jnp.maximum(jnp.tanh(x @ w1 + b1) @ w2 + b2, 0.0)
        assert out.shape == (batch, N_OUTPUTS)
        assert jnp.allclose(out, ref, atol=1e-5, rtol=1e-5), \
            f"f32 mismatch at batch={batch}"

    # --- bf16-streaming path (v6e/v7x bandwidth saver) -------------------
    # Operands are quantised to bf16 (accumulation / tanh / bias / relu stay
    # f32), so compare against the f32 reference with a loose tolerance.
    l1_bf, l2_bf = pack_params(w1, b1, w2, b2, dtype=jnp.bfloat16)
    x = jax.random.normal(kx, (BATCH, N_INPUTS), jnp.float32)
    out_bf = ff_forward(x, l1_bf, l2_bf)
    jax.block_until_ready(out_bf)
    ref = jnp.maximum(jnp.tanh(x @ w1 + b1) @ w2 + b2, 0.0)
    assert jnp.allclose(out_bf, ref, atol=5e-2, rtol=5e-2), "bf16 mismatch"

    print("KERNEL_OK")
</pallas_src>

<mosaic_0001>
module attributes {stable_mosaic.version = 11 : i64} {
  func.func @ff_kernel(%arg0: i32, %arg1: memref<128x256xf32, #tpu.memory_space<vmem>>, %arg2: memref<40x128xf32, #tpu.memory_space<vmem>>, %arg3: memref<136x16xf32, #tpu.memory_space<vmem>>, %arg4: memref<128x128xf32, #tpu.memory_space<vmem>>) attributes {dimension_semantics = [#tpu.dimension_semantics<parallel>], iteration_bounds = array<i64: 1>, scalar_prefetch = 0 : i64, scratch_operands = 0 : i64, tpu.core_type = #tpu.core_type<tc>, window_params = [{transform_indices = @transform_0, window_bounds = array<i64: 128, 256>}, {pipeline_mode = #tpu.pipeline_mode<synchronous>, transform_indices = @transform_1, window_bounds = array<i64: 40, 128>}, {pipeline_mode = #tpu.pipeline_mode<synchronous>, transform_indices = @transform_2, window_bounds = array<i64: 136, 16>}, {transform_indices = @transform_3, window_bounds = array<i64: 128, 128>}]} {
    %c0 = arith.constant 0 : index
    %c0_0 = arith.constant 0 : index
    %0 = vector.load %arg2[%c0, %c0_0] : memref<40x128xf32, #tpu.memory_space<vmem>>, vector<32x128xf32>
    %c32 = arith.constant 32 : index
    %c0_1 = arith.constant 0 : index
    %1 = vector.load %arg2[%c32, %c0_1] : memref<40x128xf32, #tpu.memory_space<vmem>>, vector<1x128xf32>
    %c0_2 = arith.constant 0 : index
    %c0_3 = arith.constant 0 : index
    %2 = vector.load %arg3[%c0_2, %c0_3] : memref<136x16xf32, #tpu.memory_space<vmem>>, vector<128x16xf32>
    %c128 = arith.constant 128 : index
    %c0_4 = arith.constant 0 : index
    %3 = vector.load %arg3[%c128, %c0_4] : memref<136x16xf32, #tpu.memory_space<vmem>>, vector<1x16xf32>
    %c0_5 = arith.constant 0 : index
    %c0_6 = arith.constant 0 : index
    %4 = vector.load %arg1[%c0_5, %c0_6] : memref<128x256xf32, #tpu.memory_space<vmem>>, vector<128x32xf32>
    %cst = arith.constant dense<0.000000e+00> : vector<128x128xf32>
    %5 = tpu.matmul %4, %0, %cst {dimension_numbers = #tpu.dot_dimension_numbers<[1], [0], [0], [1], [0, 0, 1, 1], [], []>} : vector<128x32xf32>, vector<32x128xf32>, vector<128x128xf32> -> vector<128x128xf32>
    %6 = vector.broadcast %1 : vector<1x128xf32> to vector<128x128xf32>
    %7 = arith.addf %5, %6 : vector<128x128xf32>
    %8 = math.tanh %7 : vector<128x128xf32>
    %cst_7 = arith.constant dense<0.000000e+00> : vector<128x16xf32>
    %9 = tpu.matmul %8, %2, %cst_7 {dimension_numbers = #tpu.dot_dimension_numbers<[1], [0], [0], [1], [0, 0, 1, 1], [], []>} : vector<128x128xf32>, vector<128x16xf32>, vector<128x16xf32> -> vector<128x16xf32>
    %10 = vector.broadcast %3 : vector<1x16xf32> to vector<128x16xf32>
    %11 = arith.addf %9, %10 : vector<128x16xf32>
    %cst_8 = arith.constant 0.000000e+00 : f32
    %12 = vector.broadcast %cst_8 : f32 to vector<128x16xf32>
    %13 = arith.maximumf %11, %12 : vector<128x16xf32>
    %c0_9 = arith.constant 0 : index
    %c0_10 = arith.constant 0 : index
    %14 = vector.load %arg4[%c0_9, %c0_10] : memref<128x128xf32, #tpu.memory_space<vmem>>, vector<128x16xf32>
    tpu.vector_store %arg4[%c0_9, %c0_10], %13 {strides = array<i32>} : memref<128x128xf32, #tpu.memory_space<vmem>>, vector<128x16xf32>,
    %c0_11 = arith.constant 0 : index
    %c32_12 = arith.constant 32 : index
    %15 = vector.load %arg1[%c0_11, %c32_12] : memref<128x256xf32, #tpu.memory_space<vmem>>, vector<128x32xf32>
    %cst_13 = arith.constant dense<0.000000e+00> : vector<128x128xf32>
    %16 = tpu.matmul %15, %0, %cst_13 {dimension_numbers = #tpu.dot_dimension_numbers<[1], [0], [0], [1], [0, 0, 1, 1], [], []>} : vector<128x32xf32>, vector<32x128xf32>, vector<128x128xf32> -> vector<128x128xf32>
    %17 = vector.broadcast %1 : vector<1x128xf32> to vector<128x128xf32>
    %18 = arith.addf %16, %17 : vector<128x128xf32>
    %19 = math.tanh %18 : vector<128x128xf32>
    %cst_14 = arith.constant dense<0.000000e+00> : vector<128x16xf32>
    %20 = tpu.matmul %19, %2, %cst_14 {dimension_numbers = #tpu.dot_dimension_numbers<[1], [0], [0], [1], [0, 0, 1, 1], [], []>} : vector<128x128xf32>, vector<128x16xf32>, vector<128x16xf32> -> vector<128x16xf32>
    %21 = vector.broadcast %3 : vector<1x16xf32> to vector<128x16xf32>
    %22 = arith.addf %20, %21 : vector<128x16xf32>
    %cst_15 = arith.constant 0.000000e+00 : f32
    %23 = vector.broadcast %cst_15 : f32 to vector<128x16xf32>
    %24 = arith.maximumf %22, %23 : vector<128x16xf32>
    %c0_16 = arith.constant 0 : index
    %c16 = arith.constant 16 : index
    %25 = vector.load %arg4[%c0_16, %c16] : memref<128x128xf32, #tpu.memory_space<vmem>>, vector<128x16xf32>
    tpu.vector_store %arg4[%c0_16, %c16], %24 {strides = array<i32>} : memref<128x128xf32, #tpu.memory_space<vmem>>, vector<128x16xf32>,
    %c0_17 = arith.constant 0 : index
    %c64 = arith.constant 64 : index
    %26 = vector.load %arg1[%c0_17, %c64] : memref<128x256xf32, #tpu.memory_space<vmem>>, vector<128x32xf32>
    %cst_18 = arith.constant dense<0.000000e+00> : vector<128x128xf32>
    %27 = tpu.matmul %26, %0, %cst_18 {dimension_numbers = #tpu.dot_dimension_numbers<[1], [0], [0], [1], [0, 0, 1, 1], [], []>} : vector<128x32xf32>, vector<32x128xf32>, vector<128x128xf32> -> vector<128x128xf32>
    %28 = vector.broadcast %1 : vector<1x128xf32> to vector<128x128xf32>
    %29 = arith.addf %27, %28 : vector<128x128xf32>
    %30 = math.tanh %29 : vector<128x128xf32>
    %cst_19 = arith.constant dense<0.000000e+00> : vector<128x16xf32>
    %31 = tpu.matmul %30, %2, %cst_19 {dimension_numbers = #tpu.dot_dimension_numbers<[1], [0], [0], [1], [0, 0, 1, 1], [], []>} : vector<128x128xf32>, vector<128x16xf32>, vector<128x16xf32> -> vector<128x16xf32>
    %32 = vector.broadcast %3 : vector<1x16xf32> to vector<128x16xf32>
    %33 = arith.addf %31, %32 : vector<128x16xf32>
    %cst_20 = arith.constant 0.000000e+00 : f32
    %34 = vector.broadcast %cst_20 : f32 to vector<128x16xf32>
    %35 = arith.maximumf %33, %34 : vector<128x16xf32>
    %c0_21 = arith.constant 0 : index
    %c32_22 = arith.constant 32 : index
    %36 = vector.load %arg4[%c0_21, %c32_22] : memref<128x128xf32, #tpu.memory_space<vmem>>, vector<128x16xf32>
    tpu.vector_store %arg4[%c0_21, %c32_22], %35 {strides = array<i32>} : memref<128x128xf32, #tpu.memory_space<vmem>>, vector<128x16xf32>,
    %c0_23 = arith.constant 0 : index
    %c96 = arith.constant 96 : index
    %37 = vector.load %arg1[%c0_23, %c96] : memref<128x256xf32, #tpu.memory_space<vmem>>, vector<128x32xf32>
    %cst_24 = arith.constant dense<0.000000e+00> : vector<128x128xf32>
    %38 = tpu.matmul %37, %0, %cst_24 {dimension_numbers = #tpu.dot_dimension_numbers<[1], [0], [0], [1], [0, 0, 1, 1], [], []>} : vector<128x32xf32>, vector<32x128xf32>, vector<128x128xf32> -> vector<128x128xf32>
    %39 = vector.broadcast %1 : vector<1x128xf32> to vector<128x128xf32>
    %40 = arith.addf %38, %39 : vector<128x128xf32>
    %41 = math.tanh %40 : vector<128x128xf32>
    %cst_25 = arith.constant dense<0.000000e+00> : vector<128x16xf32>
    %42 = tpu.matmul %41, %2, %cst_25 {dimension_numbers = #tpu.dot_dimension_numbers<[1], [0], [0], [1], [0, 0, 1, 1], [], []>} : vector<128x128xf32>, vector<128x16xf32>, vector<128x16xf32> -> vector<128x16xf32>
    %43 = vector.broadcast %3 : vector<1x16xf32> to vector<128x16xf32>
    %44 = arith.addf %42, %43 : vector<128x16xf32>
    %cst_26 = arith.constant 0.000000e+00 : f32
    %45 = vector.broadcast %cst_26 : f32 to vector<128x16xf32>
    %46 = arith.maximumf %44, %45 : vector<128x16xf32>
    %c0_27 = arith.constant 0 : index
    %c48 = arith.constant 48 : index
    %47 = vector.load %arg4[%c0_27, %c48] : memref<128x128xf32, #tpu.memory_space<vmem>>, vector<128x16xf32>
    tpu.vector_store %arg4[%c0_27, %c48], %46 {strides = array<i32>} : memref<128x128xf32, #tpu.memory_space<vmem>>, vector<128x16xf32>,
    %c0_28 = arith.constant 0 : index
    %c128_29 = arith.constant 128 : index
    %48 = vector.load %arg1[%c0_28, %c128_29] : memref<128x256xf32, #tpu.memory_space<vmem>>, vector<128x32xf32>
    %cst_30 = arith.constant dense<0.000000e+00> : vector<128x128xf32>
    %49 = tpu.matmul %48, %0, %cst_30 {dimension_numbers = #tpu.dot_dimension_numbers<[1], [0], [0], [1], [0, 0, 1, 1], [], []>} : vector<128x32xf32>, vector<32x128xf32>, vector<128x128xf32> -> vector<128x128xf32>
    %50 = vector.broadcast %1 : vector<1x128xf32> to vector<128x128xf32>
    %51 = arith.addf %49, %50 : vector<128x128xf32>
    %52 = math.tanh %51 : vector<128x128xf32>
    %cst_31 = arith.constant dense<0.000000e+00> : vector<128x16xf32>
    %53 = tpu.matmul %52, %2, %cst_31 {dimension_numbers = #tpu.dot_dimension_numbers<[1], [0], [0], [1], [0, 0, 1, 1], [], []>} : vector<128x128xf32>, vector<128x16xf32>, vector<128x16xf32> -> vector<128x16xf32>
    %54 = vector.broadcast %3 : vector<1x16xf32> to vector<128x16xf32>
    %55 = arith.addf %53, %54 : vector<128x16xf32>
    %cst_32 = arith.constant 0.000000e+00 : f32
    %56 = vector.broadcast %cst_32 : f32 to vector<128x16xf32>
    %57 = arith.maximumf %55, %56 : vector<128x16xf32>
    %c0_33 = arith.constant 0 : index
    %c64_34 = arith.constant 64 : index
    %58 = vector.load %arg4[%c0_33, %c64_34] : memref<128x128xf32, #tpu.memory_space<vmem>>, vector<128x16xf32>
    tpu.vector_store %arg4[%c0_33, %c64_34], %57 {strides = array<i32>} : memref<128x128xf32, #tpu.memory_space<vmem>>, vector<128x16xf32>,
    %c0_35 = arith.constant 0 : index
    %c160 = arith.constant 160 : index
    %59 = vector.load %arg1[%c0_35, %c160] : memref<128x256xf32, #tpu.memory_space<vmem>>, vector<128x32xf32>
    %cst_36 = arith.constant dense<0.000000e+00> : vector<128x128xf32>
    %60 = tpu.matmul %59, %0, %cst_36 {dimension_numbers = #tpu.dot_dimension_numbers<[1], [0], [0], [1], [0, 0, 1, 1], [], []>} : vector<128x32xf32>, vector<32x128xf32>, vector<128x128xf32> -> vector<128x128xf32>
    %61 = vector.broadcast %1 : vector<1x128xf32> to vector<128x128xf32>
    %62 = arith.addf %60, %61 : vector<128x128xf32>
    %63 = math.tanh %62 : vector<128x128xf32>
    %cst_37 = arith.constant dense<0.000000e+00> : vector<128x16xf32>
    %64 = tpu.matmul %63, %2, %cst_37 {dimension_numbers = #tpu.dot_dimension_numbers<[1], [0], [0], [1], [0, 0, 1, 1], [], []>} : vector<128x128xf32>, vector<128x16xf32>, vector<128x16xf32> -> vector<128x16xf32>
    %65 = vector.broadcast %3 : vector<1x16xf32> to vector<128x16xf32>
    %66 = arith.addf %64, %65 : vector<128x16xf32>
    %cst_38 = arith.constant 0.000000e+00 : f32
    %67 = vector.broadcast %cst_38 : f32 to vector<128x16xf32>
    %68 = arith.maximumf %66, %67 : vector<128x16xf32>
    %c0_39 = arith.constant 0 : index
    %c80 = arith.constant 80 : index
    %69 = vector.load %arg4[%c0_39, %c80] : memref<128x128xf32, #tpu.memory_space<vmem>>, vector<128x16xf32>
    tpu.vector_store %arg4[%c0_39, %c80], %68 {strides = array<i32>} : memref<128x128xf32, #tpu.memory_space<vmem>>, vector<128x16xf32>,
    %c0_40 = arith.constant 0 : index
    %c192 = arith.constant 192 : index
    %70 = vector.load %arg1[%c0_40, %c192] : memref<128x256xf32, #tpu.memory_space<vmem>>, vector<128x32xf32>
    %cst_41 = arith.constant dense<0.000000e+00> : vector<128x128xf32>
    %71 = tpu.matmul %70, %0, %cst_41 {dimension_numbers = #tpu.dot_dimension_numbers<[1], [0], [0], [1], [0, 0, 1, 1], [], []>} : vector<128x32xf32>, vector<32x128xf32>, vector<128x128xf32> -> vector<128x128xf32>
    %72 = vector.broadcast %1 : vector<1x128xf32> to vector<128x128xf32>
    %73 = arith.addf %71, %72 : vector<128x128xf32>
    %74 = math.tanh %73 : vector<128x128xf32>
    %cst_42 = arith.constant dense<0.000000e+00> : vector<128x16xf32>
    %75 = tpu.matmul %74, %2, %cst_42 {dimension_numbers = #tpu.dot_dimension_numbers<[1], [0], [0], [1], [0, 0, 1, 1], [], []>} : vector<128x128xf32>, vector<128x16xf32>, vector<128x16xf32> -> vector<128x16xf32>
    %76 = vector.broadcast %3 : vector<1x16xf32> to vector<128x16xf32>
    %77 = arith.addf %75, %76 : vector<128x16xf32>
    %cst_43 = arith.constant 0.000000e+00 : f32
    %78 = vector.broadcast %cst_43 : f32 to vector<128x16xf32>
    %79 = arith.maximumf %77, %78 : vector<128x16xf32>
    %c0_44 = arith.constant 0 : index
    %c96_45 = arith.constant 96 : index
    %80 = vector.load %arg4[%c0_44, %c96_45] : memref<128x128xf32, #tpu.memory_space<vmem>>, vector<128x16xf32>
    tpu.vector_store %arg4[%c0_44, %c96_45], %79 {strides = array<i32>} : memref<128x128xf32, #tpu.memory_space<vmem>>, vector<128x16xf32>,
    %c0_46 = arith.constant 0 : index
    %c224 = arith.constant 224 : index
    %81 = vector.load %arg1[%c0_46, %c224] : memref<128x256xf32, #tpu.memory_space<vmem>>, vector<128x32xf32>
    %cst_47 = arith.constant dense<0.000000e+00> : vector<128x128xf32>
    %82 = tpu.matmul %81, %0, %cst_47 {dimension_numbers = #tpu.dot_dimension_numbers<[1], [0], [0], [1], [0, 0, 1, 1], [], []>} : vector<128x32xf32>, vector<32x128xf32>, vector<128x128xf32> -> vector<128x128xf32>
    %83 = vector.broadcast %1 : vector<1x128xf32> to vector<128x128xf32>
    %84 = arith.addf %82, %83 : vector<128x128xf32>
    %85 = math.tanh %84 : vector<128x128xf32>
    %cst_48 = arith.constant dense<0.000000e+00> : vector<128x16xf32>
    %86 = tpu.matmul %85, %2, %cst_48 {dimension_numbers = #tpu.dot_dimension_numbers<[1], [0], [0], [1], [0, 0, 1, 1], [], []>} : vector<128x128xf32>, vector<128x16xf32>, vector<128x16xf32> -> vector<128x16xf32>
    %87 = vector.broadcast %3 : vector<1x16xf32> to vector<128x16xf32>
    %88 = arith.addf %86, %87 : vector<128x16xf32>
    %cst_49 = arith.constant 0.000000e+00 : f32
    %89 = vector.broadcast %cst_49 : f32 to vector<128x16xf32>
    %90 = arith.maximumf %88, %89 : vector<128x16xf32>
    %c0_50 = arith.constant 0 : index
    %c112 = arith.constant 112 : index
    %91 = vector.load %arg4[%c0_50, %c112] : memref<128x128xf32, #tpu.memory_space<vmem>>, vector<128x16xf32>
    tpu.vector_store %arg4[%c0_50, %c112], %90 {strides = array<i32>} : memref<128x128xf32, #tpu.memory_space<vmem>>, vector<128x16xf32>,
    return
  }
  func.func @transform_0(%arg0: i32) -> (i32, i32) {
    %c0_i32 = arith.constant 0 : i32
    %c0_i32_0 = arith.constant 0 : i32
    return %arg0, %c0_i32 : i32, i32
  }
  func.func @transform_1(%arg0: i32) -> (i32, i32) {
    %c0_i32 = arith.constant 0 : i32
    %c0_i32_0 = arith.constant 0 : i32
    %c0_i32_1 = arith.constant 0 : i32
    return %c0_i32, %c0_i32_0 : i32, i32
  }
  func.func @transform_2(%arg0: i32) -> (i32, i32) {
    %c0_i32 = arith.constant 0 : i32
    %c0_i32_0 = arith.constant 0 : i32
    %c0_i32_1 = arith.constant 0 : i32
    return %c0_i32, %c0_i32_0 : i32, i32
  }
  func.func @transform_3(%arg0: i32) -> (i32, i32) {
    %c0_i32 = arith.constant 0 : i32
    %c0_i32_0 = arith.constant 0 : i32
    return %arg0, %c0_i32 : i32, i32
  }
}

</mosaic_0001>

<bundles_post_ra>
// kernel: tpu_custom_call.1
= control target key start
LH: loop header
LB: loop body
LE: loop exit
PB: predicated region body
PF: predicated region fallthrough
CT: control target
= control target key end

     0   :  { %8 = vsyncpa [#allocation3], 0  ;;  %s7105_s0 = inlined_call_operand.hbm [shape: f32[128,256], index: 0, kind: input, shape index: {}]   ;;  %s7106_s1 = inlined_call_operand.vmem [shape: f32[40,128], index: 1, kind: input, shape index: {}]   ;;  %s7107_s2 = inlined_call_operand.vmem [shape: f32[136,16], index: 2, kind: input, shape index: {}]   ;;  %s7108_s3 = inlined_call_operand.hbm [shape: f32[128,128], index: 3, kind: output, shape index: {}]  }
   0x1   :  { %9 = vsyncpa [#allocation4], 0  ;;  %s5845_s12 = smov [#allocation2]   ;;  %s5797_s16 = scalar_lea.hbm %s7105_s0, 4096 }
   0x2   :  { %s15_s13 = sshll.u32 %s5845_s12, 4  ;;  %p5798_p0 = scmp.ne.s32.totalorder %s7105_s0, %s5797_s16  ;;  %s16_s13 = int_to_ptr.vmem [resolvable:$true] %s15_s13 }
   0x3   :  { %p5801_p1 = scmp.lt.u32.totalorder %s5797_s16, %s7105_s0 }
   0x5   :  { %p5803_p2 = pnand %p5801_p1, %p5798_p0 }
   0x7   :  { %5806 = shalt.err (!%p5803_p2)
}
   0x8   :  { %s5807_s21 = scalar_lea.vmem %s16_s13, 4096  ;;  %p5812_p4 = scmp.lt.s32.totalorder %s16_s13, %s16_s13 }
   0x9   :  { %p5808_p3 = scmp.ne.s32.totalorder %s16_s13, %s5807_s21  ;;  %p5813_p5 = scmp.lt.s32.totalorder %s5807_s21, %s5807_s21 }
   0xb   :  { %p5814_p6 = por %p5813_p5, %p5812_p4 }
   0xd   :  { %p5815_p7 = pnand %p5814_p6, %p5808_p3 }
   0xf   :  { %5818 = shalt.err (!%p5815_p7)
}
  0x10   :  { %s5846_s22 = smov 256   ;;  %s5847_s23 = smov 16  }
  0x11   :  { %21 = dma.hbm_to_vmem [thread:$0]  %s7105_s0, 4096, %s16_s13, [#allocation3], %s5846_s22, %s5846_s22, %s5847_s23  }
  0x12   :  { %5841 = dma.done.wait [#allocation3], 4096  }
  0x13   :  { %5842 = vsyncadd [#allocation3], 4294963200  ;;  %vm71_vm0 = vcmask 261120   ;;  %v5890_v0 = vld [vmem:[#allocation2] sm:$0xff]  ;;  %s5848_s26 = smov 96   ;;  %v5898_v2 = vld [vmem:[#allocation2 + $0x10] sm:$0xff] }
  0x14   :  { %v5892_v1 = vld [vmem:[#allocation2 + $0x20] sm:$0xff]  ;;  %495 = vrot.lane.b32.xlu0 %v5890_v0, %s5848_s26  ;;  %v5900_v3 = vld [vmem:[#allocation2 + $0x30] sm:$0xff]  ;;  %4495 = vmatprep.mubr.msk.f32.mxu0 %vm71_vm0, %v5890_v0  ;;  %v30_v6 = vld [vmem:[%s7106_s1 + $0x8] sm:$0xff]  ;;  %s5849_s7 = smov 64   ;;  %s5850_s8 = smov 32   ;;  %vm446_vm1 = vcmask 130048  }
  0x15   :  { %499 = vrot.lane.b32.xlu1 %v5892_v1, %s5848_s26  ;;  %v5908_v4 = vld [vmem:[#allocation2 + $0x40] sm:$0xff]  ;;  %v5916_v7 = vld [vmem:[#allocation2 + $0x50] sm:$0xff]  ;;  %v32_v10 = vld [vmem:[%s7106_s1 + $0x18] sm:$0xff]  ;;  %vm945_vm2 = vcmask 261248   ;;  %vm1444_vm3 = vcmask 392448   ;;  %vm1943_vm4 = vcmask 523648  }
  0x16   :  { %v29_v5 = vld [vmem:[%s7106_s1] sm:$0xff]  ;;  %v31_v9 = vld [vmem:[%s7106_s1 + $0x10] sm:$0xff]  ;;  %v6027_v22 = vld [vmem:[#allocation2 + $0x8] sm:$0xff]  ;;  %vm2410_vm5 = vcmask 654848   ;;  %vm2909_vm6 = vcmask 786048   ;;  %vm3408_vm7 = vcmask 917248  }
  0x17   :  { %v5918_v8 = vpack.c.bf16 %v30_v6, %v29_v5  ;;  %v5926_v11 = vpack.c.bf16 %v32_v10, %v31_v9  ;;  %v5933_v12 = vld [vmem:[#allocation2 + $0x60] sm:$0xff]  ;;  %v5935_v13 = vld [vmem:[#allocation2 + $0x70] sm:$0xff]  ;;  %v6029_v23 = vld [vmem:[#allocation2 + $0x18] sm:$0xff]  ;;  %vm3907_vm8 = vcmask 1048448  }
  0x18   :  { %497 = vrot.lane.b32.xlu0 %v5898_v2, %s5848_s26  ;;  %v471_v14 = vld [vmem:[#allocation2 + $0x80] sm:$0xff]  ;;  %v472_v15 = vld [vmem:[#allocation2 + $0x90] sm:$0xff]  ;;  %v6035_v24 = vld [vmem:[#allocation2 + $0x28] sm:$0xff] }
  0x19   :  { %501 = vrot.lane.b32.xlu1 %v5900_v3, %s5848_s26  ;;  %5192 = vmatprep.subr.bf16.mxu0 %v5918_v8  ;;  %v473_v16 = vld [vmem:[#allocation2 + $0xa0] sm:$0xff]  ;;  %v474_v17 = vld [vmem:[#allocation2 + $0xb0] sm:$0xff]  ;;  %v6037_v25 = vld [vmem:[#allocation2 + $0x38] sm:$0xff] }
  0x1a   :  { %5194 = vmatpush3.bf16.msra.mxu0 %v5918_v8  ;;  %v475_v18 = vld [vmem:[#allocation2 + $0xc0] sm:$0xff]  ;;  %v476_v19 = vld [vmem:[#allocation2 + $0xd0] sm:$0xff]  ;;  %v6043_v26 = vld [vmem:[#allocation2 + $0x48] sm:$0xff] }
  0x1b   :  { %5196 = vmatprep.subr.bf16.mxu0 %v5926_v11  ;;  %v477_v20 = vld [vmem:[#allocation2 + $0xe0] sm:$0xff]  ;;  %v478_v21 = vld [vmem:[#allocation2 + $0xf0] sm:$0xff]  ;;  %v6045_v27 = vld [vmem:[#allocation2 + $0x58] sm:$0xff] }
  0x1c   :  { %503 = vrot.lane.b32.xlu0 %v5908_v4, %s5848_s26  ;;  %v6051_v28 = vld [vmem:[#allocation2 + $0x68] sm:$0xff]  ;;  %v6053_v29 = vld [vmem:[#allocation2 + $0x78] sm:$0xff]  ;;  %v34_v56 = vld [vmem:[%s7107_s2] sm:$0xff] }
  0x1d   :  { %505 = vrot.lane.b32.xlu1 %v5916_v7, %s5848_s26  ;;  %v6059_v30 = vld [vmem:[#allocation2 + $0x88] sm:$0xff]  ;;  %v6061_v31 = vld [vmem:[#allocation2 + $0x98] sm:$0xff]  ;;  %v36_v61 = vld [vmem:[%s7107_s2 + $0x10] sm:$0xff] }
  0x1e   :  { %5198 = vmatpush3.bf16.msra.mxu0 %v5926_v11  ;;  %v6067_v32 = vld [vmem:[#allocation2 + $0xa8] sm:$0xff]  ;;  %v6069_v33 = vld [vmem:[#allocation2 + $0xb8] sm:$0xff] }
  0x1f   :  { %5232 = vmatprep.subr.bf16.mxu0 %v5918_v8  ;;  %v6076_v38 = vld [vmem:[#allocation2 + $0xc8] sm:$0xff]  ;;  %v6079_v39 = vld [vmem:[#allocation2 + $0xd8] sm:$0xff] }
  0x20   :  { %507 = vrot.lane.b32.xlu0 %v5933_v12, %s5848_s26  ;;  %v6088_v42 = vld [vmem:[#allocation2 + $0xe8] sm:$0xff]  ;;  %v6091_v43 = vld [vmem:[#allocation2 + $0xf8] sm:$0xff] }
  0x21   :  { %509 = vrot.lane.b32.xlu1 %v5935_v13, %s5848_s26  ;;  %4496 = vmatmul.mubr.msk.f32.vlgmr.msra.gmra.mrb[0].mxu0 %vm71_vm0, %v5898_v2  ;;  %v35_v57 = vld [vmem:[%s7107_s2 + $0x8] sm:$0xff]  ;;  %v37_v62 = vld [vmem:[%s7107_s2 + $0x18] sm:$0xff] }
  0x22   :  { %4498 = vmatprep.mubr.msk.f32.mxu0 %vm71_vm0, %v5892_v1  ;;  %5234 = vmatpush3.bf16.msra.mxu0 %v5918_v8  ;;  %v6140_v58 = vpack.c.bf16 %v35_v57, %v34_v56  ;;  %v6157_v63 = vpack.c.bf16 %v37_v62, %v36_v61  ;;  %v41_v9 = vld [vmem:[%s7107_s2 + $0x38] sm:$0xff] }
  0x23   :  { %5236 = vmatprep.subr.bf16.mxu0 %v5926_v11 }
  0x24   :  { %511 = vrot.lane.b32.xlu0 %v471_v14, %s5848_s26  ;;  %5200 = vmatprep.subr.bf16.mxu1 %v6140_v58 }
  0x25   :  { %513 = vrot.lane.b32.xlu1 %v472_v15, %s5848_s26  ;;  %4499 = vmatmul.mubr.msk.f32.gmra.mrb[2].mxu0 %vm71_vm0, %v5900_v3 }
  0x26   :  { %4501 = vmatprep.mubr.msk.f32.mxu0 %vm71_vm0, %v5908_v4  ;;  %5238 = vmatpush3.bf16.msra.mxu0 %v5926_v11 }
  0x27   :  { %5272 = vmatprep.subr.bf16.mxu0 %v5918_v8  ;;  %5202 = vmatpush3.bf16.msra.mxu1 %v6140_v58 }
  0x28   :  { %515 = vrot.lane.b32.xlu0 %v473_v16, %s5848_s26  ;;  %5204 = vmatprep.subr.bf16.mxu1 %v6157_v63 }
  0x29   :  { %517 = vrot.lane.b32.xlu1 %v474_v17, %s5848_s26  ;;  %4502 = vmatmul.mubr.msk.f32.gmra.mrb[4].mxu0 %vm71_vm0, %v5916_v7 }
  0x2a   :  { %4504 = vmatprep.mubr.msk.f32.mxu0 %vm71_vm0, %v5933_v12 }
  0x2b   :  { %5206 = vmatpush3.bf16.msra.mxu1 %v6157_v63 }
  0x2c   :  { %519 = vrot.lane.b32.xlu0 %v475_v18, %s5848_s26 }
  0x2d   :  { %521 = vrot.lane.b32.xlu1 %v476_v19, %s5848_s26  ;;  %4505 = vmatmul.mubr.msk.f32.gmra.mrb[6].mxu0 %vm71_vm0, %v5935_v13 }
  0x2e   :  { %4507 = vmatprep.mubr.msk.f32.mxu0 %vm71_vm0, %v471_v14 }
  0x30   :  { %523 = vrot.lane.b32.xlu0 %v477_v20, %s5848_s26 }
  0x31   :  { %525 = vrot.lane.b32.xlu1 %v478_v21, %s5848_s26  ;;  %4508 = vmatmul.mubr.msk.f32.gmra.mrb[8].mxu0 %vm71_vm0, %v472_v15 }
  0x32   :  { %4510 = vmatprep.mubr.msk.f32.mxu0 %vm71_vm0, %v473_v16 }
  0x34   :  { %994 = vrot.lane.b32.xlu0 %v5890_v0, %s5849_s7 }
  0x35   :  { %996 = vrot.lane.b32.xlu1 %v5898_v2, %s5849_s7  ;;  %4511 = vmatmul.mubr.msk.f32.gmra.mrb[10].mxu0 %vm71_vm0, %v474_v17 }
  0x36   :  { %4513 = vmatprep.mubr.msk.f32.mxu0 %vm71_vm0, %v475_v18 }
  0x38   :  { %998 = vrot.lane.b32.xlu0 %v5892_v1, %s5849_s7 }
  0x39   :  { %1000 = vrot.lane.b32.xlu1 %v5900_v3, %s5849_s7  ;;  %4514 = vmatmul.mubr.msk.f32.gmra.mrb[12].mxu0 %vm71_vm0, %v476_v19 }
  0x3a   :  { %4516 = vmatprep.mubr.msk.f32.mxu0 %vm71_vm0, %v477_v20 }
  0x3c   :  { %1002 = vrot.lane.b32.xlu0 %v5908_v4, %s5849_s7 }
  0x3d   :  { %1004 = vrot.lane.b32.xlu1 %v5916_v7, %s5849_s7  ;;  %4517 = vmatmul.mubr.msk.f32.gmra.mrb[14].mxu0 %vm71_vm0, %v478_v21 }
  0x40   :  { %1006 = vrot.lane.b32.xlu0 %v5933_v12, %s5849_s7 }
  0x41   :  { %1008 = vrot.lane.b32.xlu1 %v5935_v13, %s5849_s7 }
  0x44   :  { %1010 = vrot.lane.b32.xlu0 %v471_v14, %s5849_s7 }
  0x45   :  { %1012 = vrot.lane.b32.xlu1 %v472_v15, %s5849_s7 }
  0x48   :  { %1014 = vrot.lane.b32.xlu0 %v473_v16, %s5849_s7 }
  0x49   :  { %1016 = vrot.lane.b32.xlu1 %v474_v17, %s5849_s7 }
  0x4c   :  { %1018 = vrot.lane.b32.xlu0 %v475_v18, %s5849_s7 }
  0x4d   :  { %1020 = vrot.lane.b32.xlu1 %v476_v19, %s5849_s7 }
  0x50   :  { %1022 = vrot.lane.b32.xlu0 %v477_v20, %s5849_s7 }
  0x51   :  { %1024 = vrot.lane.b32.xlu1 %v478_v21, %s5849_s7 }
  0x54   :  { %1493 = vrot.lane.b32.xlu0 %v5890_v0, %s5850_s8 }
  0x55   :  { %1495 = vrot.lane.b32.xlu1 %v5898_v2, %s5850_s8  ;;  %v38_v2 = vld [vmem:[%s7107_s2 + $0x20] sm:$0xff] }
  0x58   :  { %1497 = vrot.lane.b32.xlu0 %v5892_v1, %s5850_s8 }
  0x59   :  { %1499 = vrot.lane.b32.xlu1 %v5900_v3, %s5850_s8  ;;  %v39_v3 = vld [vmem:[%s7107_s2 + $0x28] sm:$0xff] }
  0x5c   :  { %1501 = vrot.lane.b32.xlu0 %v5908_v4, %s5850_s8  ;;  %v6175_v4 = vpack.c.bf16 %v39_v3, %v38_v2 }
  0x5d   :  { %1503 = vrot.lane.b32.xlu1 %v5916_v7, %s5850_s8  ;;  %v40_v7 = vld [vmem:[%s7107_s2 + $0x30] sm:$0xff] }
  0x5e   :  { %5208 = vmatprep.subr.bf16.mxu1 %v6175_v4  ;;  %v6191_v10 = vpack.c.bf16 %v41_v9, %v40_v7 }
  0x5f   :  { %5210 = vmatpush3.bf16.msra.mxu1 %v6175_v4 }
  0x60   :  { %1505 = vrot.lane.b32.xlu0 %v5933_v12, %s5850_s8  ;;  %5212 = vmatprep.subr.bf16.mxu1 %v6191_v10 }
  0x61   :  { %1507 = vrot.lane.b32.xlu1 %v5935_v13, %s5850_s8 }
  0x63   :  { %5214 = vmatpush3.bf16.msra.mxu1 %v6191_v10 }
  0x64   :  { %1509 = vrot.lane.b32.xlu0 %v471_v14, %s5850_s8  ;;  %v42_v14 = vld [vmem:[%s7107_s2 + $0x40] sm:$0xff] }
  0x65   :  { %1511 = vrot.lane.b32.xlu1 %v472_v15, %s5850_s8  ;;  %v43_v15 = vld [vmem:[%s7107_s2 + $0x48] sm:$0xff] }
  0x68   :  { %1513 = vrot.lane.b32.xlu0 %v473_v16, %s5850_s8  ;;  %v6207_v16 = vpack.c.bf16 %v43_v15, %v42_v14 }
  0x69   :  { %1515 = vrot.lane.b32.xlu1 %v474_v17, %s5850_s8 }
  0x6a   :  { %5216 = vmatprep.subr.bf16.mxu1 %v6207_v16 }
  0x6b   :  { %5218 = vmatpush3.bf16.msra.mxu1 %v6207_v16 }
  0x6c   :  { %1517 = vrot.lane.b32.xlu0 %v475_v18, %s5850_s8 }
  0x6d   :  { %1519 = vrot.lane.b32.xlu1 %v476_v19, %s5850_s8  ;;  %v44_v19 = vld [vmem:[%s7107_s2 + $0x50] sm:$0xff] }
  0x70   :  { %1521 = vrot.lane.b32.xlu0 %v477_v20, %s5850_s8  ;;  %v45_v20 = vld [vmem:[%s7107_s2 + $0x58] sm:$0xff] }
  0x71   :  { %1523 = vrot.lane.b32.xlu1 %v478_v21, %s5850_s8  ;;  %v6223_v21 = vpack.c.bf16 %v45_v20, %v44_v19 }
  0x73   :  { %5220 = vmatprep.subr.bf16.mxu1 %v6223_v21 }
  0x74   :  { %2459 = vrot.lane.b32.xlu0 %v6027_v22, %s5848_s26  ;;  %5222 = vmatpush3.bf16.msra.mxu1 %v6223_v21 }
  0x75   :  { %2461 = vrot.lane.b32.xlu1 %v6029_v23, %s5848_s26 }
  0x78   :  { %2463 = vrot.lane.b32.xlu0 %v6035_v24, %s5848_s26 }
  0x79   :  { %2465 = vrot.lane.b32.xlu1 %v6037_v25, %s5848_s26 }
  0x7c   :  { %2467 = vrot.lane.b32.xlu0 %v6043_v26, %s5848_s26 }
  0x7d   :  { %2469 = vrot.lane.b32.xlu1 %v6045_v27, %s5848_s26 }
  0x80   :  { %2471 = vrot.lane.b32.xlu0 %v6051_v28, %s5848_s26 }
  0x81   :  { %2473 = vrot.lane.b32.xlu1 %v6053_v29, %s5848_s26 }
  0x84   :  { %2475 = vrot.lane.b32.xlu0 %v6059_v30, %s5848_s26 }
  0x85   :  { %2477 = vrot.lane.b32.xlu1 %v6061_v31, %s5848_s26 }
  0x86   :  { %v496_v34 = vpop.permute.xlu0 %495 }
  0x87   :  { %v500_v35 = vpop.permute.xlu1 %499  ;;  %4583 = vmatprep.mubr.msk.f32.mxu0 %vm71_vm0, %v496_v34 }
  0x88   :  { %2479 = vrot.lane.b32.xlu0 %v6067_v32, %s5848_s26 }
  0x89   :  { %2481 = vrot.lane.b32.xlu1 %v6069_v33, %s5848_s26 }
  0x8a   :  { %v498_v36 = vpop.permute.xlu0 %497 }
  0x8b   :  { %v502_v37 = vpop.permute.xlu1 %501  ;;  %4584 = vmatmul.mubr.msk.f32.vlgmr.msra.gmra.mrb[16].mxu0 %vm71_vm0, %v498_v36  ;;  %v46_v36 = vld [vmem:[%s7107_s2 + $0x60] sm:$0xff] }
  0x8c   :  { %5274 = vmatpush3.bf16.msra.mxu0 %v5918_v8  ;;  %4586 = vmatprep.mubr.msk.f32.mxu0 %vm71_vm0, %v500_v35 }
  0x8d   :  { %5276 = vmatprep.subr.bf16.mxu0 %v5926_v11  ;;  %2483 = vrot.lane.b32.xlu0 %v6076_v38, %s5848_s26 }
  0x8e   :  { %v504_v40 = vpop.permute.xlu0 %503  ;;  %2485 = vrot.lane.b32.xlu1 %v6079_v39, %s5848_s26 }
  0x8f   :  { %v506_v41 = vpop.permute.xlu1 %505  ;;  %4587 = vmatmul.mubr.msk.f32.gmra.mrb[18].mxu0 %vm71_vm0, %v502_v37  ;;  %v47_v37 = vld [vmem:[%s7107_s2 + $0x68] sm:$0xff] }
  0x90   :  { %4589 = vmatprep.mubr.msk.f32.mxu0 %vm71_vm0, %v504_v40  ;;  %5278 = vmatpush3.bf16.msra.mxu0 %v5926_v11  ;;  %v6239_v40 = vpack.c.bf16 %v47_v37, %v46_v36 }
  0x91   :  { %5312 = vmatprep.subr.bf16.mxu0 %v5918_v8  ;;  %2487 = vrot.lane.b32.xlu0 %v6088_v42, %s5848_s26 }
  0x92   :  { %v508_v44 = vpop.permute.xlu0 %507  ;;  %2489 = vrot.lane.b32.xlu1 %v6091_v43, %s5848_s26  ;;  %5224 = vmatprep.subr.bf16.mxu1 %v6239_v40 }
  0x93   :  { %v510_v45 = vpop.permute.xlu1 %509  ;;  %4590 = vmatmul.mubr.msk.f32.gmra.mrb[20].mxu0 %vm71_vm0, %v506_v41  ;;  %5226 = vmatpush3.bf16.msra.mxu1 %v6239_v40 }
  0x94   :  { %4592 = vmatprep.mubr.msk.f32.mxu0 %vm71_vm0, %v508_v44 }
  0x95   :  { %2958 = vrot.lane.b32.xlu0 %v6027_v22, %s5849_s7 }
  0x96   :  { %v512_v46 = vpop.permute.xlu0 %511  ;;  %2960 = vrot.lane.b32.xlu1 %v6029_v23, %s5849_s7 }
  0x97   :  { %v514_v47 = vpop.permute.xlu1 %513  ;;  %4593 = vmatmul.mubr.msk.f32.gmra.mrb[22].mxu0 %vm71_vm0, %v510_v45  ;;  %v48_v45 = vld [vmem:[%s7107_s2 + $0x70] sm:$0xff] }
  0x98   :  { %4595 = vmatprep.mubr.msk.f32.mxu0 %vm71_vm0, %v512_v46  ;;  %v49_v46 = vld [vmem:[%s7107_s2 + $0x78] sm:$0xff] }
  0x99   :  { %2962 = vrot.lane.b32.xlu0 %v6035_v24, %s5849_s7 }
  0x9a   :  { %v516_v48 = vpop.permute.xlu0 %515  ;;  %2964 = vrot.lane.b32.xlu1 %v6037_v25, %s5849_s7 }
  0x9b   :  { %v518_v49 = vpop.permute.xlu1 %517  ;;  %4596 = vmatmul.mubr.msk.f32.gmra.mrb[24].mxu0 %vm71_vm0, %v514_v47  ;;  %v6255_v47 = vpack.c.bf16 %v49_v46, %v48_v45 }
  0x9c   :  { %4598 = vmatprep.mubr.msk.f32.mxu0 %vm71_vm0, %v516_v48 }
  0x9d   :  { %2966 = vrot.lane.b32.xlu0 %v6043_v26, %s5849_s7  ;;  %5228 = vmatprep.subr.bf16.mxu1 %v6255_v47 }
  0x9e   :  { %v520_v50 = vpop.permute.xlu0 %519  ;;  %2968 = vrot.lane.b32.xlu1 %v6045_v27, %s5849_s7  ;;  %5230 = vmatpush3.bf16.msra.mxu1 %v6255_v47 }
  0x9f   :  { %v522_v51 = vpop.permute.xlu1 %521  ;;  %4599 = vmatmul.mubr.msk.f32.gmra.mrb[26].mxu0 %vm71_vm0, %v518_v49  ;;  %5240 = vmatprep.subr.bf16.mxu1 %v6140_v58 }
  0xa0   :  { %4601 = vmatprep.mubr.msk.f32.mxu0 %vm71_vm0, %v520_v50 }
  0xa1   :  { %2970 = vrot.lane.b32.xlu0 %v6051_v28, %s5849_s7 }
  0xa2   :  { %v524_v52 = vpop.permute.xlu0 %523  ;;  %2972 = vrot.lane.b32.xlu1 %v6053_v29, %s5849_s7 }
  0xa3   :  { %v526_v53 = vpop.permute.xlu1 %525  ;;  %4602 = vmatmul.mubr.msk.f32.gmra.mrb[28].mxu0 %vm71_vm0, %v522_v51 }
  0xa4   :  { %4604 = vmatprep.mubr.msk.f32.mxu0 %vm71_vm0, %v524_v52 }
  0xa5   :  { %2974 = vrot.lane.b32.xlu0 %v6059_v30, %s5849_s7 }
  0xa6   :  { %v995_v54 = vpop.permute.xlu0 %994  ;;  %2976 = vrot.lane.b32.xlu1 %v6061_v31, %s5849_s7 }
  0xa7   :  { %v997_v55 = vpop.permute.xlu1 %996  ;;  %4605 = vmatmul.mubr.msk.f32.gmra.mrb[30].mxu0 %vm71_vm0, %v526_v53 }
  0xa8   :  { %4671 = vmatprep.mubr.msk.f32.mxu0 %vm71_vm0, %v995_v54 }
  0xa9   :  { %2978 = vrot.lane.b32.xlu0 %v6067_v32, %s5849_s7 }
  0xaa   :  { %v999_v59 = vpop.permute.xlu0 %998  ;;  %2980 = vrot.lane.b32.xlu1 %v6069_v33, %s5849_s7 }
  0xab   :  { %v1001_v60 = vpop.permute.xlu1 %1000  ;;  %4672 = vmatmul.mubr.msk.f32.vlgmr.msra.gmra.mrb[32].mxu0 %vm71_vm0, %v997_v55 }
  0xac   :  { %5314 = vmatpush3.bf16.msra.mxu0 %v5918_v8  ;;  %4674 = vmatprep.mubr.msk.f32.mxu0 %vm71_vm0, %v999_v59 }
  0xad   :  { %5316 = vmatprep.subr.bf16.mxu0 %v5926_v11  ;;  %2982 = vrot.lane.b32.xlu0 %v6076_v38, %s5849_s7 }
  0xae   :  { %v1003_v0 = vpop.permute.xlu0 %1002  ;;  %2984 = vrot.lane.b32.xlu1 %v6079_v39, %s5849_s7 }
  0xaf   :  { %v1005_v1 = vpop.permute.xlu1 %1004  ;;  %4675 = vmatmul.mubr.msk.f32.gmra.mrb[34].mxu0 %vm71_vm0, %v1001_v60 }
  0xb0   :  { %4677 = vmatprep.mubr.msk.f32.mxu0 %vm71_vm0, %v1003_v0  ;;  %5318 = vmatpush3.bf16.msra.mxu0 %v5926_v11 }
  0xb1   :  { %5352 = vmatprep.subr.bf16.mxu0 %v5918_v8  ;;  %2986 = vrot.lane.b32.xlu0 %v6088_v42, %s5849_s7 }
  0xb2   :  { %v1007_v5 = vpop.permute.xlu0 %1006  ;;  %2988 = vrot.lane.b32.xlu1 %v6091_v43, %s5849_s7 }
  0xb3   :  { %v1009_v6 = vpop.permute.xlu1 %1008  ;;  %4678 = vmatmul.mubr.msk.f32.gmra.mrb[36].mxu0 %vm71_vm0, %v1005_v1 }
  0xb4   :  { %4680 = vmatprep.mubr.msk.f32.mxu0 %vm71_vm0, %v1007_v5 }
  0xb5   :  { %3457 = vrot.lane.b32.xlu0 %v6027_v22, %s5850_s8 }
  0xb6   :  { %v1011_v12 = vpop.permute.xlu0 %1010  ;;  %3459 = vrot.lane.b32.xlu1 %v6029_v23, %s5850_s8 }
  0xb7   :  { %v1013_v13 = vpop.permute.xlu1 %1012  ;;  %4681 = vmatmul.mubr.msk.f32.gmra.mrb[38].mxu0 %vm71_vm0, %v1009_v6 }
  0xb8   :  { %4683 = vmatprep.mubr.msk.f32.mxu0 %vm71_vm0, %v1011_v12 }
  0xb9   :  { %3461 = vrot.lane.b32.xlu0 %v6035_v24, %s5850_s8 }
  0xba   :  { %v1015_v17 = vpop.permute.xlu0 %1014  ;;  %3463 = vrot.lane.b32.xlu1 %v6037_v25, %s5850_s8 }
  0xbb   :  { %v1017_v18 = vpop.permute.xlu1 %1016  ;;  %4684 = vmatmul.mubr.msk.f32.gmra.mrb[40].mxu0 %vm71_vm0, %v1013_v13 }
  0xbc   :  { %4686 = vmatprep.mubr.msk.f32.mxu0 %vm71_vm0, %v1015_v17 }
  0xbd   :  { %3465 = vrot.lane.b32.xlu0 %v6043_v26, %s5850_s8 }
  0xbe   :  { %v1019_v34 = vpop.permute.xlu0 %1018  ;;  %3467 = vrot.lane.b32.xlu1 %v6045_v27, %s5850_s8 }
  0xbf   :  { %v1021_v35 = vpop.permute.xlu1 %1020  ;;  %4687 = vmatmul.mubr.msk.f32.gmra.mrb[42].mxu0 %vm71_vm0, %v1017_v18 }
  0xc0   :  { %4689 = vmatprep.mubr.msk.f32.mxu0 %vm71_vm0, %v1019_v34 }
  0xc1   :  { %3469 = vrot.lane.b32.xlu0 %v6051_v28, %s5850_s8 }
  0xc2   :  { %v1023_v41 = vpop.permute.xlu0 %1022  ;;  %3471 = vrot.lane.b32.xlu1 %v6053_v29, %s5850_s8 }
  0xc3   :  { %v1025_v44 = vpop.permute.xlu1 %1024  ;;  %4690 = vmatmul.mubr.msk.f32.gmra.mrb[44].mxu0 %vm71_vm0, %v1021_v35 }
  0xc4   :  { %4692 = vmatprep.mubr.msk.f32.mxu0 %vm71_vm0, %v1023_v41 }
  0xc5   :  { %3473 = vrot.lane.b32.xlu0 %v6059_v30, %s5850_s8 }
  0xc6   :  { %v1494_v48 = vpop.permute.xlu0 %1493  ;;  %3475 = vrot.lane.b32.xlu1 %v6061_v31, %s5850_s8 }
  0xc7   :  { %v1496_v49 = vpop.permute.xlu1 %1495  ;;  %4693 = vmatmul.mubr.msk.f32.gmra.mrb[46].mxu0 %vm71_vm0, %v1025_v44 }
  0xc8   :  { %4759 = vmatprep.mubr.msk.f32.mxu0 %vm71_vm0, %v1494_v48 }
  0xc9   :  { %3477 = vrot.lane.b32.xlu0 %v6067_v32, %s5850_s8 }
  0xca   :  { %v1498_v50 = vpop.permute.xlu0 %1497  ;;  %3479 = vrot.lane.b32.xlu1 %v6069_v33, %s5850_s8 }
  0xcb   :  { %v1500_v51 = vpop.permute.xlu1 %1499  ;;  %4760 = vmatmul.mubr.msk.f32.vlgmr.msra.gmra.mrb[48].mxu0 %vm71_vm0, %v1496_v49 }
  0xcc   :  { %5354 = vmatpush3.bf16.msra.mxu0 %v5918_v8  ;;  %4762 = vmatprep.mubr.msk.f32.mxu0 %vm71_vm0, %v1498_v50 }
  0xcd   :  { %5356 = vmatprep.subr.bf16.mxu0 %v5926_v11  ;;  %3481 = vrot.lane.b32.xlu0 %v6076_v38, %s5850_s8 }
  0xce   :  { %v1502_v52 = vpop.permute.xlu0 %1501  ;;  %3483 = vrot.lane.b32.xlu1 %v6079_v39, %s5850_s8 }
  0xcf   :  { %v1504_v53 = vpop.permute.xlu1 %1503  ;;  %4763 = vmatmul.mubr.msk.f32.gmra.mrb[50].mxu0 %vm71_vm0, %v1500_v51 }
  0xd0   :  { %4765 = vmatprep.mubr.msk.f32.mxu0 %vm71_vm0, %v1502_v52  ;;  %5358 = vmatpush3.bf16.msra.mxu0 %v5926_v11 }
  0xd1   :  { %5392 = vmatprep.subr.bf16.mxu0 %v5918_v8  ;;  %3485 = vrot.lane.b32.xlu0 %v6088_v42, %s5850_s8 }
  0xd2   :  { %v1506_v54 = vpop.permute.xlu0 %1505  ;;  %3487 = vrot.lane.b32.xlu1 %v6091_v43, %s5850_s8 }
  0xd3   :  { %v1508_v55 = vpop.permute.xlu1 %1507  ;;  %4766 = vmatmul.mubr.msk.f32.gmra.mrb[52].mxu0 %vm71_vm0, %v1504_v53 }
  0xd4   :  { %4768 = vmatprep.mubr.msk.f32.mxu0 %vm71_vm0, %v1506_v54 }
  0xd6   :  { %v1510_v56 = vpop.permute.xlu0 %1509 }
  0xd7   :  { %v1512_v57 = vpop.permute.xlu1 %1511  ;;  %4769 = vmatmul.mubr.msk.f32.gmra.mrb[54].mxu0 %vm71_vm0, %v1508_v55 }
  0xd8   :  { %4771 = vmatprep.mubr.msk.f32.mxu0 %vm71_vm0, %v1510_v56 }
  0xda   :  { %v1514_v59 = vpop.permute.xlu0 %1513 }
  0xdb   :  { %v1516_v60 = vpop.permute.xlu1 %1515  ;;  %4772 = vmatmul.mubr.msk.f32.gmra.mrb[56].mxu0 %vm71_vm0, %v1512_v57 }
  0xdc   :  { %4774 = vmatprep.mubr.msk.f32.mxu0 %vm71_vm0, %v1514_v59 }
  0xde   :  { %v1518_v61 = vpop.permute.xlu0 %1517 }
  0xdf   :  { %v1520_v62 = vpop.permute.xlu1 %1519  ;;  %4775 = vmatmul.mubr.msk.f32.gmra.mrb[58].mxu0 %vm71_vm0, %v1516_v60 }
  0xe0   :  { %4777 = vmatprep.mubr.msk.f32.mxu0 %vm71_vm0, %v1518_v61 }
  0xe2   :  { %v1522_v0 = vpop.permute.xlu0 %1521 }
  0xe3   :  { %v1524_v1 = vpop.permute.xlu1 %1523  ;;  %4778 = vmatmul.mubr.msk.f32.gmra.mrb[60].mxu0 %vm71_vm0, %v1520_v62 }
  0xe4   :  { %4780 = vmatprep.mubr.msk.f32.mxu0 %vm71_vm0, %v1522_v0 }
  0xe6   :  { %v6295_v2 = vpop.permute.xlu0 %2459 }
  0xe7   :  { %v6297_v3 = vpop.permute.xlu1 %2461  ;;  %4781 = vmatmul.mubr.msk.f32.gmra.mrb[62].mxu0 %vm71_vm0, %v1524_v1 }
  0xe8   :  { %4847 = vmatprep.mubr.msk.f32.mxu0 %vm71_vm0, %v6027_v22 }
  0xea   :  { %v6302_v5 = vpop.permute.xlu0 %2463 }
  0xeb   :  { %v6304_v6 = vpop.permute.xlu1 %2465  ;;  %4848 = vmatmul.mubr.msk.f32.vlgmr.msra.gmra.mrb[64].mxu0 %vm71_vm0, %v6029_v23 }
  0xec   :  { %5394 = vmatpush3.bf16.msra.mxu0 %v5918_v8  ;;  %4850 = vmatprep.mubr.msk.f32.mxu0 %vm71_vm0, %v6035_v24 }
  0xed   :  { %5396 = vmatprep.subr.bf16.mxu0 %v5926_v11 }
  0xee   :  { %v6312_v7 = vpop.permute.xlu0 %2467 }
  0xef   :  { %v6314_v9 = vpop.permute.xlu1 %2469  ;;  %4851 = vmatmul.mubr.msk.f32.gmra.mrb[66].mxu0 %vm71_vm0, %v6037_v25 }
  0xf0   :  { %4853 = vmatprep.mubr.msk.f32.mxu0 %vm71_vm0, %v6043_v26  ;;  %5398 = vmatpush3.bf16.msra.mxu0 %v5926_v11  ;;  %v6337_v26 = vld [vmem:[%s7106_s1 + $0x20] ss:$0 sm:$0xff] }
  0xf1   :  { %5432 = vmatprep.subr.bf16.mxu0 %v5918_v8 }
  0xf2   :  { %v6322_v22 = vpop.permute.xlu0 %2471 }
  0xf3   :  { %v6324_v23 = vpop.permute.xlu1 %2473  ;;  %4854 = vmatmul.mubr.msk.f32.gmra.mrb[68].mxu0 %vm71_vm0, %v6045_v27 }
  0xf4   :  { %4856 = vmatprep.mubr.msk.f32.mxu0 %vm71_vm0, %v6051_v28  ;;  %v4497_v12 = vpop.f32.mrb[0].mxu0 }
  0xf5   :  { %v192_v27 = vadd.f32 %v4497_v12, %v6337_v26  ;;  %v186_v13 = vpop.f32.mrb[1].mxu0 }
  0xf6   :  { %v6330_v24 = vpop.permute.xlu0 %2475  ;;  %v187_v15 = vadd.f32 %v6337_v26, %v186_v13 }
  0xf7   :  { %v6332_v25 = vpop.permute.xlu1 %2477  ;;  %4857 = vmatmul.mubr.msk.f32.gmra.mrb[70].mxu0 %vm71_vm0, %v6053_v29  ;;  %5539 = vtanh.f32 %v192_v27 }
  0xf8   :  { %4859 = vmatprep.mubr.msk.f32.mxu0 %vm71_vm0, %v6059_v30  ;;  %5541 = vtanh.f32 %v187_v15  ;;  %v4500_v29 = vpop.f32.mrb[2].mxu0 }
  0xf9   :  { %v202_v30 = vadd.f32 %v4500_v29, %v6337_v26  ;;  %v196_v17 = vpop.f32.mrb[3].mxu0 }
  0xfa   :  { %v6344_v28 = vpop.permute.xlu0 %2479  ;;  %v197_v18 = vadd.f32 %v6337_v26, %v196_v17 }
  0xfb   :  { %v6346_v14 = vpop.permute.xlu1 %2481  ;;  %4860 = vmatmul.mubr.msk.f32.gmra.mrb[72].mxu0 %vm71_vm0, %v6061_v31  ;;  %5543 = vtanh.f32 %v202_v30 }
  0xfc   :  { %4862 = vmatprep.mubr.msk.f32.mxu0 %vm71_vm0, %v6067_v32  ;;  %5545 = vtanh.f32 %v197_v18  ;;  %v4503_v32 = vpop.f32.mrb[4].mxu0 }
  0xfd   :  { %v212_v20 = vadd.f32 %v4503_v32, %v6337_v26  ;;  %v206_v34 = vpop.f32.mrb[5].mxu0 }
  0xfe   :  { %v207_v35 = vadd.f32 %v6337_v26, %v206_v34 }
  0xff   :  { %4863 = vmatmul.mubr.msk.f32.gmra.mrb[74].mxu0 %vm71_vm0, %v6069_v33  ;;  %v6357_v19 = vpop.permute.xlu0 %2483  ;;  %5547 = vtanh.f32 %v212_v20 }
 0x100   :  { %4865 = vmatprep.mubr.msk.f32.mxu0 %vm71_vm0, %v6076_v38  ;;  %v6361_v31 = vpop.permute.xlu1 %2485  ;;  %5549 = vtanh.f32 %v207_v35  ;;  %v4506_v38 = vpop.f32.mrb[6].mxu0 }
 0x101   :  { %v5540_v37 = vpop.eup %5539  ;;  %v222_v41 = vadd.f32 %v4506_v38, %v6337_v26  ;;  %v216_v44 = vpop.f32.mrb[7].mxu0 }
 0x102   :  { %v5542_v45 = vpop.eup %5541  ;;  %v217_v46 = vadd.f32 %v6337_v26, %v216_v44 }
 0x103   :  { %4866 = vmatmul.mubr.msk.f32.gmra.mrb[76].mxu0 %vm71_vm0, %v6079_v39  ;;  %v6367_v36 = vpop.permute.xlu0 %2487  ;;  %5551 = vtanh.f32 %v222_v41  ;;  %4551 = vmatprep.mubr.f32.mxu1 %v5542_v45 }
 0x104   :  { %4868 = vmatprep.mubr.msk.f32.mxu0 %vm71_vm0, %v6088_v42  ;;  %v6371_v33 = vpop.permute.xlu1 %2489  ;;  %5553 = vtanh.f32 %v217_v46  ;;  %v4509_v42 = vpop.f32.mrb[8].mxu0  ;;  %4552 = vmatmul.mubr.f32.vlgmr.msra.gmra.mrb[0].mxu1 %v5540_v37 }
 0x105   :  { %v5544_v48 = vpop.eup %5543  ;;  %v232_v49 = vadd.f32 %v4509_v42, %v6337_v26  ;;  %v226_v50 = vpop.f32.mrb[9].mxu0  ;;  %5242 = vmatpush3.bf16.msra.mxu1 %v6140_v58 }
 0x106   :  { %v5546_v51 = vpop.eup %5545  ;;  %5244 = vmatprep.subr.bf16.mxu1 %v6157_v63 }
 0x107   :  { %4869 = vmatmul.mubr.msk.f32.gmra.mrb[78].mxu0 %vm71_vm0, %v6091_v43  ;;  %v6377_v39 = vpop.permute.xlu0 %2958  ;;  %v227_v43 = vadd.f32 %v6337_v26, %v226_v50  ;;  %5555 = vtanh.f32 %v232_v49  ;;  %4554 = vmatprep.mubr.f32.mxu1 %v5546_v51 }
 0x108   :  { %4935 = vmatprep.mubr.msk.f32.mxu0 %vm71_vm0, %v6295_v2  ;;  %v6383_v52 = vpop.permute.xlu1 %2960  ;;  %v4512_v53 = vpop.f32.mrb[10].mxu0  ;;  %4555 = vmatmul.mubr.f32.gmra.mrb[2].mxu1 %v5544_v48 }
 0x109   :  { %5557 = vtanh.f32 %v227_v43  ;;  %v5548_v54 = vpop.eup %5547  ;;  %v242_v56 = vadd.f32 %v4512_v53, %v6337_v26  ;;  %v236_v57 = vpop.f32.mrb[11].mxu0  ;;  %5246 = vmatpush3.bf16.msra.mxu1 %v6157_v63 }
 0x10a   :  { %v5550_v59 = vpop.eup %5549  ;;  %v237_v60 = vadd.f32 %v6337_v26, %v236_v57  ;;  %5248 = vmatprep.subr.bf16.mxu1 %v6175_v4 }
 0x10b   :  { %4936 = vmatmul.mubr.msk.f32.vlgmr.msra.gmra.mrb[80].mxu0 %vm71_vm0, %v6297_v3  ;;  %v6393_v55 = vpop.permute.xlu0 %2962  ;;  %5559 = vtanh.f32 %v242_v56  ;;  %4557 = vmatprep.mubr.f32.mxu1 %v5550_v59 }
 0x10c   :  { %5434 = vmatpush3.bf16.msra.mxu0 %v5918_v8  ;;  %4938 = vmatprep.mubr.msk.f32.mxu0 %vm71_vm0, %v6302_v5  ;;  %v6403_v61 = vpop.permute.xlu1 %2964  ;;  %5561 = vtanh.f32 %v237_v60  ;;  %v4515_v62 = vpop.f32.mrb[12].mxu0 }
 0x10d   :  { %5436 = vmatprep.subr.bf16.mxu0 %v5926_v11  ;;  %v5552_v0 = vpop.eup %5551  ;;  %v252_v1 = vadd.f32 %v4515_v62, %v6337_v26  ;;  %4558 = vmatmul.mubr.f32.gmra.mrb[4].mxu1 %v5548_v54  ;;  %v246_v2 = vpop.f32.mrb[13].mxu0 }
 0x10e   :  { %v5554_v3 = vpop.eup %5553  ;;  %v247_v5 = vadd.f32 %v6337_v26, %v246_v2  ;;  %5250 = vmatpush3.bf16.msra.mxu1 %v6175_v4 }
 0x10f   :  { %4939 = vmatmul.mubr.msk.f32.gmra.mrb[82].mxu0 %vm71_vm0, %v6304_v6  ;;  %v6411_v6 = vpop.permute.xlu0 %2966  ;;  %5563 = vtanh.f32 %v252_v1  ;;  %4560 = vmatprep.mubr.f32.mxu1 %v5554_v3 }
 0x110   :  { %4941 = vmatprep.mubr.msk.f32.mxu0 %vm71_vm0, %v6312_v7  ;;  %5438 = vmatpush3.bf16.msra.mxu0 %v5926_v11  ;;  %5565 = vtanh.f32 %v247_v5  ;;  %v4518_v7 = vpop.f32.mrb[14].mxu0 }
 0x111   :  { %5472 = vmatprep.subr.bf16.mxu0 %v5918_v8  ;;  %v5556_v12 = vpop.eup %5555  ;;  %v262_v27 = vadd.f32 %v4518_v7, %v6337_v26  ;;  %4561 = vmatmul.mubr.f32.gmra.mrb[6].mxu1 %v5552_v0  ;;  %v256_v13 = vpop.f32.mrb[15].mxu0 }
 0x112   :  { %5252 = vmatprep.subr.bf16.mxu1 %v6191_v10  ;;  %v257_v29 = vadd.f32 %v6337_v26, %v256_v13 }
 0x113   :  { %4942 = vmatmul.mubr.msk.f32.gmra.mrb[84].mxu0 %vm71_vm0, %v6314_v9  ;;  %v5558_v15 = vpop.eup %5557  ;;  %v2969_v9 = vpop.permute.xlu1 %2968  ;;  %5567 = vtanh.f32 %v262_v27  ;;  %5254 = vmatpush3.bf16.msra.mxu1 %v6191_v10 }
 0x114   :  { %4944 = vmatprep.mubr.msk.f32.mxu0 %vm71_vm0, %v6322_v22  ;;  %4563 = vmatprep.mubr.f32.mxu1 %v5558_v15  ;;  %5569 = vtanh.f32 %v257_v29  ;;  %v2971_v30 = vpop.permute.xlu0 %2970 }
 0x115   :  { %v5560_v22 = vpop.eup %5559  ;;  %4564 = vmatmul.mubr.f32.gmra.mrb[8].mxu1 %v5556_v12  ;;  %5256 = vmatprep.subr.bf16.mxu1 %v6207_v16 }
 0x116   :  { %v5562_v17 = vpop.eup %5561 }
 0x117   :  { %4945 = vmatmul.mubr.msk.f32.gmra.mrb[86].mxu0 %vm71_vm0, %v6324_v23  ;;  %4566 = vmatprep.mubr.f32.mxu1 %v5562_v17  ;;  %v2973_v23 = vpop.permute.xlu1 %2972 }
 0x118   :  { %4947 = vmatprep.mubr.msk.f32.mxu0 %vm71_vm0, %v6330_v24  ;;  %5258 = vmatpush3.bf16.msra.mxu1 %v6207_v16  ;;  %v2975_v32 = vpop.permute.xlu0 %2974 }
 0x119   :  { %v5564_v24 = vpop.eup %5563  ;;  %4567 = vmatmul.mubr.f32.gmra.mrb[10].mxu1 %v5560_v22  ;;  %5260 = vmatprep.subr.bf16.mxu1 %v6223_v21 }
 0x11a   :  { %v5566_v18 = vpop.eup %5565 }
 0x11b   :  { %4948 = vmatmul.mubr.msk.f32.gmra.mrb[88].mxu0 %vm71_vm0, %v6332_v25  ;;  %4569 = vmatprep.mubr.f32.mxu1 %v5566_v18  ;;  %v2977_v20 = vpop.permute.xlu1 %2976 }
 0x11c   :  { %4950 = vmatprep.mubr.msk.f32.mxu0 %vm71_vm0, %v6344_v28  ;;  %5262 = vmatpush3.bf16.msra.mxu1 %v6223_v21 }
 0x11d   :  { %v5568_v25 = vpop.eup %5567  ;;  %4570 = vmatmul.mubr.f32.gmra.mrb[12].mxu1 %v5564_v24  ;;  %5264 = vmatprep.subr.bf16.mxu1 %v6239_v40 }
 0x11e   :  { %v5570_v28 = vpop.eup %5569 }
 0x11f   :  { %4951 = vmatmul.mubr.msk.f32.gmra.mrb[90].mxu0 %vm71_vm0, %v6346_v14  ;;  %4572 = vmatprep.mubr.f32.mxu1 %v5570_v28  ;;  %v2979_v14 = vpop.permute.xlu0 %2978 }
 0x120   :  { %4953 = vmatprep.mubr.msk.f32.mxu0 %vm71_vm0, %v6357_v19  ;;  %5266 = vmatpush3.bf16.msra.mxu1 %v6239_v40  ;;  %v2981_v19 = vpop.permute.xlu1 %2980 }
 0x121   :  { %4573 = vmatmul.mubr.f32.gmra.mrb[14].mxu1 %v5568_v25  ;;  %5268 = vmatprep.subr.bf16.mxu1 %v6255_v47 }
 0x123   :  { %4954 = vmatmul.mubr.msk.f32.gmra.mrb[92].mxu0 %vm71_vm0, %v6361_v31  ;;  %v2983_v31 = vpop.permute.xlu0 %2982 }
 0x124   :  { %4956 = vmatprep.mubr.msk.f32.mxu0 %vm71_vm0, %v6367_v36  ;;  %5270 = vmatpush3.bf16.msra.mxu1 %v6255_v47  ;;  %v2985_v34 = vpop.permute.xlu1 %2984 }
 0x125   :  { %5280 = vmatprep.subr.bf16.mxu1 %v6140_v58 }
 0x127   :  { %4957 = vmatmul.mubr.msk.f32.gmra.mrb[94].mxu0 %vm71_vm0, %v6371_v33  ;;  %v2987_v35 = vpop.permute.xlu0 %2986 }
 0x128   :  { %5023 = vmatprep.mubr.msk.f32.mxu0 %vm71_vm0, %v6377_v39 }
 0x12b   :  { %5024 = vmatmul.mubr.msk.f32.vlgmr.msra.gmra.mrb[96].mxu0 %vm71_vm0, %v6383_v52  ;;  %v3458_v36 = vpop.permute.xlu0 %3457 }
 0x12c   :  { %5474 = vmatpush3.bf16.msra.mxu0 %v5918_v8  ;;  %5026 = vmatprep.mubr.msk.f32.mxu0 %vm71_vm0, %v6393_v55  ;;  %v2989_v8 = vpop.permute.xlu1 %2988 }
 0x12d   :  { %5476 = vmatprep.subr.bf16.mxu0 %v5926_v11 }
 0x12f   :  { %5027 = vmatmul.mubr.msk.f32.gmra.mrb[98].mxu0 %vm71_vm0, %v6403_v61  ;;  %v3462_v38 = vpop.permute.xlu0 %3461 }
 0x130   :  { %5029 = vmatprep.mubr.msk.f32.mxu0 %vm71_vm0, %v6411_v6  ;;  %5478 = vmatpush3.bf16.msra.mxu0 %v5926_v11  ;;  %v3460_v33 = vpop.permute.xlu1 %3459 }
 0x131   :  { %5480 = vmatprep.subr.bf16.mxu0 %v6140_v58 }
 0x133   :  { %5030 = vmatmul.mubr.msk.f32.gmra.mrb[100].mxu0 %vm71_vm0, %v2969_v9  ;;  %v3466_v37 = vpop.permute.xlu0 %3465 }
 0x134   :  { %5032 = vmatprep.mubr.msk.f32.mxu0 %vm71_vm0, %v2971_v30  ;;  %v3464_v11 = vpop.permute.xlu1 %3463 }
 0x137   :  { %5033 = vmatmul.mubr.msk.f32.gmra.mrb[102].mxu0 %vm71_vm0, %v2973_v23  ;;  %v3470_v44 = vpop.permute.xlu0 %3469 }
 0x138   :  { %5035 = vmatprep.mubr.msk.f32.mxu0 %vm71_vm0, %v2975_v32  ;;  %v3468_v41 = vpop.permute.xlu1 %3467 }
 0x13b   :  { %5036 = vmatmul.mubr.msk.f32.gmra.mrb[104].mxu0 %vm71_vm0, %v2977_v20  ;;  %v3474_v46 = vpop.permute.xlu0 %3473 }
 0x13c   :  { %5038 = vmatprep.mubr.msk.f32.mxu0 %vm71_vm0, %v2979_v14  ;;  %v3472_v45 = vpop.permute.xlu1 %3471 }
 0x13f   :  { %5039 = vmatmul.mubr.msk.f32.gmra.mrb[106].mxu0 %vm71_vm0, %v2981_v19  ;;  %v3478_v42 = vpop.permute.xlu0 %3477 }
 0x140   :  { %5041 = vmatprep.mubr.msk.f32.mxu0 %vm71_vm0, %v2983_v31  ;;  %v3476_v39 = vpop.permute.xlu1 %3475 }
 0x143   :  { %5042 = vmatmul.mubr.msk.f32.gmra.mrb[108].mxu0 %vm71_vm0, %v2985_v34  ;;  %v3482_v49 = vpop.permute.xlu0 %3481 }
 0x144   :  { %5044 = vmatprep.mubr.msk.f32.mxu0 %vm71_vm0, %v2987_v35  ;;  %v3480_v48 = vpop.permute.xlu1 %3479 }
 0x147   :  { %5045 = vmatmul.mubr.msk.f32.gmra.mrb[110].mxu0 %vm71_vm0, %v2989_v8  ;;  %v3486_v54 = vpop.permute.xlu0 %3485 }
 0x148   :  { %5111 = vmatprep.mubr.msk.f32.mxu0 %vm71_vm0, %v3458_v36  ;;  %v3484_v51 = vpop.permute.xlu1 %3483 }
 0x14b   :  { %5112 = vmatmul.mubr.msk.f32.vlgmr.msra.gmra.mrb[112].mxu0 %vm71_vm0, %v3460_v33 }
 0x14c   :  { %5114 = vmatprep.mubr.msk.f32.mxu0 %vm71_vm0, %v3462_v38  ;;  %5482 = vmatpush3.bf16.msra.mxu0 %v6140_v58  ;;  %v3488_v60 = vpop.permute.xlu1 %3487 }
 0x14d   :  { %5484 = vmatprep.subr.bf16.mxu0 %v6157_v63 }
 0x14f   :  { %5115 = vmatmul.mubr.msk.f32.gmra.mrb[114].mxu0 %vm71_vm0, %v3464_v11 }
 0x150   :  { %5117 = vmatprep.mubr.msk.f32.mxu0 %vm71_vm0, %v3466_v37  ;;  %5486 = vmatpush3.bf16.msra.mxu0 %v6157_v63 }
 0x151   :  { %5488 = vmatprep.subr.bf16.mxu0 %v6175_v4 }
 0x153   :  { %5118 = vmatmul.mubr.msk.f32.gmra.mrb[116].mxu0 %vm71_vm0, %v3468_v41 }
 0x154   :  { %5120 = vmatprep.mubr.msk.f32.mxu0 %vm71_vm0, %v3470_v44  ;;  %5490 = vmatpush3.bf16.msra.mxu0 %v6175_v4 }
 0x155   :  { %5492 = vmatprep.subr.bf16.mxu0 %v6191_v10 }
 0x157   :  { %5121 = vmatmul.mubr.msk.f32.gmra.mrb[118].mxu0 %vm71_vm0, %v3472_v45 }
 0x158   :  { %5123 = vmatprep.mubr.msk.f32.mxu0 %vm71_vm0, %v3474_v46  ;;  %5494 = vmatpush3.bf16.msra.mxu0 %v6191_v10 }
 0x159   :  { %5496 = vmatprep.subr.bf16.mxu0 %v6207_v16 }
 0x15b   :  { %5124 = vmatmul.mubr.msk.f32.gmra.mrb[120].mxu0 %vm71_vm0, %v3476_v39 }
 0x15c   :  { %5126 = vmatprep.mubr.msk.f32.mxu0 %vm71_vm0, %v3478_v42  ;;  %5498 = vmatpush3.bf16.msra.mxu0 %v6207_v16 }
 0x15d   :  { %5500 = vmatprep.subr.bf16.mxu0 %v6223_v21 }
 0x15e   :  { %v4585_v50 = vpop.f32.mrb[16].mxu0 }
 0x15f   :  { %v631_v52 = vadd.f32 %v4585_v50, %v6337_v26  ;;  %v625_v43 = vpop.f32.mrb[17].mxu0  ;;  %5127 = vmatmul.mubr.msk.f32.gmra.mrb[122].mxu0 %vm71_vm0, %v3480_v48 }
 0x160   :  { %v626_v53 = vadd.f32 %v6337_v26, %v625_v43  ;;  %5129 = vmatprep.mubr.msk.f32.mxu0 %vm71_vm0, %v3482_v49  ;;  %5502 = vmatpush3.bf16.msra.mxu0 %v6223_v21 }
 0x161   :  { %5504 = vmatprep.subr.bf16.mxu0 %v6239_v40 }
 0x162   :  { %5571 = vtanh.f32 %v626_v53  ;;  %v4588_v55 = vpop.f32.mrb[18].mxu0 }
 0x163   :  { %5573 = vtanh.f32 %v631_v52  ;;  %v641_v56 = vadd.f32 %v4588_v55, %v6337_v26  ;;  %v635_v57 = vpop.f32.mrb[19].mxu0  ;;  %5130 = vmatmul.mubr.msk.f32.gmra.mrb[124].mxu0 %vm71_vm0, %v3484_v51 }
 0x164   :  { %v636_v59 = vadd.f32 %v6337_v26, %v635_v57  ;;  %5132 = vmatprep.mubr.msk.f32.mxu0 %vm71_vm0, %v3486_v54  ;;  %5506 = vmatpush3.bf16.msra.mxu0 %v6239_v40 }
 0x165   :  { %5508 = vmatprep.subr.bf16.mxu0 %v6255_v47 }
 0x166   :  { %5575 = vtanh.f32 %v636_v59  ;;  %v4591_v61 = vpop.f32.mrb[20].mxu0 }
 0x167   :  { %5577 = vtanh.f32 %v641_v56  ;;  %v651_v62 = vadd.f32 %v4591_v61, %v6337_v26  ;;  %v645_v0 = vpop.f32.mrb[21].mxu0  ;;  %5133 = vmatmul.mubr.msk.f32.gmra.mrb[126].mxu0 %vm71_vm0, %v3488_v60 }
 0x168   :  { %v646_v1 = vadd.f32 %v6337_v26, %v645_v0  ;;  %5510 = vmatpush3.bf16.msra.mxu0 %v6255_v47 }
 0x16a   :  { %5579 = vtanh.f32 %v646_v1  ;;  %v4594_v2 = vpop.f32.mrb[22].mxu0 }
 0x16b   :  { %5581 = vtanh.f32 %v651_v62  ;;  %v661_v3 = vadd.f32 %v4594_v2, %v6337_v26  ;;  %v655_v5 = vpop.f32.mrb[23].mxu0 }
 0x16c   :  { %v5572_v6 = vpop.eup %5571  ;;  %v656_v7 = vadd.f32 %v6337_v26, %v655_v5 }
 0x16d   :  { %v5574_v12 = vpop.eup %5573  ;;  %4639 = vmatprep.mubr.f32.mxu1 %v5572_v6 }
 0x16e   :  { %5583 = vtanh.f32 %v656_v7  ;;  %v4597_v27 = vpop.f32.mrb[24].mxu0  ;;  %4640 = vmatmul.mubr.f32.vlgmr.msra.gmra.mrb[16].mxu1 %v5574_v12 }
 0x16f   :  { %5585 = vtanh.f32 %v661_v3  ;;  %v671_v13 = vadd.f32 %v4597_v27, %v6337_v26  ;;  %5282 = vmatpush3.bf16.msra.mxu1 %v6140_v58  ;;  %v665_v15 = vpop.f32.mrb[25].mxu0 }
 0x170   :  { %v5576_v9 = vpop.eup %5575  ;;  %v666_v29 = vadd.f32 %v6337_v26, %v665_v15  ;;  %5284 = vmatprep.subr.bf16.mxu1 %v6157_v63 }
 0x171   :  { %v5578_v22 = vpop.eup %5577  ;;  %4642 = vmatprep.mubr.f32.mxu1 %v5576_v9 }
 0x172   :  { %5587 = vtanh.f32 %v666_v29  ;;  %v4600_v30 = vpop.f32.mrb[26].mxu0  ;;  %4643 = vmatmul.mubr.f32.gmra.mrb[18].mxu1 %v5578_v22 }
 0x173   :  { %5589 = vtanh.f32 %v671_v13  ;;  %v681_v17 = vadd.f32 %v4600_v30, %v6337_v26  ;;  %5286 = vmatpush3.bf16.msra.mxu1 %v6157_v63  ;;  %v675_v23 = vpop.f32.mrb[27].mxu0 }
 0x174   :  { %v5580_v24 = vpop.eup %5579  ;;  %v676_v18 = vadd.f32 %v6337_v26, %v675_v23  ;;  %5288 = vmatprep.subr.bf16.mxu1 %v6175_v4 }
 0x175   :  { %v5582_v32 = vpop.eup %5581  ;;  %4645 = vmatprep.mubr.f32.mxu1 %v5580_v24 }
 0x176   :  { %5591 = vtanh.f32 %v676_v18  ;;  %v4603_v25 = vpop.f32.mrb[28].mxu0  ;;  %4646 = vmatmul.mubr.f32.gmra.mrb[20].mxu1 %v5582_v32 }
 0x177   :  { %5593 = vtanh.f32 %v681_v17  ;;  %v691_v28 = vadd.f32 %v4603_v25, %v6337_v26  ;;  %5290 = vmatpush3.bf16.msra.mxu1 %v6175_v4  ;;  %v685_v20 = vpop.f32.mrb[29].mxu0 }
 0x178   :  { %v5584_v14 = vpop.eup %5583  ;;  %v686_v19 = vadd.f32 %v6337_v26, %v685_v20  ;;  %5292 = vmatprep.subr.bf16.mxu1 %v6191_v10 }
 0x179   :  { %v5586_v31 = vpop.eup %5585  ;;  %4648 = vmatprep.mubr.f32.mxu1 %v5584_v14 }
 0x17a   :  { %5595 = vtanh.f32 %v686_v19  ;;  %v4606_v34 = vpop.f32.mrb[30].mxu0  ;;  %4649 = vmatmul.mubr.f32.gmra.mrb[22].mxu1 %v5586_v31 }
 0x17b   :  { %5597 = vtanh.f32 %v691_v28  ;;  %v701_v35 = vadd.f32 %v4606_v34, %v6337_v26  ;;  %5294 = vmatpush3.bf16.msra.mxu1 %v6191_v10  ;;  %v695_v8 = vpop.f32.mrb[31].mxu0 }
 0x17c   :  { %v5588_v36 = vpop.eup %5587  ;;  %v696_v33 = vadd.f32 %v6337_v26, %v695_v8  ;;  %5296 = vmatprep.subr.bf16.mxu1 %v6207_v16 }
 0x17d   :  { %v5590_v38 = vpop.eup %5589  ;;  %4651 = vmatprep.mubr.f32.mxu1 %v5588_v36 }
 0x17e   :  { %5599 = vtanh.f32 %v696_v33  ;;  %4652 = vmatmul.mubr.f32.gmra.mrb[24].mxu1 %v5590_v38  ;;  %v4673_v11 = vpop.f32.mrb[32].mxu0 }
 0x17f   :  { %5601 = vtanh.f32 %v701_v35  ;;  %v1130_v37 = vadd.f32 %v4673_v11, %v6337_v26  ;;  %5298 = vmatpush3.bf16.msra.mxu1 %v6207_v16  ;;  %v1124_v41 = vpop.f32.mrb[33].mxu0 }
 0x180   :  { %v5592_v44 = vpop.eup %5591  ;;  %v1125_v45 = vadd.f32 %v6337_v26, %v1124_v41  ;;  %5300 = vmatprep.subr.bf16.mxu1 %v6223_v21 }
 0x181   :  { %v5594_v46 = vpop.eup %5593  ;;  %4654 = vmatprep.mubr.f32.mxu1 %v5592_v44 }
 0x182   :  { %5603 = vtanh.f32 %v1125_v45  ;;  %4655 = vmatmul.mubr.f32.gmra.mrb[26].mxu1 %v5594_v46  ;;  %v4676_v39 = vpop.f32.mrb[34].mxu0 }
 0x183   :  { %5605 = vtanh.f32 %v1130_v37  ;;  %v1140_v42 = vadd.f32 %v4676_v39, %v6337_v26  ;;  %5302 = vmatpush3.bf16.msra.mxu1 %v6223_v21  ;;  %v1134_v48 = vpop.f32.mrb[35].mxu0 }
 0x184   :  { %v5596_v49 = vpop.eup %5595  ;;  %v1135_v50 = vadd.f32 %v6337_v26, %v1134_v48  ;;  %5304 = vmatprep.subr.bf16.mxu1 %v6239_v40 }
 0x185   :  { %v5598_v51 = vpop.eup %5597  ;;  %4657 = vmatprep.mubr.f32.mxu1 %v5596_v49 }
 0x186   :  { %5607 = vtanh.f32 %v1135_v50  ;;  %4658 = vmatmul.mubr.f32.gmra.mrb[28].mxu1 %v5598_v51  ;;  %v4679_v52 = vpop.f32.mrb[36].mxu0 }
 0x187   :  { %5609 = vtanh.f32 %v1140_v42  ;;  %v1150_v43 = vadd.f32 %v4679_v52, %v6337_v26  ;;  %5306 = vmatpush3.bf16.msra.mxu1 %v6239_v40  ;;  %v1144_v53 = vpop.f32.mrb[37].mxu0 }
 0x188   :  { %v5600_v54 = vpop.eup %5599  ;;  %v1145_v55 = vadd.f32 %v6337_v26, %v1144_v53  ;;  %5308 = vmatprep.subr.bf16.mxu1 %v6255_v47 }
 0x189   :  { %v5602_v56 = vpop.eup %5601  ;;  %4660 = vmatprep.mubr.f32.mxu1 %v5600_v54 }
 0x18a   :  { %5611 = vtanh.f32 %v1145_v55  ;;  %4661 = vmatmul.mubr.f32.gmra.mrb[30].mxu1 %v5602_v56  ;;  %v4682_v57 = vpop.f32.mrb[38].mxu0 }
 0x18b   :  { %5613 = vtanh.f32 %v1150_v43  ;;  %v1160_v59 = vadd.f32 %v4682_v57, %v6337_v26  ;;  %5310 = vmatpush3.bf16.msra.mxu1 %v6255_v47  ;;  %v1154_v60 = vpop.f32.mrb[39].mxu0 }
 0x18c   :  { %v5604_v61 = vpop.eup %5603  ;;  %v1155_v62 = vadd.f32 %v6337_v26, %v1154_v60  ;;  %5320 = vmatprep.subr.bf16.mxu1 %v6140_v58 }
 0x18d   :  { %v5606_v0 = vpop.eup %5605  ;;  %4727 = vmatprep.mubr.f32.mxu1 %v5604_v61 }
 0x18e   :  { %5615 = vtanh.f32 %v1155_v62  ;;  %v4685_v1 = vpop.f32.mrb[40].mxu0  ;;  %4728 = vmatmul.mubr.f32.vlgmr.msra.gmra.mrb[32].mxu1 %v5606_v0 }
 0x18f   :  { %5617 = vtanh.f32 %v1160_v59  ;;  %v1170_v2 = vadd.f32 %v4685_v1, %v6337_v26  ;;  %5322 = vmatpush3.bf16.msra.mxu1 %v6140_v58  ;;  %v1164_v3 = vpop.f32.mrb[41].mxu0 }
 0x190   :  { %v5608_v5 = vpop.eup %5607  ;;  %v1165_v6 = vadd.f32 %v6337_v26, %v1164_v3  ;;  %5324 = vmatprep.subr.bf16.mxu1 %v6157_v63 }
 0x191   :  { %v5610_v7 = vpop.eup %5609  ;;  %4730 = vmatprep.mubr.f32.mxu1 %v5608_v5 }
 0x192   :  { %5619 = vtanh.f32 %v1165_v6  ;;  %v4688_v12 = vpop.f32.mrb[42].mxu0  ;;  %4731 = vmatmul.mubr.f32.gmra.mrb[34].mxu1 %v5610_v7 }
 0x193   :  { %5621 = vtanh.f32 %v1170_v2  ;;  %v1180_v27 = vadd.f32 %v4688_v12, %v6337_v26  ;;  %5326 = vmatpush3.bf16.msra.mxu1 %v6157_v63  ;;  %v1174_v13 = vpop.f32.mrb[43].mxu0 }
 0x194   :  { %v5612_v15 = vpop.eup %5611  ;;  %v1175_v9 = vadd.f32 %v6337_v26, %v1174_v13  ;;  %5328 = vmatprep.subr.bf16.mxu1 %v6175_v4 }
 0x195   :  { %v5614_v29 = vpop.eup %5613  ;;  %4733 = vmatprep.mubr.f32.mxu1 %v5612_v15 }
 0x196   :  { %5623 = vtanh.f32 %v1175_v9  ;;  %v4691_v22 = vpop.f32.mrb[44].mxu0  ;;  %4734 = vmatmul.mubr.f32.gmra.mrb[36].mxu1 %v5614_v29 }
 0x197   :  { %5625 = vtanh.f32 %v1180_v27  ;;  %v1190_v30 = vadd.f32 %v4691_v22, %v6337_v26  ;;  %5330 = vmatpush3.bf16.msra.mxu1 %v6175_v4  ;;  %v1184_v17 = vpop.f32.mrb[45].mxu0 }
 0x198   :  { %v5616_v23 = vpop.eup %5615  ;;  %v1185_v24 = vadd.f32 %v6337_v26, %v1184_v17  ;;  %5332 = vmatprep.subr.bf16.mxu1 %v6191_v10 }
 0x199   :  { %v5618_v18 = vpop.eup %5617  ;;  %4736 = vmatprep.mubr.f32.mxu1 %v5616_v23 }
 0x19a   :  { %5627 = vtanh.f32 %v1185_v24  ;;  %v4694_v32 = vpop.f32.mrb[46].mxu0  ;;  %4737 = vmatmul.mubr.f32.gmra.mrb[38].mxu1 %v5618_v18 }
 0x19b   :  { %5629 = vtanh.f32 %v1190_v30  ;;  %v1200_v25 = vadd.f32 %v4694_v32, %v6337_v26  ;;  %5334 = vmatpush3.bf16.msra.mxu1 %v6191_v10  ;;  %v1194_v28 = vpop.f32.mrb[47].mxu0 }
 0x19c   :  { %v5620_v20 = vpop.eup %5619  ;;  %v1195_v14 = vadd.f32 %v6337_v26, %v1194_v28  ;;  %5336 = vmatprep.subr.bf16.mxu1 %v6207_v16 }
 0x19d   :  { %v5622_v19 = vpop.eup %5621  ;;  %4739 = vmatprep.mubr.f32.mxu1 %v5620_v20 }
 0x19e   :  { %5631 = vtanh.f32 %v1195_v14  ;;  %4740 = vmatmul.mubr.f32.gmra.mrb[40].mxu1 %v5622_v19  ;;  %v4761_v31 = vpop.f32.mrb[48].mxu0 }
 0x19f   :  { %5633 = vtanh.f32 %v1200_v25  ;;  %v1629_v34 = vadd.f32 %v4761_v31, %v6337_v26  ;;  %5338 = vmatpush3.bf16.msra.mxu1 %v6207_v16  ;;  %v1623_v35 = vpop.f32.mrb[49].mxu0 }
 0x1a0   :  { %v5624_v8 = vpop.eup %5623  ;;  %v1624_v36 = vadd.f32 %v6337_v26, %v1623_v35  ;;  %5340 = vmatprep.subr.bf16.mxu1 %v6223_v21 }
 0x1a1   :  { %v5626_v33 = vpop.eup %5625  ;;  %4742 = vmatprep.mubr.f32.mxu1 %v5624_v8 }
 0x1a2   :  { %5635 = vtanh.f32 %v1624_v36  ;;  %4743 = vmatmul.mubr.f32.gmra.mrb[42].mxu1 %v5626_v33  ;;  %v4764_v38 = vpop.f32.mrb[50].mxu0 }
 0x1a3   :  { %5637 = vtanh.f32 %v1629_v34  ;;  %v1639_v11 = vadd.f32 %v4764_v38, %v6337_v26  ;;  %5342 = vmatpush3.bf16.msra.mxu1 %v6223_v21  ;;  %v1633_v37 = vpop.f32.mrb[51].mxu0 }
 0x1a4   :  { %v5628_v41 = vpop.eup %5627  ;;  %v1634_v44 = vadd.f32 %v6337_v26, %v1633_v37  ;;  %5344 = vmatprep.subr.bf16.mxu1 %v6239_v40 }
 0x1a5   :  { %v5630_v45 = vpop.eup %5629  ;;  %4745 = vmatprep.mubr.f32.mxu1 %v5628_v41  ;;  %v6604_v41 = vld [vmem:[%s7106_s1 + $0x20] ss:$0 sm:$0xff] }
 0x1a6   :  { %5639 = vtanh.f32 %v1634_v44  ;;  %4746 = vmatmul.mubr.f32.gmra.mrb[44].mxu1 %v5630_v45  ;;  %v4767_v46 = vpop.f32.mrb[52].mxu0 }
 0x1a7   :  { %5641 = vtanh.f32 %v1639_v11  ;;  %v1649_v39 = vadd.f32 %v4767_v46, %v6337_v26  ;;  %5346 = vmatpush3.bf16.msra.mxu1 %v6239_v40  ;;  %v1643_v42 = vpop.f32.mrb[53].mxu0 }
 0x1a8   :  { %v5632_v48 = vpop.eup %5631  ;;  %v1644_v49 = vadd.f32 %v6337_v26, %v1643_v42  ;;  %5348 = vmatprep.subr.bf16.mxu1 %v6255_v47 }
 0x1a9   :  { %v5634_v50 = vpop.eup %5633  ;;  %4748 = vmatprep.mubr.f32.mxu1 %v5632_v48 }
 0x1aa   :  { %5643 = vtanh.f32 %v1644_v49  ;;  %4749 = vmatmul.mubr.f32.gmra.mrb[46].mxu1 %v5634_v50  ;;  %v4770_v51 = vpop.f32.mrb[54].mxu0 }
 0x1ab   :  { %5645 = vtanh.f32 %v1649_v39  ;;  %v1659_v52 = vadd.f32 %v4770_v51, %v6337_v26  ;;  %5350 = vmatpush3.bf16.msra.mxu1 %v6255_v47  ;;  %v1653_v43 = vpop.f32.mrb[55].mxu0 }
 0x1ac   :  { %v5636_v53 = vpop.eup %5635  ;;  %v1654_v54 = vadd.f32 %v6337_v26, %v1653_v43  ;;  %5360 = vmatprep.subr.bf16.mxu1 %v6140_v58 }
 0x1ad   :  { %v5638_v55 = vpop.eup %5637  ;;  %4815 = vmatprep.mubr.f32.mxu1 %v5636_v53 }
 0x1ae   :  { %5647 = vtanh.f32 %v1654_v54  ;;  %v4773_v56 = vpop.f32.mrb[56].mxu0  ;;  %4816 = vmatmul.mubr.f32.vlgmr.msra.gmra.mrb[48].mxu1 %v5638_v55 }
 0x1af   :  { %5649 = vtanh.f32 %v1659_v52  ;;  %v1669_v57 = vadd.f32 %v4773_v56, %v6337_v26  ;;  %5362 = vmatpush3.bf16.msra.mxu1 %v6140_v58  ;;  %v1663_v59 = vpop.f32.mrb[57].mxu0 }
 0x1b0   :  { %v5640_v60 = vpop.eup %5639  ;;  %v1664_v61 = vadd.f32 %v6337_v26, %v1663_v59  ;;  %5364 = vmatprep.subr.bf16.mxu1 %v6157_v63 }
 0x1b1   :  { %v5642_v62 = vpop.eup %5641  ;;  %4818 = vmatprep.mubr.f32.mxu1 %v5640_v60 }
 0x1b2   :  { %5651 = vtanh.f32 %v1664_v61  ;;  %v4776_v0 = vpop.f32.mrb[58].mxu0  ;;  %4819 = vmatmul.mubr.f32.gmra.mrb[50].mxu1 %v5642_v62 }
 0x1b3   :  { %5653 = vtanh.f32 %v1669_v57  ;;  %v1679_v1 = vadd.f32 %v4776_v0, %v6337_v26  ;;  %5366 = vmatpush3.bf16.msra.mxu1 %v6157_v63  ;;  %v1673_v2 = vpop.f32.mrb[59].mxu0 }
 0x1b4   :  { %v5644_v3 = vpop.eup %5643  ;;  %v1674_v5 = vadd.f32 %v6337_v26, %v1673_v2  ;;  %5368 = vmatprep.subr.bf16.mxu1 %v6175_v4 }
 0x1b5   :  { %v5646_v6 = vpop.eup %5645  ;;  %4821 = vmatprep.mubr.f32.mxu1 %v5644_v3 }
 0x1b6   :  { %5655 = vtanh.f32 %v1674_v5  ;;  %v4779_v7 = vpop.f32.mrb[60].mxu0  ;;  %4822 = vmatmul.mubr.f32.gmra.mrb[52].mxu1 %v5646_v6  ;;  %v6627_v6 = vld [vmem:[%s7107_s2 + $0x80] ss:$0 sm:$0xff] }
 0x1b7   :  { %5657 = vtanh.f32 %v1679_v1  ;;  %v1689_v12 = vadd.f32 %v4779_v7, %v6337_v26  ;;  %5370 = vmatpush3.bf16.msra.mxu1 %v6175_v4  ;;  %v1683_v27 = vpop.f32.mrb[61].mxu0 }
 0x1b8   :  { %v5648_v13 = vpop.eup %5647  ;;  %v1684_v15 = vadd.f32 %v6337_v26, %v1683_v27  ;;  %5372 = vmatprep.subr.bf16.mxu1 %v6191_v10 }
 0x1b9   :  { %v5650_v9 = vpop.eup %5649  ;;  %4824 = vmatprep.mubr.f32.mxu1 %v5648_v13 }
 0x1ba   :  { %5659 = vtanh.f32 %v1684_v15  ;;  %v4782_v29 = vpop.f32.mrb[62].mxu0  ;;  %4825 = vmatmul.mubr.f32.gmra.mrb[54].mxu1 %v5650_v9 }
 0x1bb   :  { %5661 = vtanh.f32 %v1689_v12  ;;  %v1699_v22 = vadd.f32 %v4782_v29, %v6337_v26  ;;  %5374 = vmatpush3.bf16.msra.mxu1 %v6191_v10  ;;  %v1693_v30 = vpop.f32.mrb[63].mxu0 }
 0x1bc   :  { %v5652_v17 = vpop.eup %5651  ;;  %v1694_v23 = vadd.f32 %v6337_v26, %v1693_v30  ;;  %5376 = vmatprep.subr.bf16.mxu1 %v6207_v16 }
 0x1bd   :  { %v5654_v24 = vpop.eup %5653  ;;  %4827 = vmatprep.mubr.f32.mxu1 %v5652_v17 }
 0x1be   :  { %5663 = vtanh.f32 %v1694_v23  ;;  %4828 = vmatmul.mubr.f32.gmra.mrb[56].mxu1 %v5654_v24  ;;  %v4849_v18 = vpop.f32.mrb[64].mxu0 }
 0x1bf   :  { %5665 = vtanh.f32 %v1699_v22  ;;  %v2096_v32 = vadd.f32 %v4849_v18, %v6337_v26  ;;  %5378 = vmatpush3.bf16.msra.mxu1 %v6207_v16  ;;  %v2090_v25 = vpop.f32.mrb[65].mxu0 }
 0x1c0   :  { %v5656_v28 = vpop.eup %5655  ;;  %v2091_v20 = vadd.f32 %v6337_v26, %v2090_v25  ;;  %5380 = vmatprep.subr.bf16.mxu1 %v6223_v21 }
 0x1c1   :  { %v5658_v14 = vpop.eup %5657  ;;  %4830 = vmatprep.mubr.f32.mxu1 %v5656_v28 }
 0x1c2   :  { %5667 = vtanh.f32 %v2091_v20  ;;  %4831 = vmatmul.mubr.f32.gmra.mrb[58].mxu1 %v5658_v14  ;;  %v4852_v19 = vpop.f32.mrb[66].mxu0 }
 0x1c3   :  { %5669 = vtanh.f32 %v2096_v32  ;;  %v2106_v31 = vadd.f32 %v4852_v19, %v6337_v26  ;;  %5382 = vmatpush3.bf16.msra.mxu1 %v6223_v21  ;;  %v2100_v34 = vpop.f32.mrb[67].mxu0 }
 0x1c4   :  { %v5660_v35 = vpop.eup %5659  ;;  %v2101_v8 = vadd.f32 %v6337_v26, %v2100_v34  ;;  %5384 = vmatprep.subr.bf16.mxu1 %v6239_v40 }
 0x1c5   :  { %v5662_v36 = vpop.eup %5661  ;;  %4833 = vmatprep.mubr.f32.mxu1 %v5660_v35 }
 0x1c6   :  { %5671 = vtanh.f32 %v2101_v8  ;;  %4834 = vmatmul.mubr.f32.gmra.mrb[60].mxu1 %v5662_v36  ;;  %v4855_v33 = vpop.f32.mrb[68].mxu0 }
 0x1c7   :  { %5673 = vtanh.f32 %v2106_v31  ;;  %v2116_v38 = vadd.f32 %v4855_v33, %v6337_v26  ;;  %5386 = vmatpush3.bf16.msra.mxu1 %v6239_v40  ;;  %v2110_v11 = vpop.f32.mrb[69].mxu0 }
 0x1c8   :  { %v5664_v37 = vpop.eup %5663  ;;  %v2111_v44 = vadd.f32 %v6604_v41, %v2110_v11  ;;  %5388 = vmatprep.subr.bf16.mxu1 %v6255_v47 }
 0x1c9   :  { %v5666_v45 = vpop.eup %5665  ;;  %4836 = vmatprep.mubr.f32.mxu1 %v5664_v37 }
 0x1ca   :  { %5675 = vtanh.f32 %v2111_v44  ;;  %4837 = vmatmul.mubr.f32.gmra.mrb[62].mxu1 %v5666_v45  ;;  %v4858_v46 = vpop.f32.mrb[70].mxu0 }
 0x1cb   :  { %5677 = vtanh.f32 %v2116_v38  ;;  %v2126_v26 = vadd.f32 %v6604_v41, %v4858_v46  ;;  %5390 = vmatpush3.bf16.msra.mxu1 %v6255_v47  ;;  %v2120_v39 = vpop.f32.mrb[71].mxu0 }
 0x1cc   :  { %v5668_v42 = vpop.eup %5667  ;;  %v2121_v48 = vadd.f32 %v6604_v41, %v2120_v39  ;;  %5400 = vmatprep.subr.bf16.mxu1 %v6140_v58 }
 0x1cd   :  { %v5670_v49 = vpop.eup %5669  ;;  %4903 = vmatprep.mubr.f32.mxu1 %v5668_v42 }
 0x1ce   :  { %5679 = vtanh.f32 %v2121_v48  ;;  %v4861_v50 = vpop.f32.mrb[72].mxu0  ;;  %4904 = vmatmul.mubr.f32.vlgmr.msra.gmra.mrb[64].mxu1 %v5670_v49 }
 0x1cf   :  { %5681 = vtanh.f32 %v2126_v26  ;;  %v2136_v51 = vadd.f32 %v6604_v41, %v4861_v50  ;;  %5402 = vmatpush3.bf16.msra.mxu1 %v6140_v58  ;;  %v2130_v52 = vpop.f32.mrb[73].mxu0 }
 0x1d0   :  { %v5672_v43 = vpop.eup %5671  ;;  %v2131_v53 = vadd.f32 %v6604_v41, %v2130_v52  ;;  %5404 = vmatprep.subr.bf16.mxu1 %v6157_v63 }
 0x1d1   :  { %v5674_v54 = vpop.eup %5673  ;;  %4906 = vmatprep.mubr.f32.mxu1 %v5672_v43 }
 0x1d2   :  { %5683 = vtanh.f32 %v2131_v53  ;;  %v4864_v55 = vpop.f32.mrb[74].mxu0  ;;  %4907 = vmatmul.mubr.f32.gmra.mrb[66].mxu1 %v5674_v54 }
 0x1d3   :  { %5685 = vtanh.f32 %v2136_v51  ;;  %v2146_v56 = vadd.f32 %v6604_v41, %v4864_v55  ;;  %5406 = vmatpush3.bf16.msra.mxu1 %v6157_v63  ;;  %v2140_v57 = vpop.f32.mrb[75].mxu0 }
 0x1d4   :  { %v5676_v59 = vpop.eup %5675  ;;  %v2141_v60 = vadd.f32 %v6604_v41, %v2140_v57  ;;  %5408 = vmatprep.subr.bf16.mxu1 %v6175_v4 }
 0x1d5   :  { %v5678_v61 = vpop.eup %5677  ;;  %4909 = vmatprep.mubr.f32.mxu1 %v5676_v59 }
 0x1d6   :  { %5687 = vtanh.f32 %v2141_v60  ;;  %v4867_v62 = vpop.f32.mrb[76].mxu0  ;;  %4910 = vmatmul.mubr.f32.gmra.mrb[68].mxu1 %v5678_v61 }
 0x1d7   :  { %5689 = vtanh.f32 %v2146_v56  ;;  %v2156_v0 = vadd.f32 %v6604_v41, %v4867_v62  ;;  %5410 = vmatpush3.bf16.msra.mxu1 %v6175_v4  ;;  %v2150_v1 = vpop.f32.mrb[77].mxu0  ;;  %v4553_v13 = vpop.f32.mrb[0].mxu1 }
 0x1d8   :  { %v5680_v2 = vpop.eup %5679  ;;  %v2151_v3 = vadd.f32 %v6604_v41, %v2150_v1  ;;  %5412 = vmatprep.subr.bf16.mxu1 %v6191_v10  ;;  %v357_v29 = vadd.f32 %v4553_v13, %v6627_v6  ;;  %v351_v22 = vpop.f32.mrb[1].mxu1 }
 0x1d9   :  { %v5682_v5 = vpop.eup %5681  ;;  %4912 = vmatprep.mubr.f32.mxu1 %v5680_v2  ;;  %v352_v17 = vadd.f32 %v6627_v6, %v351_v22 }
 0x1da   :  { %5691 = vtanh.f32 %v2151_v3  ;;  %v4870_v7 = vpop.f32.mrb[78].mxu0  ;;  %4913 = vmatmul.mubr.f32.gmra.mrb[70].mxu1 %v5682_v5  ;;  %v431_v24 = vmax.f32 %v357_v29, 0.0 }
 0x1db   :  { %5693 = vtanh.f32 %v2156_v0  ;;  %v2166_v12 = vadd.f32 %v6604_v41, %v4870_v7  ;;  %5414 = vmatpush3.bf16.msra.mxu1 %v6191_v10  ;;  %v2160_v27 = vpop.f32.mrb[79].mxu0  ;;  %v430_v25 = vmax.f32 %v352_v17, 0.0  ;;  %v4556_v14 = vpop.f32.mrb[2].mxu1 }
 0x1dc   :  { %v5684_v15 = vpop.eup %5683  ;;  %v2161_v9 = vadd.f32 %v6604_v41, %v2160_v27  ;;  %5416 = vmatprep.subr.bf16.mxu1 %v6207_v16  ;;  %448 = vst.msk [vmem:[#allocation5 + $0x8] sm:$0xff] %vm446_vm1, %v431_v24  ;;  %v367_v31 = vadd.f32 %v4556_v14, %v6627_v6  ;;  %v361_v34 = vpop.f32.mrb[3].mxu1 }
 0x1dd   :  { %v5686_v30 = vpop.eup %5685  ;;  %4915 = vmatprep.mubr.f32.mxu1 %v5684_v15  ;;  %447 = vst.msk [vmem:[#allocation5] sm:$0xff] %vm446_vm1, %v430_v25  ;;  %v362_v8 = vadd.f32 %v6627_v6, %v361_v34 }
 0x1de   :  { %5695 = vtanh.f32 %v2161_v9  ;;  %4916 = vmatmul.mubr.f32.gmra.mrb[72].mxu1 %v5686_v30  ;;  %v4937_v23 = vpop.f32.mrb[80].mxu0  ;;  %v433_v38 = vmax.f32 %v367_v31, 0.0 }
 0x1df   :  { %5697 = vtanh.f32 %v2166_v12  ;;  %v2595_v18 = vadd.f32 %v6604_v41, %v4937_v23  ;;  %5418 = vmatpush3.bf16.msra.mxu1 %v6207_v16  ;;  %v2589_v32 = vpop.f32.mrb[81].mxu0  ;;  %v432_v44 = vmax.f32 %v362_v8, 0.0 }
 0x1e0   :  { %v5688_v28 = vpop.eup %5687  ;;  %v2590_v20 = vadd.f32 %v6604_v41, %v2589_v32  ;;  %5420 = vmatprep.subr.bf16.mxu1 %v6223_v21  ;;  %v4559_v45 = vpop.f32.mrb[4].mxu1  ;;  %450 = vst.msk [vmem:[#allocation5 + $0x18] sm:$0xff] %vm446_vm1, %v433_v38 }
 0x1e1   :  { %v5690_v19 = vpop.eup %5689  ;;  %4918 = vmatprep.mubr.f32.mxu1 %v5688_v28  ;;  %v377_v26 = vadd.f32 %v4559_v45, %v6627_v6  ;;  %v371_v39 = vpop.f32.mrb[5].mxu1  ;;  %449 = vst.msk [vmem:[#allocation5 + $0x10] sm:$0xff] %vm446_vm1, %v432_v44 }
 0x1e2   :  { %5699 = vtanh.f32 %v2590_v20  ;;  %4919 = vmatmul.mubr.f32.gmra.mrb[74].mxu1 %v5690_v19  ;;  %v4940_v35 = vpop.f32.mrb[82].mxu0  ;;  %v372_v48 = vadd.f32 %v6627_v6, %v371_v39 }
 0x1e3   :  { %5701 = vtanh.f32 %v2595_v18  ;;  %v2605_v36 = vadd.f32 %v6604_v41, %v4940_v35  ;;  %5422 = vmatpush3.bf16.msra.mxu1 %v6223_v21  ;;  %v2599_v33 = vpop.f32.mrb[83].mxu0  ;;  %v435_v51 = vmax.f32 %v377_v26, 0.0 }
 0x1e4   :  { %v5692_v11 = vpop.eup %5691  ;;  %v2600_v37 = vadd.f32 %v6604_v41, %v2599_v33  ;;  %5424 = vmatprep.subr.bf16.mxu1 %v6239_v40  ;;  %v434_v53 = vmax.f32 %v372_v48, 0.0  ;;  %v4562_v54 = vpop.f32.mrb[6].mxu1 }
 0x1e5   :  { %v5694_v46 = vpop.eup %5693  ;;  %4921 = vmatprep.mubr.f32.mxu1 %v5692_v11  ;;  %452 = vst.msk [vmem:[#allocation5 + $0x28] sm:$0xff] %vm446_vm1, %v435_v51  ;;  %v387_v56 = vadd.f32 %v4562_v54, %v6627_v6  ;;  %v381_v57 = vpop.f32.mrb[7].mxu1 }
 0x1e6   :  { %5703 = vtanh.f32 %v2600_v37  ;;  %4922 = vmatmul.mubr.f32.gmra.mrb[76].mxu1 %v5694_v46  ;;  %v4943_v42 = vpop.f32.mrb[84].mxu0  ;;  %451 = vst.msk [vmem:[#allocation5 + $0x20] sm:$0xff] %vm446_vm1, %v434_v53  ;;  %v382_v60 = vadd.f32 %v6627_v6, %v381_v57 }
 0x1e7   :  { %5705 = vtanh.f32 %v2605_v36  ;;  %v2615_v49 = vadd.f32 %v6604_v41, %v4943_v42  ;;  %5426 = vmatpush3.bf16.msra.mxu1 %v6239_v40  ;;  %v2609_v50 = vpop.f32.mrb[85].mxu0  ;;  %v437_v0 = vmax.f32 %v387_v56, 0.0 }
 0x1e8   :  { %v5696_v52 = vpop.eup %5695  ;;  %v2610_v43 = vadd.f32 %v6604_v41, %v2609_v50  ;;  %5428 = vmatprep.subr.bf16.mxu1 %v6255_v47  ;;  %v436_v3 = vmax.f32 %v382_v60, 0.0  ;;  %v4565_v5 = vpop.f32.mrb[8].mxu1 }
 0x1e9   :  { %v5698_v55 = vpop.eup %5697  ;;  %4924 = vmatprep.mubr.f32.mxu1 %v5696_v52  ;;  %454 = vst.msk [vmem:[#allocation5 + $0x38] sm:$0xff] %vm446_vm1, %v437_v0  ;;  %v397_v12 = vadd.f32 %v4565_v5, %v6627_v6  ;;  %v391_v27 = vpop.f32.mrb[9].mxu1 }
 0x1ea   :  { %5707 = vtanh.f32 %v2610_v43  ;;  %4925 = vmatmul.mubr.f32.gmra.mrb[78].mxu1 %v5698_v55  ;;  %v4946_v59 = vpop.f32.mrb[86].mxu0  ;;  %453 = vst.msk [vmem:[#allocation5 + $0x30] sm:$0xff] %vm446_vm1, %v436_v3  ;;  %v392_v15 = vadd.f32 %v6627_v6, %v391_v27 }
 0x1eb   :  { %5709 = vtanh.f32 %v2615_v49  ;;  %v2625_v61 = vadd.f32 %v6604_v41, %v4946_v59  ;;  %5430 = vmatpush3.bf16.msra.mxu1 %v6255_v47  ;;  %v2619_v62 = vpop.f32.mrb[87].mxu0  ;;  %v439_v22 = vmax.f32 %v397_v12, 0.0 }
 0x1ec   :  { %v5700_v1 = vpop.eup %5699  ;;  %v2620_v2 = vadd.f32 %v6604_v41, %v2619_v62  ;;  %5440 = vmatprep.subr.bf16.mxu1 %v6140_v58  ;;  %v438_v23 = vmax.f32 %v392_v15, 0.0  ;;  %v4568_v24 = vpop.f32.mrb[10].mxu1 }
 0x1ed   :  { %v5702_v7 = vpop.eup %5701  ;;  %4991 = vmatprep.mubr.f32.mxu1 %v5700_v1  ;;  %456 = vst.msk [vmem:[#allocation5 + $0x48] sm:$0xff] %vm446_vm1, %v439_v22  ;;  %v407_v32 = vadd.f32 %v4568_v24, %v6627_v6  ;;  %v401_v25 = vpop.f32.mrb[11].mxu1 }
 0x1ee   :  { %5711 = vtanh.f32 %v2620_v2  ;;  %v4949_v13 = vpop.f32.mrb[88].mxu0  ;;  %4992 = vmatmul.mubr.f32.vlgmr.msra.gmra.mrb[80].mxu1 %v5702_v7  ;;  %455 = vst.msk [vmem:[#allocation5 + $0x40] sm:$0xff] %vm446_vm1, %v438_v23  ;;  %v402_v20 = vadd.f32 %v6627_v6, %v401_v25 }
 0x1ef   :  { %5713 = vtanh.f32 %v2625_v61  ;;  %v2635_v9 = vadd.f32 %v6604_v41, %v4949_v13  ;;  %5442 = vmatpush3.bf16.msra.mxu1 %v6140_v58  ;;  %v2629_v29 = vpop.f32.mrb[89].mxu0  ;;  %v441_v31 = vmax.f32 %v407_v32, 0.0 }
 0x1f0   :  { %v5704_v30 = vpop.eup %5703  ;;  %v2630_v17 = vadd.f32 %v6604_v41, %v2629_v29  ;;  %5444 = vmatprep.subr.bf16.mxu1 %v6157_v63  ;;  %v440_v8 = vmax.f32 %v402_v20, 0.0  ;;  %v4571_v36 = vpop.f32.mrb[12].mxu1 }
 0x1f1   :  { %v5706_v18 = vpop.eup %5705  ;;  %4994 = vmatprep.mubr.f32.mxu1 %v5704_v30  ;;  %458 = vst.msk [vmem:[#allocation5 + $0x58] sm:$0xff] %vm446_vm1, %v441_v31  ;;  %v417_v38 = vadd.f32 %v4571_v36, %v6627_v6  ;;  %v411_v11 = vpop.f32.mrb[13].mxu1 }
 0x1f2   :  { %5715 = vtanh.f32 %v2630_v17  ;;  %v4952_v28 = vpop.f32.mrb[90].mxu0  ;;  %4995 = vmatmul.mubr.f32.gmra.mrb[82].mxu1 %v5706_v18  ;;  %457 = vst.msk [vmem:[#allocation5 + $0x50] sm:$0xff] %vm446_vm1, %v440_v8  ;;  %v412_v44 = vadd.f32 %v6627_v6, %v411_v11 }
 0x1f3   :  { %5717 = vtanh.f32 %v2635_v9  ;;  %v2645_v14 = vadd.f32 %v6604_v41, %v4952_v28  ;;  %5446 = vmatpush3.bf16.msra.mxu1 %v6157_v63  ;;  %v2639_v19 = vpop.f32.mrb[91].mxu0  ;;  %v443_v26 = vmax.f32 %v417_v38, 0.0 }
 0x1f4   :  { %v5708_v34 = vpop.eup %5707  ;;  %v2640_v35 = vadd.f32 %v6604_v41, %v2639_v19  ;;  %5448 = vmatprep.subr.bf16.mxu1 %v6175_v4  ;;  %v442_v48 = vmax.f32 %v412_v44, 0.0  ;;  %v4574_v49 = vpop.f32.mrb[14].mxu1 }
 0x1f5   :  { %v5710_v33 = vpop.eup %5709  ;;  %4997 = vmatprep.mubr.f32.mxu1 %v5708_v34  ;;  %460 = vst.msk [vmem:[#allocation5 + $0x68] sm:$0xff] %vm446_vm1, %v443_v26  ;;  %v427_v51 = vadd.f32 %v4574_v49, %v6627_v6  ;;  %v421_v52 = vpop.f32.mrb[15].mxu1 }
 0x1f6   :  { %5719 = vtanh.f32 %v2640_v35  ;;  %v4955_v37 = vpop.f32.mrb[92].mxu0  ;;  %4998 = vmatmul.mubr.f32.gmra.mrb[84].mxu1 %v5710_v33  ;;  %459 = vst.msk [vmem:[#allocation5 + $0x60] sm:$0xff] %vm446_vm1, %v442_v48  ;;  %v422_v53 = vadd.f32 %v6627_v6, %v421_v52 }
 0x1f7   :  { %5721 = vtanh.f32 %v2645_v14  ;;  %v2655_v45 = vadd.f32 %v6604_v41, %v4955_v37  ;;  %5450 = vmatpush3.bf16.msra.mxu1 %v6175_v4  ;;  %v2649_v46 = vpop.f32.mrb[93].mxu0  ;;  %v445_v56 = vmax.f32 %v427_v51, 0.0 }
 0x1f8   :  { %v5712_v39 = vpop.eup %5711  ;;  %v2650_v42 = vadd.f32 %v6604_v41, %v2649_v46  ;;  %5452 = vmatprep.subr.bf16.mxu1 %v6191_v10  ;;  %v444_v60 = vmax.f32 %v422_v53, 0.0 }
 0x1f9   :  { %v5714_v50 = vpop.eup %5713  ;;  %5000 = vmatprep.mubr.f32.mxu1 %v5712_v39  ;;  %462 = vst.msk [vmem:[#allocation5 + $0x78] sm:$0xff] %vm446_vm1, %v445_v56 }
 0x1fa   :  { %5723 = vtanh.f32 %v2650_v42  ;;  %v4958_v43 = vpop.f32.mrb[94].mxu0  ;;  %5001 = vmatmul.mubr.f32.gmra.mrb[86].mxu1 %v5714_v50  ;;  %461 = vst.msk [vmem:[#allocation5 + $0x70] sm:$0xff] %vm446_vm1, %v444_v60 }
 0x1fb   :  { %5725 = vtanh.f32 %v2655_v45  ;;  %v2665_v54 = vadd.f32 %v6604_v41, %v4958_v43  ;;  %5454 = vmatpush3.bf16.msra.mxu1 %v6191_v10  ;;  %v2659_v55 = vpop.f32.mrb[95].mxu0 }
 0x1fc   :  { %v5716_v57 = vpop.eup %5715  ;;  %v2660_v59 = vadd.f32 %v6604_v41, %v2659_v55  ;;  %5456 = vmatprep.subr.bf16.mxu1 %v6207_v16 }
 0x1fd   :  { %v5718_v61 = vpop.eup %5717  ;;  %5003 = vmatprep.mubr.f32.mxu1 %v5716_v57 }
 0x1fe   :  { %5727 = vtanh.f32 %v2660_v59  ;;  %5004 = vmatmul.mubr.f32.gmra.mrb[88].mxu1 %v5718_v61  ;;  %v5025_v62 = vpop.f32.mrb[96].mxu0 }
 0x1ff   :  { %5729 = vtanh.f32 %v2665_v54  ;;  %v3094_v0 = vadd.f32 %v6604_v41, %v5025_v62  ;;  %5458 = vmatpush3.bf16.msra.mxu1 %v6207_v16  ;;  %v3088_v1 = vpop.f32.mrb[97].mxu0 }
 0x200   :  { %v5720_v2 = vpop.eup %5719  ;;  %v3089_v3 = vadd.f32 %v6604_v41, %v3088_v1  ;;  %5460 = vmatprep.subr.bf16.mxu1 %v6223_v21 }
 0x201   :  { %v5722_v5 = vpop.eup %5721  ;;  %5006 = vmatprep.mubr.f32.mxu1 %v5720_v2 }
 0x202   :  { %5731 = vtanh.f32 %v3089_v3  ;;  %5007 = vmatmul.mubr.f32.gmra.mrb[90].mxu1 %v5722_v5  ;;  %v5028_v7 = vpop.f32.mrb[98].mxu0 }
 0x203   :  { %5733 = vtanh.f32 %v3094_v0  ;;  %v3104_v12 = vadd.f32 %v6604_v41, %v5028_v7  ;;  %5462 = vmatpush3.bf16.msra.mxu1 %v6223_v21  ;;  %v3098_v27 = vpop.f32.mrb[99].mxu0 }
 0x204   :  { %v5724_v13 = vpop.eup %5723  ;;  %v3099_v15 = vadd.f32 %v6604_v41, %v3098_v27  ;;  %5464 = vmatprep.subr.bf16.mxu1 %v6239_v40 }
 0x205   :  { %v5726_v9 = vpop.eup %5725  ;;  %5009 = vmatprep.mubr.f32.mxu1 %v5724_v13 }
 0x206   :  { %5735 = vtanh.f32 %v3099_v15  ;;  %5010 = vmatmul.mubr.f32.gmra.mrb[92].mxu1 %v5726_v9  ;;  %v5031_v29 = vpop.f32.mrb[100].mxu0 }
 0x207   :  { %5737 = vtanh.f32 %v3104_v12  ;;  %v3114_v22 = vadd.f32 %v6604_v41, %v5031_v29  ;;  %5466 = vmatpush3.bf16.msra.mxu1 %v6239_v40  ;;  %v3108_v30 = vpop.f32.mrb[101].mxu0 }
 0x208   :  { %v5728_v17 = vpop.eup %5727  ;;  %v3109_v23 = vadd.f32 %v6604_v41, %v3108_v30  ;;  %5468 = vmatprep.subr.bf16.mxu1 %v6255_v47 }
 0x209   :  { %v5730_v24 = vpop.eup %5729  ;;  %5012 = vmatprep.mubr.f32.mxu1 %v5728_v17 }
 0x20a   :  { %5739 = vtanh.f32 %v3109_v23  ;;  %5013 = vmatmul.mubr.f32.gmra.mrb[94].mxu1 %v5730_v24  ;;  %v5034_v18 = vpop.f32.mrb[102].mxu0 }
 0x20b   :  { %5741 = vtanh.f32 %v3114_v22  ;;  %v3124_v32 = vadd.f32 %v6604_v41, %v5034_v18  ;;  %5470 = vmatpush3.bf16.msra.mxu1 %v6255_v47  ;;  %v3118_v25 = vpop.f32.mrb[103].mxu0 }
 0x20c   :  { %v5732_v28 = vpop.eup %5731  ;;  %v3119_v20 = vadd.f32 %v6604_v41, %v3118_v25  ;;  %5511 = vmatprep.subr.bf16.mxu1 %v6140_v58 }
 0x20d   :  { %v5734_v14 = vpop.eup %5733  ;;  %5079 = vmatprep.mubr.f32.mxu1 %v5732_v28 }
 0x20e   :  { %5743 = vtanh.f32 %v3119_v20  ;;  %v5037_v19 = vpop.f32.mrb[104].mxu0  ;;  %5080 = vmatmul.mubr.f32.vlgmr.msra.gmra.mrb[96].mxu1 %v5734_v14 }
 0x20f   :  { %5745 = vtanh.f32 %v3124_v32  ;;  %v3134_v31 = vadd.f32 %v6604_v41, %v5037_v19  ;;  %v3128_v34 = vpop.f32.mrb[105].mxu0  ;;  %5519 = vmatpush3.bf16.msra.mxu1 %v6140_v58 }
 0x210   :  { %v5736_v35 = vpop.eup %5735  ;;  %v3129_v8 = vadd.f32 %v6604_v41, %v3128_v34  ;;  %5512 = vmatprep.subr.bf16.mxu1 %v6157_v63 }
 0x211   :  { %v5738_v36 = vpop.eup %5737  ;;  %5082 = vmatprep.mubr.f32.mxu1 %v5736_v35 }
 0x212   :  { %5747 = vtanh.f32 %v3129_v8  ;;  %v5040_v33 = vpop.f32.mrb[106].mxu0  ;;  %5083 = vmatmul.mubr.f32.gmra.mrb[98].mxu1 %v5738_v36 }
 0x213   :  { %5749 = vtanh.f32 %v3134_v31  ;;  %v3144_v38 = vadd.f32 %v6604_v41, %v5040_v33  ;;  %v3138_v11 = vpop.f32.mrb[107].mxu0  ;;  %5520 = vmatpush3.bf16.msra.mxu1 %v6157_v63 }
 0x214   :  { %v5740_v37 = vpop.eup %5739  ;;  %v3139_v44 = vadd.f32 %v6604_v41, %v3138_v11  ;;  %5513 = vmatprep.subr.bf16.mxu1 %v6175_v4 }
 0x215   :  { %v5742_v58 = vpop.eup %5741  ;;  %5085 = vmatprep.mubr.f32.mxu1 %v5740_v37 }
 0x216   :  { %5751 = vtanh.f32 %v3139_v44  ;;  %v5043_v45 = vpop.f32.mrb[108].mxu0  ;;  %5086 = vmatmul.mubr.f32.gmra.mrb[100].mxu1 %v5742_v58 }
 0x217   :  { %5753 = vtanh.f32 %v3144_v38  ;;  %v3154_v46 = vadd.f32 %v6604_v41, %v5043_v45  ;;  %v3148_v26 = vpop.f32.mrb[109].mxu0  ;;  %5521 = vmatpush3.bf16.msra.mxu1 %v6175_v4 }
 0x218   :  { %v5744_v39 = vpop.eup %5743  ;;  %v3149_v42 = vadd.f32 %v6604_v41, %v3148_v26  ;;  %5514 = vmatprep.subr.bf16.mxu1 %v6191_v10 }
 0x219   :  { %v5746_v63 = vpop.eup %5745  ;;  %5088 = vmatprep.mubr.f32.mxu1 %v5744_v39 }
 0x21a   :  { %5755 = vtanh.f32 %v3149_v42  ;;  %v5046_v48 = vpop.f32.mrb[110].mxu0  ;;  %5089 = vmatmul.mubr.f32.gmra.mrb[102].mxu1 %v5746_v63 }
 0x21b   :  { %5757 = vtanh.f32 %v3154_v46  ;;  %v3164_v49 = vadd.f32 %v6604_v41, %v5046_v48  ;;  %v3158_v50 = vpop.f32.mrb[111].mxu0  ;;  %5522 = vmatpush3.bf16.msra.mxu1 %v6191_v10 }
 0x21c   :  { %v5748_v51 = vpop.eup %5747  ;;  %v3159_v52 = vadd.f32 %v6604_v41, %v3158_v50  ;;  %5515 = vmatprep.subr.bf16.mxu1 %v6207_v16 }
 0x21d   :  { %v5750_v4 = vpop.eup %5749  ;;  %5091 = vmatprep.mubr.f32.mxu1 %v5748_v51 }
 0x21e   :  { %5759 = vtanh.f32 %v3159_v52  ;;  %5092 = vmatmul.mubr.f32.gmra.mrb[104].mxu1 %v5750_v4  ;;  %v5113_v43 = vpop.f32.mrb[112].mxu0 }
 0x21f   :  { %5761 = vtanh.f32 %v3164_v49  ;;  %v3593_v53 = vadd.f32 %v6604_v41, %v5113_v43  ;;  %v3587_v54 = vpop.f32.mrb[113].mxu0  ;;  %5523 = vmatpush3.bf16.msra.mxu1 %v6207_v16 }
 0x220   :  { %v5752_v55 = vpop.eup %5751  ;;  %v3588_v56 = vadd.f32 %v6604_v41, %v3587_v54  ;;  %5516 = vmatprep.subr.bf16.mxu1 %v6223_v21 }
 0x221   :  { %v5754_v10 = vpop.eup %5753  ;;  %5094 = vmatprep.mubr.f32.mxu1 %v5752_v55 }
 0x222   :  { %5763 = vtanh.f32 %v3588_v56  ;;  %5095 = vmatmul.mubr.f32.gmra.mrb[106].mxu1 %v5754_v10  ;;  %v5116_v57 = vpop.f32.mrb[114].mxu0 }
 0x223   :  { %5765 = vtanh.f32 %v3593_v53  ;;  %v3603_v59 = vadd.f32 %v6604_v41, %v5116_v57  ;;  %v3597_v60 = vpop.f32.mrb[115].mxu0  ;;  %5524 = vmatpush3.bf16.msra.mxu1 %v6223_v21 }
 0x224   :  { %v5756_v61 = vpop.eup %5755  ;;  %v3598_v62 = vadd.f32 %v6604_v41, %v3597_v60  ;;  %5517 = vmatprep.subr.bf16.mxu1 %v6239_v40 }
 0x225   :  { %v5758_v16 = vpop.eup %5757  ;;  %5097 = vmatprep.mubr.f32.mxu1 %v5756_v61 }
 0x226   :  { %5767 = vtanh.f32 %v3598_v62  ;;  %5098 = vmatmul.mubr.f32.gmra.mrb[108].mxu1 %v5758_v16  ;;  %v5119_v0 = vpop.f32.mrb[116].mxu0 }
 0x227   :  { %5769 = vtanh.f32 %v3603_v59  ;;  %v3613_v1 = vadd.f32 %v6604_v41, %v5119_v0  ;;  %v3607_v2 = vpop.f32.mrb[117].mxu0  ;;  %5525 = vmatpush3.bf16.msra.mxu1 %v6239_v40 }
 0x228   :  { %v5760_v3 = vpop.eup %5759  ;;  %v3608_v5 = vadd.f32 %v6604_v41, %v3607_v2  ;;  %5518 = vmatprep.subr.bf16.mxu1 %v6255_v47 }
 0x229   :  { %v5762_v21 = vpop.eup %5761  ;;  %5100 = vmatprep.mubr.f32.mxu1 %v5760_v3 }
 0x22a   :  { %5771 = vtanh.f32 %v3608_v5  ;;  %5101 = vmatmul.mubr.f32.gmra.mrb[110].mxu1 %v5762_v21  ;;  %v5122_v7 = vpop.f32.mrb[118].mxu0 }
 0x22b   :  { %5773 = vtanh.f32 %v3613_v1  ;;  %v3623_v12 = vadd.f32 %v6604_v41, %v5122_v7  ;;  %v3617_v27 = vpop.f32.mrb[119].mxu0  ;;  %5526 = vmatpush3.bf16.msra.mxu1 %v6255_v47 }
 0x22c   :  { %v5764_v13 = vpop.eup %5763  ;;  %v3618_v15 = vadd.f32 %v6604_v41, %v3617_v27 }
 0x22d   :  { %v5766_v40 = vpop.eup %5765  ;;  %5167 = vmatprep.mubr.f32.mxu0 %v5764_v13 }
 0x22e   :  { %5775 = vtanh.f32 %v3618_v15  ;;  %v5125_v9 = vpop.f32.mrb[120].mxu0  ;;  %5168 = vmatmul.mubr.f32.vlgmr.msra.gmra.mrb[128].mxu0 %v5766_v40 }
 0x22f   :  { %5777 = vtanh.f32 %v3623_v12  ;;  %v3633_v29 = vadd.f32 %v6604_v41, %v5125_v9  ;;  %v3627_v22 = vpop.f32.mrb[121].mxu0 }
 0x230   :  { %v5768_v30 = vpop.eup %5767  ;;  %v3628_v17 = vadd.f32 %v6604_v41, %v3627_v22 }
 0x231   :  { %v5770_v23 = vpop.eup %5769  ;;  %5170 = vmatprep.mubr.f32.mxu0 %v5768_v30 }
 0x232   :  { %5779 = vtanh.f32 %v3628_v17  ;;  %v5128_v24 = vpop.f32.mrb[122].mxu0  ;;  %5171 = vmatmul.mubr.f32.gmra.mrb[130].mxu0 %v5770_v23 }
 0x233   :  { %5781 = vtanh.f32 %v3633_v29  ;;  %v3643_v47 = vadd.f32 %v6604_v41, %v5128_v24  ;;  %v3637_v18 = vpop.f32.mrb[123].mxu0 }
 0x234   :  { %v5772_v32 = vpop.eup %5771  ;;  %v3638_v25 = vadd.f32 %v6604_v41, %v3637_v18 }
 0x235   :  { %v5774_v28 = vpop.eup %5773  ;;  %5173 = vmatprep.mubr.f32.mxu0 %v5772_v32 }
 0x236   :  { %5783 = vtanh.f32 %v3638_v25  ;;  %v5131_v20 = vpop.f32.mrb[124].mxu0  ;;  %5174 = vmatmul.mubr.f32.gmra.mrb[132].mxu0 %v5774_v28 }
 0x237   :  { %5785 = vtanh.f32 %v3643_v47  ;;  %v3653_v14 = vadd.f32 %v6604_v41, %v5131_v20  ;;  %v3647_v19 = vpop.f32.mrb[125].mxu0 }
 0x238   :  { %v5776_v31 = vpop.eup %5775  ;;  %v3648_v34 = vadd.f32 %v6604_v41, %v3647_v19 }
 0x239   :  { %v5778_v35 = vpop.eup %5777  ;;  %5176 = vmatprep.mubr.f32.mxu1 %v5776_v31 }
 0x23a   :  { %5787 = vtanh.f32 %v3648_v34  ;;  %v5134_v8 = vpop.f32.mrb[126].mxu0  ;;  %5177 = vmatmul.mubr.f32.vlgmr.msra.gmra.mrb[112].mxu1 %v5778_v35 }
 0x23b   :  { %5789 = vtanh.f32 %v3653_v14  ;;  %v3663_v36 = vadd.f32 %v6604_v41, %v5134_v8  ;;  %v3657_v33 = vpop.f32.mrb[127].mxu0 }
 0x23c   :  { %v5780_v38 = vpop.eup %5779  ;;  %v3658_v11 = vadd.f32 %v6604_v41, %v3657_v33 }
 0x23d   :  { %v5782_v37 = vpop.eup %5781  ;;  %5179 = vmatprep.mubr.f32.mxu1 %v5780_v38 }
 0x23e   :  { %5791 = vtanh.f32 %v3658_v11  ;;  %5180 = vmatmul.mubr.f32.gmra.mrb[114].mxu1 %v5782_v37 }
 0x23f   :  { %5793 = vtanh.f32 %v3663_v36 }
 0x240   :  { %v5784_v44 = vpop.eup %5783 }
 0x241   :  { %v5786_v58 = vpop.eup %5785  ;;  %v4641_v45 = vpop.f32.mrb[16].mxu1  ;;  %5182 = vmatprep.mubr.f32.mxu1 %v5784_v44 }
 0x242   :  { %v792_v46 = vadd.f32 %v4641_v45, %v6627_v6  ;;  %v786_v26 = vpop.f32.mrb[17].mxu1  ;;  %5183 = vmatmul.mubr.f32.gmra.mrb[116].mxu1 %v5786_v58 }
 0x243   :  { %v787_v39 = vadd.f32 %v6627_v6, %v786_v26 }
 0x244   :  { %v5788_v42 = vpop.eup %5787  ;;  %v866_v63 = vmax.f32 %v792_v46, 0.0 }
 0x245   :  { %v5790_v48 = vpop.eup %5789  ;;  %v865_v49 = vmax.f32 %v787_v39, 0.0  ;;  %v4644_v41 = vpop.f32.mrb[18].mxu1  ;;  %5185 = vmatprep.mubr.f32.mxu1 %v5788_v42 }
 0x246   :  { %v802_v50 = vadd.f32 %v4644_v41, %v6627_v6  ;;  %5186 = vmatmul.mubr.f32.gmra.mrb[118].mxu1 %v5790_v48  ;;  %899 = vrot.lane.b32.xlu1 %v866_v63, %s5847_s23  ;;  %v796_v51 = vpop.f32.mrb[19].mxu1 }
 0x247   :  { %v797_v52 = vadd.f32 %v6627_v6, %v796_v51  ;;  %897 = vrot.lane.b32.xlu0 %v865_v49, %s5847_s23 }
 0x248   :  { %v5792_v4 = vpop.eup %5791  ;;  %v868_v43 = vmax.f32 %v802_v50, 0.0 }
 0x249   :  { %v5794_v53 = vpop.eup %5793  ;;  %v867_v54 = vmax.f32 %v797_v52, 0.0  ;;  %v4647_v55 = vpop.f32.mrb[20].mxu1  ;;  %5188 = vmatprep.mubr.f32.mxu1 %v5792_v4 }
 0x24a   :  { %v812_v56 = vadd.f32 %v4647_v55, %v6627_v6  ;;  %5189 = vmatmul.mubr.f32.gmra.mrb[120].mxu1 %v5794_v53  ;;  %903 = vrot.lane.b32.xlu1 %v868_v43, %s5847_s23  ;;  %v806_v10 = vpop.f32.mrb[21].mxu1 }
 0x24b   :  { %v807_v57 = vadd.f32 %v6627_v6, %v806_v10  ;;  %901 = vrot.lane.b32.xlu0 %v867_v54, %s5847_s23 }
 0x24c   :  { %v870_v59 = vmax.f32 %v812_v56, 0.0 }
 0x24d   :  { %v869_v60 = vmax.f32 %v807_v57, 0.0  ;;  %v4650_v61 = vpop.f32.mrb[22].mxu1 }
 0x24e   :  { %v822_v62 = vadd.f32 %v4650_v61, %v6627_v6  ;;  %907 = vrot.lane.b32.xlu1 %v870_v59, %s5847_s23  ;;  %v816_v16 = vpop.f32.mrb[23].mxu1 }
 0x24f   :  { %v817_v0 = vadd.f32 %v6627_v6, %v816_v16  ;;  %905 = vrot.lane.b32.xlu0 %v869_v60, %s5847_s23 }
 0x250   :  { %v872_v1 = vmax.f32 %v822_v62, 0.0 }
 0x251   :  { %v871_v2 = vmax.f32 %v817_v0, 0.0  ;;  %v4653_v3 = vpop.f32.mrb[24].mxu1 }
 0x252   :  { %v832_v5 = vadd.f32 %v4653_v3, %v6627_v6  ;;  %911 = vrot.lane.b32.xlu1 %v872_v1, %s5847_s23  ;;  %v826_v21 = vpop.f32.mrb[25].mxu1 }
 0x253   :  { %v827_v7 = vadd.f32 %v6627_v6, %v826_v21  ;;  %909 = vrot.lane.b32.xlu0 %v871_v2, %s5847_s23 }
 0x254   :  { %v874_v12 = vmax.f32 %v832_v5, 0.0 }
 0x255   :  { %v873_v27 = vmax.f32 %v827_v7, 0.0  ;;  %v4656_v13 = vpop.f32.mrb[26].mxu1 }
 0x256   :  { %v842_v15 = vadd.f32 %v4656_v13, %v6627_v6  ;;  %915 = vrot.lane.b32.xlu1 %v874_v12, %s5847_s23  ;;  %v836_v40 = vpop.f32.mrb[27].mxu1 }
 0x257   :  { %v837_v9 = vadd.f32 %v6627_v6, %v836_v40  ;;  %913 = vrot.lane.b32.xlu0 %v873_v27, %s5847_s23 }
 0x258   :  { %v876_v29 = vmax.f32 %v842_v15, 0.0 }
 0x259   :  { %v875_v22 = vmax.f32 %v837_v9, 0.0  ;;  %v4659_v30 = vpop.f32.mrb[28].mxu1 }
 0x25a   :  { %v852_v17 = vadd.f32 %v4659_v30, %v6627_v6  ;;  %919 = vrot.lane.b32.xlu1 %v876_v29, %s5847_s23  ;;  %v846_v23 = vpop.f32.mrb[29].mxu1 }
 0x25b   :  { %v847_v24 = vadd.f32 %v6627_v6, %v846_v23  ;;  %917 = vrot.lane.b32.xlu0 %v875_v22, %s5847_s23 }
 0x25c   :  { %v878_v47 = vmax.f32 %v852_v17, 0.0 }
 0x25d   :  { %v877_v18 = vmax.f32 %v847_v24, 0.0  ;;  %v4662_v32 = vpop.f32.mrb[30].mxu1 }
 0x25e   :  { %v862_v25 = vadd.f32 %v4662_v32, %v6627_v6  ;;  %923 = vrot.lane.b32.xlu1 %v878_v47, %s5847_s23  ;;  %v856_v28 = vpop.f32.mrb[31].mxu1 }
 0x25f   :  { %v857_v20 = vadd.f32 %v6627_v6, %v856_v28  ;;  %921 = vrot.lane.b32.xlu0 %v877_v18, %s5847_s23 }
 0x260   :  { %v880_v14 = vmax.f32 %v862_v25, 0.0 }
 0x261   :  { %v879_v19 = vmax.f32 %v857_v20, 0.0  ;;  %v4729_v31 = vpop.f32.mrb[32].mxu1 }
 0x262   :  { %v1291_v34 = vadd.f32 %v4729_v31, %v6627_v6  ;;  %927 = vrot.lane.b32.xlu1 %v880_v14, %s5847_s23  ;;  %v1285_v35 = vpop.f32.mrb[33].mxu1  ;;  %v6825_v14 = vld [vmem:[%s7107_s2 + $0x80] ss:$0 sm:$0xff]  ;;  %s5852_s2 = smov 80  }
 0x263   :  { %v1286_v8 = vadd.f32 %v6627_v6, %v1285_v35  ;;  %925 = vrot.lane.b32.xlu0 %v879_v19, %s5847_s23  ;;  %s5851_s23 = smov 48  }
 0x264   :  { %v1365_v36 = vmax.f32 %v1291_v34, 0.0 }
 0x265   :  { %v1364_v33 = vmax.f32 %v1286_v8, 0.0  ;;  %v4732_v38 = vpop.f32.mrb[34].mxu1 }
 0x266   :  { %v1301_v11 = vadd.f32 %v4732_v38, %v6627_v6  ;;  %1398 = vrot.lane.b32.xlu1 %v1365_v36, %s5850_s8  ;;  %v1295_v37 = vpop.f32.mrb[35].mxu1 }
 0x267   :  { %v1296_v44 = vadd.f32 %v6627_v6, %v1295_v37  ;;  %1396 = vrot.lane.b32.xlu0 %v1364_v33, %s5850_s8 }
 0x268   :  { %v1367_v58 = vmax.f32 %v1301_v11, 0.0 }
 0x269   :  { %v1366_v45 = vmax.f32 %v1296_v44, 0.0  ;;  %v4735_v46 = vpop.f32.mrb[36].mxu1 }
 0x26a   :  { %v1311_v26 = vadd.f32 %v4735_v46, %v6627_v6  ;;  %1402 = vrot.lane.b32.xlu1 %v1367_v58, %s5850_s8  ;;  %v1305_v39 = vpop.f32.mrb[37].mxu1 }
 0x26b   :  { %v1306_v42 = vadd.f32 %v6627_v6, %v1305_v39  ;;  %1400 = vrot.lane.b32.xlu0 %v1366_v45, %s5850_s8 }
 0x26c   :  { %v1369_v63 = vmax.f32 %v1311_v26, 0.0 }
 0x26d   :  { %v1368_v48 = vmax.f32 %v1306_v42, 0.0  ;;  %v4738_v49 = vpop.f32.mrb[38].mxu1 }
 0x26e   :  { %v1321_v41 = vadd.f32 %v4738_v49, %v6627_v6  ;;  %1406 = vrot.lane.b32.xlu1 %v1369_v63, %s5850_s8  ;;  %v1315_v50 = vpop.f32.mrb[39].mxu1 }
 0x26f   :  { %v1316_v51 = vadd.f32 %v6627_v6, %v1315_v50  ;;  %1404 = vrot.lane.b32.xlu0 %v1368_v48, %s5850_s8 }
 0x270   :  { %v1371_v52 = vmax.f32 %v1321_v41, 0.0 }
 0x271   :  { %v1370_v4 = vmax.f32 %v1316_v51, 0.0  ;;  %v4741_v43 = vpop.f32.mrb[40].mxu1 }
 0x272   :  { %v1331_v53 = vadd.f32 %v4741_v43, %v6627_v6  ;;  %1410 = vrot.lane.b32.xlu1 %v1371_v52, %s5850_s8  ;;  %v1325_v54 = vpop.f32.mrb[41].mxu1 }
 0x273   :  { %v1326_v55 = vadd.f32 %v6627_v6, %v1325_v54  ;;  %1408 = vrot.lane.b32.xlu0 %v1370_v4, %s5850_s8 }
 0x274   :  { %v1373_v56 = vmax.f32 %v1331_v53, 0.0 }
 0x275   :  { %v1372_v10 = vmax.f32 %v1326_v55, 0.0  ;;  %v4744_v57 = vpop.f32.mrb[42].mxu1 }
 0x276   :  { %v1341_v59 = vadd.f32 %v4744_v57, %v6627_v6  ;;  %1414 = vrot.lane.b32.xlu1 %v1373_v56, %s5850_s8  ;;  %v1335_v60 = vpop.f32.mrb[43].mxu1 }
 0x277   :  { %v1336_v61 = vadd.f32 %v6627_v6, %v1335_v60  ;;  %1412 = vrot.lane.b32.xlu0 %v1372_v10, %s5850_s8 }
 0x278   :  { %v1375_v62 = vmax.f32 %v1341_v59, 0.0 }
 0x279   :  { %v1374_v16 = vmax.f32 %v1336_v61, 0.0  ;;  %v4747_v0 = vpop.f32.mrb[44].mxu1 }
 0x27a   :  { %v1351_v1 = vadd.f32 %v4747_v0, %v6627_v6  ;;  %1418 = vrot.lane.b32.xlu1 %v1375_v62, %s5850_s8  ;;  %v1345_v2 = vpop.f32.mrb[45].mxu1 }
 0x27b   :  { %v1346_v3 = vadd.f32 %v6627_v6, %v1345_v2  ;;  %1416 = vrot.lane.b32.xlu0 %v1374_v16, %s5850_s8 }
 0x27c   :  { %v1377_v5 = vmax.f32 %v1351_v1, 0.0 }
 0x27d   :  { %v1376_v21 = vmax.f32 %v1346_v3, 0.0  ;;  %v4750_v7 = vpop.f32.mrb[46].mxu1 }
 0x27e   :  { %v1361_v12 = vadd.f32 %v4750_v7, %v6627_v6  ;;  %1422 = vrot.lane.b32.xlu1 %v1377_v5, %s5850_s8  ;;  %v1355_v27 = vpop.f32.mrb[47].mxu1 }
 0x27f   :  { %v1356_v13 = vadd.f32 %v6627_v6, %v1355_v27  ;;  %1420 = vrot.lane.b32.xlu0 %v1376_v21, %s5850_s8 }
 0x280   :  { %v1379_v15 = vmax.f32 %v1361_v12, 0.0 }
 0x281   :  { %v1378_v40 = vmax.f32 %v1356_v13, 0.0  ;;  %v4817_v9 = vpop.f32.mrb[48].mxu1 }
 0x282   :  { %v1790_v29 = vadd.f32 %v4817_v9, %v6627_v6  ;;  %1426 = vrot.lane.b32.xlu1 %v1379_v15, %s5850_s8  ;;  %v1784_v22 = vpop.f32.mrb[49].mxu1 }
 0x283   :  { %v1785_v30 = vadd.f32 %v6627_v6, %v1784_v22  ;;  %1424 = vrot.lane.b32.xlu0 %v1378_v40, %s5850_s8 }
 0x284   :  { %v1864_v17 = vmax.f32 %v1790_v29, 0.0 }
 0x285   :  { %v1863_v23 = vmax.f32 %v1785_v30, 0.0  ;;  %v4820_v24 = vpop.f32.mrb[50].mxu1 }
 0x286   :  { %v1800_v47 = vadd.f32 %v4820_v24, %v6627_v6  ;;  %1897 = vrot.lane.b32.xlu1 %v1864_v17, %s5851_s23  ;;  %v1794_v18 = vpop.f32.mrb[51].mxu1 }
 0x287   :  { %v1795_v32 = vadd.f32 %v6627_v6, %v1794_v18  ;;  %1895 = vrot.lane.b32.xlu0 %v1863_v23, %s5851_s23 }
 0x288   :  { %v1866_v25 = vmax.f32 %v1800_v47, 0.0 }
 0x289   :  { %v1865_v28 = vmax.f32 %v1795_v32, 0.0  ;;  %v4823_v20 = vpop.f32.mrb[52].mxu1 }
 0x28a   :  { %v1810_v19 = vadd.f32 %v6825_v14, %v4823_v20  ;;  %1901 = vrot.lane.b32.xlu1 %v1866_v25, %s5851_s23  ;;  %v1804_v31 = vpop.f32.mrb[53].mxu1 }
 0x28b   :  { %v1805_v34 = vadd.f32 %v6825_v14, %v1804_v31  ;;  %1899 = vrot.lane.b32.xlu0 %v1865_v28, %s5851_s23 }
 0x28c   :  { %v1868_v6 = vmax.f32 %v1810_v19, 0.0 }
 0x28d   :  { %v1867_v35 = vmax.f32 %v1805_v34, 0.0  ;;  %v4826_v8 = vpop.f32.mrb[54].mxu1 }
 0x28e   :  { %v1820_v36 = vadd.f32 %v6825_v14, %v4826_v8  ;;  %1905 = vrot.lane.b32.xlu1 %v1868_v6, %s5851_s23  ;;  %v1814_v33 = vpop.f32.mrb[55].mxu1 }
 0x28f   :  { %v1815_v38 = vadd.f32 %v6825_v14, %v1814_v33  ;;  %1903 = vrot.lane.b32.xlu0 %v1867_v35, %s5851_s23 }
 0x290   :  { %v1870_v11 = vmax.f32 %v1820_v36, 0.0 }
 0x291   :  { %v1869_v37 = vmax.f32 %v1815_v38, 0.0  ;;  %v4829_v44 = vpop.f32.mrb[56].mxu1 }
 0x292   :  { %v1830_v58 = vadd.f32 %v6825_v14, %v4829_v44  ;;  %1909 = vrot.lane.b32.xlu1 %v1870_v11, %s5851_s23  ;;  %v1824_v45 = vpop.f32.mrb[57].mxu1 }
 0x293   :  { %v1825_v46 = vadd.f32 %v6825_v14, %v1824_v45  ;;  %1907 = vrot.lane.b32.xlu0 %v1869_v37, %s5851_s23 }
 0x294   :  { %v1872_v26 = vmax.f32 %v1830_v58, 0.0 }
 0x295   :  { %v1871_v39 = vmax.f32 %v1825_v46, 0.0  ;;  %v4832_v42 = vpop.f32.mrb[58].mxu1 }
 0x296   :  { %v1840_v63 = vadd.f32 %v6825_v14, %v4832_v42  ;;  %1913 = vrot.lane.b32.xlu1 %v1872_v26, %s5851_s23  ;;  %v1834_v48 = vpop.f32.mrb[59].mxu1 }
 0x297   :  { %v1835_v49 = vadd.f32 %v6825_v14, %v1834_v48  ;;  %1911 = vrot.lane.b32.xlu0 %v1871_v39, %s5851_s23 }
 0x298   :  { %v1874_v41 = vmax.f32 %v1840_v63, 0.0 }
 0x299   :  { %v1873_v50 = vmax.f32 %v1835_v49, 0.0  ;;  %v4835_v51 = vpop.f32.mrb[60].mxu1 }
 0x29a   :  { %v1850_v52 = vadd.f32 %v6825_v14, %v4835_v51  ;;  %1917 = vrot.lane.b32.xlu1 %v1874_v41, %s5851_s23  ;;  %v1844_v4 = vpop.f32.mrb[61].mxu1 }
 0x29b   :  { %v1845_v43 = vadd.f32 %v6825_v14, %v1844_v4  ;;  %1915 = vrot.lane.b32.xlu0 %v1873_v50, %s5851_s23 }
 0x29c   :  { %v1876_v53 = vmax.f32 %v1850_v52, 0.0 }
 0x29d   :  { %v1875_v54 = vmax.f32 %v1845_v43, 0.0  ;;  %v4838_v55 = vpop.f32.mrb[62].mxu1 }
 0x29e   :  { %v1860_v56 = vadd.f32 %v6825_v14, %v4838_v55  ;;  %1921 = vrot.lane.b32.xlu1 %v1876_v53, %s5851_s23  ;;  %v1854_v10 = vpop.f32.mrb[63].mxu1 }
 0x29f   :  { %v1855_v57 = vadd.f32 %v6825_v14, %v1854_v10  ;;  %1919 = vrot.lane.b32.xlu0 %v1875_v54, %s5851_s23 }
 0x2a0   :  { %v1878_v59 = vmax.f32 %v1860_v56, 0.0 }
 0x2a1   :  { %v1877_v60 = vmax.f32 %v1855_v57, 0.0  ;;  %v4905_v61 = vpop.f32.mrb[64].mxu1 }
 0x2a2   :  { %v2257_v62 = vadd.f32 %v6825_v14, %v4905_v61  ;;  %1925 = vrot.lane.b32.xlu1 %v1878_v59, %s5851_s23  ;;  %v2251_v16 = vpop.f32.mrb[65].mxu1 }
 0x2a3   :  { %v2252_v0 = vadd.f32 %v6825_v14, %v2251_v16  ;;  %1923 = vrot.lane.b32.xlu0 %v1877_v60, %s5851_s23 }
 0x2a4   :  { %v2331_v1 = vmax.f32 %v2257_v62, 0.0 }
 0x2a5   :  { %v2330_v2 = vmax.f32 %v2252_v0, 0.0  ;;  %v4908_v3 = vpop.f32.mrb[66].mxu1 }
 0x2a6   :  { %v2267_v5 = vadd.f32 %v6825_v14, %v4908_v3  ;;  %2364 = vrot.lane.b32.xlu1 %v2331_v1, %s5849_s7  ;;  %v2261_v21 = vpop.f32.mrb[67].mxu1 }
 0x2a7   :  { %v2262_v7 = vadd.f32 %v6825_v14, %v2261_v21  ;;  %2362 = vrot.lane.b32.xlu0 %v2330_v2, %s5849_s7 }
 0x2a8   :  { %v2333_v12 = vmax.f32 %v2267_v5, 0.0 }
 0x2a9   :  { %v2332_v27 = vmax.f32 %v2262_v7, 0.0  ;;  %v4911_v13 = vpop.f32.mrb[68].mxu1 }
 0x2aa   :  { %v2277_v15 = vadd.f32 %v6825_v14, %v4911_v13  ;;  %2368 = vrot.lane.b32.xlu1 %v2333_v12, %s5849_s7  ;;  %v2271_v40 = vpop.f32.mrb[69].mxu1 }
 0x2ab   :  { %v2272_v9 = vadd.f32 %v6825_v14, %v2271_v40  ;;  %2366 = vrot.lane.b32.xlu0 %v2332_v27, %s5849_s7 }
 0x2ac   :  { %v2335_v29 = vmax.f32 %v2277_v15, 0.0 }
 0x2ad   :  { %v2334_v22 = vmax.f32 %v2272_v9, 0.0  ;;  %v4914_v30 = vpop.f32.mrb[70].mxu1 }
 0x2ae   :  { %v2287_v17 = vadd.f32 %v6825_v14, %v4914_v30  ;;  %2372 = vrot.lane.b32.xlu1 %v2335_v29, %s5849_s7  ;;  %v2281_v23 = vpop.f32.mrb[71].mxu1 }
 0x2af   :  { %v2282_v24 = vadd.f32 %v6825_v14, %v2281_v23  ;;  %2370 = vrot.lane.b32.xlu0 %v2334_v22, %s5849_s7 }
 0x2b0   :  { %v2337_v47 = vmax.f32 %v2287_v17, 0.0 }
 0x2b1   :  { %v2336_v18 = vmax.f32 %v2282_v24, 0.0  ;;  %v4917_v32 = vpop.f32.mrb[72].mxu1 }
 0x2b2   :  { %v2297_v25 = vadd.f32 %v6825_v14, %v4917_v32  ;;  %2376 = vrot.lane.b32.xlu1 %v2337_v47, %s5849_s7  ;;  %v2291_v28 = vpop.f32.mrb[73].mxu1 }
 0x2b3   :  { %v2292_v20 = vadd.f32 %v6825_v14, %v2291_v28  ;;  %2374 = vrot.lane.b32.xlu0 %v2336_v18, %s5849_s7 }
 0x2b4   :  { %v2339_v19 = vmax.f32 %v2297_v25, 0.0 }
 0x2b5   :  { %v2338_v31 = vmax.f32 %v2292_v20, 0.0  ;;  %v4920_v34 = vpop.f32.mrb[74].mxu1 }
 0x2b6   :  { %v2307_v6 = vadd.f32 %v6825_v14, %v4920_v34  ;;  %2380 = vrot.lane.b32.xlu1 %v2339_v19, %s5849_s7  ;;  %v2301_v35 = vpop.f32.mrb[75].mxu1 }
 0x2b7   :  { %v2302_v8 = vadd.f32 %v6825_v14, %v2301_v35  ;;  %2378 = vrot.lane.b32.xlu0 %v2338_v31, %s5849_s7 }
 0x2b8   :  { %v2341_v36 = vmax.f32 %v2307_v6, 0.0  ;;  %v900_v33 = vpop.permute.xlu1 %899 }
 0x2b9   :  { %v2340_v38 = vmax.f32 %v2302_v8, 0.0  ;;  %947 = vst.msk [vmem:[#allocation5 + $0x8] sm:$0xff] %vm945_vm2, %v900_v33  ;;  %v4923_v11 = vpop.f32.mrb[76].mxu1  ;;  %v898_v37 = vpop.permute.xlu0 %897 }
 0x2ba   :  { %v2317_v44 = vadd.f32 %v6825_v14, %v4923_v11  ;;  %946 = vst.msk [vmem:[#allocation5] sm:$0xff] %vm945_vm2, %v898_v37  ;;  %2384 = vrot.lane.b32.xlu1 %v2341_v36, %s5849_s7  ;;  %v2311_v58 = vpop.f32.mrb[77].mxu1 }
 0x2bb   :  { %v2312_v45 = vadd.f32 %v6825_v14, %v2311_v58  ;;  %2382 = vrot.lane.b32.xlu0 %v2340_v38, %s5849_s7 }
 0x2bc   :  { %v2343_v46 = vmax.f32 %v2317_v44, 0.0  ;;  %v904_v26 = vpop.permute.xlu1 %903 }
 0x2bd   :  { %v2342_v39 = vmax.f32 %v2312_v45, 0.0  ;;  %949 = vst.msk [vmem:[#allocation5 + $0x18] sm:$0xff] %vm945_vm2, %v904_v26  ;;  %v4926_v42 = vpop.f32.mrb[78].mxu1  ;;  %v902_v63 = vpop.permute.xlu0 %901 }
 0x2be   :  { %v2327_v48 = vadd.f32 %v6825_v14, %v4926_v42  ;;  %948 = vst.msk [vmem:[#allocation5 + $0x10] sm:$0xff] %vm945_vm2, %v902_v63  ;;  %2388 = vrot.lane.b32.xlu1 %v2343_v46, %s5849_s7  ;;  %v2321_v49 = vpop.f32.mrb[79].mxu1 }
 0x2bf   :  { %v2322_v41 = vadd.f32 %v6825_v14, %v2321_v49  ;;  %2386 = vrot.lane.b32.xlu0 %v2342_v39, %s5849_s7 }
 0x2c0   :  { %v2345_v50 = vmax.f32 %v2327_v48, 0.0  ;;  %v908_v51 = vpop.permute.xlu1 %907 }
 0x2c1   :  { %v2344_v52 = vmax.f32 %v2322_v41, 0.0  ;;  %951 = vst.msk [vmem:[#allocation5 + $0x28] sm:$0xff] %vm945_vm2, %v908_v51  ;;  %v4993_v4 = vpop.f32.mrb[80].mxu1  ;;  %v906_v43 = vpop.permute.xlu0 %905 }
 0x2c2   :  { %v2756_v53 = vadd.f32 %v6825_v14, %v4993_v4  ;;  %950 = vst.msk [vmem:[#allocation5 + $0x20] sm:$0xff] %vm945_vm2, %v906_v43  ;;  %2392 = vrot.lane.b32.xlu1 %v2345_v50, %s5849_s7  ;;  %v2750_v54 = vpop.f32.mrb[81].mxu1 }
 0x2c3   :  { %v2751_v55 = vadd.f32 %v6825_v14, %v2750_v54  ;;  %2390 = vrot.lane.b32.xlu0 %v2344_v52, %s5849_s7  ;;  %s5853_s7 = smov 112  }
 0x2c4   :  { %v2830_v56 = vmax.f32 %v2756_v53, 0.0  ;;  %v912_v10 = vpop.permute.xlu1 %911 }
 0x2c5   :  { %v2829_v57 = vmax.f32 %v2751_v55, 0.0  ;;  %953 = vst.msk [vmem:[#allocation5 + $0x38] sm:$0xff] %vm945_vm2, %v912_v10  ;;  %v4996_v59 = vpop.f32.mrb[82].mxu1  ;;  %v910_v60 = vpop.permute.xlu0 %909 }
 0x2c6   :  { %v2766_v61 = vadd.f32 %v6825_v14, %v4996_v59  ;;  %952 = vst.msk [vmem:[#allocation5 + $0x30] sm:$0xff] %vm945_vm2, %v910_v60  ;;  %2863 = vrot.lane.b32.xlu1 %v2830_v56, %s5852_s2  ;;  %v2760_v62 = vpop.f32.mrb[83].mxu1 }
 0x2c7   :  { %v2761_v16 = vadd.f32 %v6825_v14, %v2760_v62  ;;  %2861 = vrot.lane.b32.xlu0 %v2829_v57, %s5852_s2 }
 0x2c8   :  { %v2832_v0 = vmax.f32 %v2766_v61, 0.0  ;;  %v916_v1 = vpop.permute.xlu1 %915 }
 0x2c9   :  { %v2831_v2 = vmax.f32 %v2761_v16, 0.0  ;;  %955 = vst.msk [vmem:[#allocation5 + $0x48] sm:$0xff] %vm945_vm2, %v916_v1  ;;  %v4999_v3 = vpop.f32.mrb[84].mxu1  ;;  %v914_v5 = vpop.permute.xlu0 %913 }
 0x2ca   :  { %v2776_v21 = vadd.f32 %v6825_v14, %v4999_v3  ;;  %954 = vst.msk [vmem:[#allocation5 + $0x40] sm:$0xff] %vm945_vm2, %v914_v5  ;;  %2867 = vrot.lane.b32.xlu1 %v2832_v0, %s5852_s2  ;;  %v2770_v7 = vpop.f32.mrb[85].mxu1 }
 0x2cb   :  { %v2771_v12 = vadd.f32 %v6825_v14, %v2770_v7  ;;  %2865 = vrot.lane.b32.xlu0 %v2831_v2, %s5852_s2 }
 0x2cc   :  { %v2834_v27 = vmax.f32 %v2776_v21, 0.0  ;;  %v920_v13 = vpop.permute.xlu1 %919 }
 0x2cd   :  { %v2833_v15 = vmax.f32 %v2771_v12, 0.0  ;;  %957 = vst.msk [vmem:[#allocation5 + $0x58] sm:$0xff] %vm945_vm2, %v920_v13  ;;  %v5002_v40 = vpop.f32.mrb[86].mxu1  ;;  %v918_v9 = vpop.permute.xlu0 %917 }
 0x2ce   :  { %v2786_v29 = vadd.f32 %v6825_v14, %v5002_v40  ;;  %956 = vst.msk [vmem:[#allocation5 + $0x50] sm:$0xff] %vm945_vm2, %v918_v9  ;;  %2871 = vrot.lane.b32.xlu1 %v2834_v27, %s5852_s2  ;;  %v2780_v22 = vpop.f32.mrb[87].mxu1 }
 0x2cf   :  { %v2781_v30 = vadd.f32 %v6825_v14, %v2780_v22  ;;  %2869 = vrot.lane.b32.xlu0 %v2833_v15, %s5852_s2 }
 0x2d0   :  { %v2836_v17 = vmax.f32 %v2786_v29, 0.0  ;;  %v924_v23 = vpop.permute.xlu1 %923 }
 0x2d1   :  { %v2835_v24 = vmax.f32 %v2781_v30, 0.0  ;;  %959 = vst.msk [vmem:[#allocation5 + $0x68] sm:$0xff] %vm945_vm2, %v924_v23  ;;  %v5005_v47 = vpop.f32.mrb[88].mxu1  ;;  %v922_v18 = vpop.permute.xlu0 %921 }
 0x2d2   :  { %v2796_v32 = vadd.f32 %v6825_v14, %v5005_v47  ;;  %958 = vst.msk [vmem:[#allocation5 + $0x60] sm:$0xff] %vm945_vm2, %v922_v18  ;;  %2875 = vrot.lane.b32.xlu1 %v2836_v17, %s5852_s2  ;;  %v2790_v25 = vpop.f32.mrb[89].mxu1 }
 0x2d3   :  { %v2791_v28 = vadd.f32 %v6825_v14, %v2790_v25  ;;  %2873 = vrot.lane.b32.xlu0 %v2835_v24, %s5852_s2 }
 0x2d4   :  { %v2838_v20 = vmax.f32 %v2796_v32, 0.0  ;;  %v928_v19 = vpop.permute.xlu1 %927 }
 0x2d5   :  { %v2837_v31 = vmax.f32 %v2791_v28, 0.0  ;;  %961 = vst.msk [vmem:[#allocation5 + $0x78] sm:$0xff] %vm945_vm2, %v928_v19  ;;  %v5008_v34 = vpop.f32.mrb[90].mxu1  ;;  %v926_v6 = vpop.permute.xlu0 %925 }
 0x2d6   :  { %v2806_v35 = vadd.f32 %v6825_v14, %v5008_v34  ;;  %960 = vst.msk [vmem:[#allocation5 + $0x70] sm:$0xff] %vm945_vm2, %v926_v6  ;;  %2879 = vrot.lane.b32.xlu1 %v2838_v20, %s5852_s2  ;;  %v2800_v8 = vpop.f32.mrb[91].mxu1 }
 0x2d7   :  { %v2801_v36 = vadd.f32 %v6825_v14, %v2800_v8  ;;  %2877 = vrot.lane.b32.xlu0 %v2837_v31, %s5852_s2 }
 0x2d8   :  { %v2840_v33 = vmax.f32 %v2806_v35, 0.0  ;;  %v1399_v38 = vpop.permute.xlu1 %1398 }
 0x2d9   :  { %v2839_v11 = vmax.f32 %v2801_v36, 0.0  ;;  %1446 = vst.msk [vmem:[#allocation5 + $0x8] sm:$0xff] %vm1444_vm3, %v1399_v38  ;;  %v5011_v37 = vpop.f32.mrb[92].mxu1  ;;  %v1397_v44 = vpop.permute.xlu0 %1396 }
 0x2da   :  { %v2816_v58 = vadd.f32 %v6825_v14, %v5011_v37  ;;  %1445 = vst.msk [vmem:[#allocation5] sm:$0xff] %vm1444_vm3, %v1397_v44  ;;  %2883 = vrot.lane.b32.xlu1 %v2840_v33, %s5852_s2  ;;  %v2810_v45 = vpop.f32.mrb[93].mxu1 }
 0x2db   :  { %v2811_v46 = vadd.f32 %v6825_v14, %v2810_v45  ;;  %2881 = vrot.lane.b32.xlu0 %v2839_v11, %s5852_s2 }
 0x2dc   :  { %v2842_v26 = vmax.f32 %v2816_v58, 0.0  ;;  %v1403_v39 = vpop.permute.xlu1 %1402 }
 0x2dd   :  { %v2841_v42 = vmax.f32 %v2811_v46, 0.0  ;;  %1448 = vst.msk [vmem:[#allocation5 + $0x18] sm:$0xff] %vm1444_vm3, %v1403_v39  ;;  %v5014_v63 = vpop.f32.mrb[94].mxu1  ;;  %v1401_v48 = vpop.permute.xlu0 %1400 }
 0x2de   :  { %v2826_v49 = vadd.f32 %v6825_v14, %v5014_v63  ;;  %1447 = vst.msk [vmem:[#allocation5 + $0x10] sm:$0xff] %vm1444_vm3, %v1401_v48  ;;  %2887 = vrot.lane.b32.xlu1 %v2842_v26, %s5852_s2  ;;  %v2820_v41 = vpop.f32.mrb[95].mxu1 }
 0x2df   :  { %v2821_v50 = vadd.f32 %v6825_v14, %v2820_v41  ;;  %2885 = vrot.lane.b32.xlu0 %v2841_v42, %s5852_s2 }
 0x2e0   :  { %v2844_v51 = vmax.f32 %v2826_v49, 0.0  ;;  %v1407_v52 = vpop.permute.xlu1 %1406 }
 0x2e1   :  { %v2843_v4 = vmax.f32 %v2821_v50, 0.0  ;;  %1450 = vst.msk [vmem:[#allocation5 + $0x28] sm:$0xff] %vm1444_vm3, %v1407_v52  ;;  %v5081_v43 = vpop.f32.mrb[96].mxu1  ;;  %v1405_v53 = vpop.permute.xlu0 %1404 }
 0x2e2   :  { %v3255_v54 = vadd.f32 %v6825_v14, %v5081_v43  ;;  %1449 = vst.msk [vmem:[#allocation5 + $0x20] sm:$0xff] %vm1444_vm3, %v1405_v53  ;;  %2891 = vrot.lane.b32.xlu1 %v2844_v51, %s5852_s2  ;;  %v3249_v55 = vpop.f32.mrb[97].mxu1 }
 0x2e3   :  { %v3250_v56 = vadd.f32 %v6825_v14, %v3249_v55  ;;  %2889 = vrot.lane.b32.xlu0 %v2843_v4, %s5852_s2 }
 0x2e4   :  { %v3329_v10 = vmax.f32 %v3255_v54, 0.0  ;;  %v1411_v57 = vpop.permute.xlu1 %1410 }
 0x2e5   :  { %v3328_v59 = vmax.f32 %v3250_v56, 0.0  ;;  %1452 = vst.msk [vmem:[#allocation5 + $0x38] sm:$0xff] %vm1444_vm3, %v1411_v57  ;;  %v5084_v60 = vpop.f32.mrb[98].mxu1  ;;  %v1409_v61 = vpop.permute.xlu0 %1408 }
 0x2e6   :  { %v3265_v62 = vadd.f32 %v6825_v14, %v5084_v60  ;;  %1451 = vst.msk [vmem:[#allocation5 + $0x30] sm:$0xff] %vm1444_vm3, %v1409_v61  ;;  %3362 = vrot.lane.b32.xlu1 %v3329_v10, %s5848_s26  ;;  %v3259_v16 = vpop.f32.mrb[99].mxu1 }
 0x2e7   :  { %v3260_v0 = vadd.f32 %v6825_v14, %v3259_v16  ;;  %3360 = vrot.lane.b32.xlu0 %v3328_v59, %s5848_s26 }
 0x2e8   :  { %v3331_v1 = vmax.f32 %v3265_v62, 0.0  ;;  %v1415_v2 = vpop.permute.xlu1 %1414 }
 0x2e9   :  { %v3330_v3 = vmax.f32 %v3260_v0, 0.0  ;;  %1454 = vst.msk [vmem:[#allocation5 + $0x48] sm:$0xff] %vm1444_vm3, %v1415_v2  ;;  %v5087_v5 = vpop.f32.mrb[100].mxu1  ;;  %v1413_v21 = vpop.permute.xlu0 %1412 }
 0x2ea   :  { %v3275_v7 = vadd.f32 %v6825_v14, %v5087_v5  ;;  %1453 = vst.msk [vmem:[#allocation5 + $0x40] sm:$0xff] %vm1444_vm3, %v1413_v21  ;;  %3366 = vrot.lane.b32.xlu1 %v3331_v1, %s5848_s26  ;;  %v3269_v12 = vpop.f32.mrb[101].mxu1 }
 0x2eb   :  { %v3270_v27 = vadd.f32 %v6825_v14, %v3269_v12  ;;  %3364 = vrot.lane.b32.xlu0 %v3330_v3, %s5848_s26 }
 0x2ec   :  { %v3333_v13 = vmax.f32 %v3275_v7, 0.0  ;;  %v1419_v15 = vpop.permute.xlu1 %1418 }
 0x2ed   :  { %v3332_v40 = vmax.f32 %v3270_v27, 0.0  ;;  %1456 = vst.msk [vmem:[#allocation5 + $0x58] sm:$0xff] %vm1444_vm3, %v1419_v15  ;;  %v5090_v9 = vpop.f32.mrb[102].mxu1  ;;  %v1417_v29 = vpop.permute.xlu0 %1416 }
 0x2ee   :  { %v3285_v22 = vadd.f32 %v6825_v14, %v5090_v9  ;;  %1455 = vst.msk [vmem:[#allocation5 + $0x50] sm:$0xff] %vm1444_vm3, %v1417_v29  ;;  %3370 = vrot.lane.b32.xlu1 %v3333_v13, %s5848_s26  ;;  %v3279_v30 = vpop.f32.mrb[103].mxu1 }
 0x2ef   :  { %v3280_v17 = vadd.f32 %v6825_v14, %v3279_v30  ;;  %3368 = vrot.lane.b32.xlu0 %v3332_v40, %s5848_s26 }
 0x2f0   :  { %v3335_v23 = vmax.f32 %v3285_v22, 0.0  ;;  %v1423_v24 = vpop.permute.xlu1 %1422 }
 0x2f1   :  { %v3334_v47 = vmax.f32 %v3280_v17, 0.0  ;;  %1458 = vst.msk [vmem:[#allocation5 + $0x68] sm:$0xff] %vm1444_vm3, %v1423_v24  ;;  %v5093_v18 = vpop.f32.mrb[104].mxu1  ;;  %v1421_v32 = vpop.permute.xlu0 %1420 }
 0x2f2   :  { %v3295_v25 = vadd.f32 %v6825_v14, %v5093_v18  ;;  %1457 = vst.msk [vmem:[#allocation5 + $0x60] sm:$0xff] %vm1444_vm3, %v1421_v32  ;;  %3374 = vrot.lane.b32.xlu1 %v3335_v23, %s5848_s26  ;;  %v3289_v28 = vpop.f32.mrb[105].mxu1 }
 0x2f3   :  { %v3290_v20 = vadd.f32 %v6825_v14, %v3289_v28  ;;  %3372 = vrot.lane.b32.xlu0 %v3334_v47, %s5848_s26 }
 0x2f4   :  { %v3337_v19 = vmax.f32 %v3295_v25, 0.0  ;;  %v1427_v31 = vpop.permute.xlu1 %1426 }
 0x2f5   :  { %v3336_v34 = vmax.f32 %v3290_v20, 0.0  ;;  %1460 = vst.msk [vmem:[#allocation5 + $0x78] sm:$0xff] %vm1444_vm3, %v1427_v31  ;;  %v5096_v6 = vpop.f32.mrb[106].mxu1  ;;  %v1425_v35 = vpop.permute.xlu0 %1424 }
 0x2f6   :  { %v3305_v8 = vadd.f32 %v6825_v14, %v5096_v6  ;;  %1459 = vst.msk [vmem:[#allocation5 + $0x70] sm:$0xff] %vm1444_vm3, %v1425_v35  ;;  %3378 = vrot.lane.b32.xlu1 %v3337_v19, %s5848_s26  ;;  %v3299_v36 = vpop.f32.mrb[107].mxu1 }
 0x2f7   :  { %v3300_v33 = vadd.f32 %v6825_v14, %v3299_v36  ;;  %3376 = vrot.lane.b32.xlu0 %v3336_v34, %s5848_s26 }
 0x2f8   :  { %v3339_v38 = vmax.f32 %v3305_v8, 0.0  ;;  %v1898_v11 = vpop.permute.xlu1 %1897 }
 0x2f9   :  { %v3338_v37 = vmax.f32 %v3300_v33, 0.0  ;;  %1945 = vst.msk [vmem:[#allocation5 + $0x8] sm:$0xff] %vm1943_vm4, %v1898_v11  ;;  %v5099_v44 = vpop.f32.mrb[108].mxu1  ;;  %v1896_v58 = vpop.permute.xlu0 %1895 }
 0x2fa   :  { %v3315_v45 = vadd.f32 %v6825_v14, %v5099_v44  ;;  %1944 = vst.msk [vmem:[#allocation5] sm:$0xff] %vm1943_vm4, %v1896_v58  ;;  %3382 = vrot.lane.b32.xlu1 %v3339_v38, %s5848_s26  ;;  %v3309_v46 = vpop.f32.mrb[109].mxu1 }
 0x2fb   :  { %v3310_v26 = vadd.f32 %v6825_v14, %v3309_v46  ;;  %3380 = vrot.lane.b32.xlu0 %v3338_v37, %s5848_s26 }
 0x2fc   :  { %v3341_v39 = vmax.f32 %v3315_v45, 0.0  ;;  %v1902_v42 = vpop.permute.xlu1 %1901 }
 0x2fd   :  { %v3340_v63 = vmax.f32 %v3310_v26, 0.0  ;;  %1947 = vst.msk [vmem:[#allocation5 + $0x18] sm:$0xff] %vm1943_vm4, %v1902_v42  ;;  %v5102_v48 = vpop.f32.mrb[110].mxu1  ;;  %v1900_v49 = vpop.permute.xlu0 %1899 }
 0x2fe   :  { %v3325_v41 = vadd.f32 %v6825_v14, %v5102_v48  ;;  %1946 = vst.msk [vmem:[#allocation5 + $0x10] sm:$0xff] %vm1943_vm4, %v1900_v49  ;;  %3386 = vrot.lane.b32.xlu1 %v3341_v39, %s5848_s26  ;;  %v3319_v50 = vpop.f32.mrb[111].mxu1 }
 0x2ff   :  { %v3320_v51 = vadd.f32 %v6825_v14, %v3319_v50  ;;  %3384 = vrot.lane.b32.xlu0 %v3340_v63, %s5848_s26 }
 0x300   :  { %v3343_v52 = vmax.f32 %v3325_v41, 0.0  ;;  %v1906_v4 = vpop.permute.xlu1 %1905 }
 0x301   :  { %v3342_v43 = vmax.f32 %v3320_v51, 0.0  ;;  %1949 = vst.msk [vmem:[#allocation5 + $0x28] sm:$0xff] %vm1943_vm4, %v1906_v4  ;;  %v5169_v53 = vpop.f32.mrb[128].mxu0  ;;  %v1904_v54 = vpop.permute.xlu0 %1903 }
 0x302   :  { %v3754_v55 = vadd.f32 %v6825_v14, %v5169_v53  ;;  %1948 = vst.msk [vmem:[#allocation5 + $0x20] sm:$0xff] %vm1943_vm4, %v1904_v54  ;;  %v3748_v56 = vpop.f32.mrb[129].mxu0  ;;  %3390 = vrot.lane.b32.xlu1 %v3343_v52, %s5848_s26 }
 0x303   :  { %v3749_v10 = vadd.f32 %v6825_v14, %v3748_v56  ;;  %3388 = vrot.lane.b32.xlu0 %v3342_v43, %s5848_s26  ;;  %s5854_s26 = smov [#allocation5]  }
 0x304   :  { %v3828_v57 = vmax.f32 %v3754_v55, 0.0  ;;  %v1910_v59 = vpop.permute.xlu1 %1909  ;;  %s3929_s8 = sshll.u32 %s5854_s26, 4  ;;  %s3930_s8 = int_to_ptr.vmem [resolvable:$true] %s3929_s8 }
 0x305   :  { %v3827_v60 = vmax.f32 %v3749_v10, 0.0  ;;  %1951 = vst.msk [vmem:[#allocation5 + $0x38] sm:$0xff] %vm1943_vm4, %v1910_v59  ;;  %v5172_v61 = vpop.f32.mrb[130].mxu0  ;;  %v1908_v62 = vpop.permute.xlu0 %1907  ;;  %s5819_s25 = scalar_lea.vmem %s3930_s8, 2048  ;;  %p5824_p9 = scmp.lt.s32.totalorder %s3930_s8, %s3930_s8 }
 0x306   :  { %v3764_v16 = vadd.f32 %v6825_v14, %v5172_v61  ;;  %1950 = vst.msk [vmem:[#allocation5 + $0x30] sm:$0xff] %vm1943_vm4, %v1908_v62  ;;  %v3758_v0 = vpop.f32.mrb[131].mxu0  ;;  %3861 = vrot.lane.b32.xlu1 %v3828_v57, %s5853_s7  ;;  %p5820_p8 = scmp.ne.s32.totalorder %s3930_s8, %s5819_s25  ;;  %p5825_p10 = scmp.lt.s32.totalorder %s5819_s25, %s5819_s25 }
 0x307   :  { %v3759_v1 = vadd.f32 %v6825_v14, %v3758_v0  ;;  %3859 = vrot.lane.b32.xlu0 %v3827_v60, %s5853_s7 }
 0x308   :  { %v3830_v2 = vmax.f32 %v3764_v16, 0.0  ;;  %v1914_v3 = vpop.permute.xlu1 %1913  ;;  %p5826_p11 = por %p5825_p10, %p5824_p9 }
 0x309   :  { %v3829_v5 = vmax.f32 %v3759_v1, 0.0  ;;  %1953 = vst.msk [vmem:[#allocation5 + $0x48] sm:$0xff] %vm1943_vm4, %v1914_v3  ;;  %v5175_v21 = vpop.f32.mrb[132].mxu0  ;;  %v1912_v7 = vpop.permute.xlu0 %1911 }
 0x30a   :  { %v3774_v12 = vadd.f32 %v6825_v14, %v5175_v21  ;;  %1952 = vst.msk [vmem:[#allocation5 + $0x40] sm:$0xff] %vm1943_vm4, %v1912_v7  ;;  %v3768_v27 = vpop.f32.mrb[133].mxu0  ;;  %3865 = vrot.lane.b32.xlu1 %v3830_v2, %s5853_s7  ;;  %p5827_p12 = pnand %p5826_p11, %p5820_p8 }
 0x30b   :  { %v3769_v13 = vadd.f32 %v6825_v14, %v3768_v27  ;;  %3863 = vrot.lane.b32.xlu0 %v3829_v5, %s5853_s7 }
 0x30c   :  { %v3832_v15 = vmax.f32 %v3774_v12, 0.0  ;;  %v1918_v40 = vpop.permute.xlu1 %1917 }
 0x30d   :  { %v3831_v9 = vmax.f32 %v3769_v13, 0.0  ;;  %1955 = vst.msk [vmem:[#allocation5 + $0x58] sm:$0xff] %vm1943_vm4, %v1918_v40  ;;  %v5178_v29 = vpop.f32.mrb[112].mxu1  ;;  %v1916_v22 = vpop.permute.xlu0 %1915 }
 0x30e   :  { %v3784_v30 = vadd.f32 %v6825_v14, %v5178_v29  ;;  %1954 = vst.msk [vmem:[#allocation5 + $0x50] sm:$0xff] %vm1943_vm4, %v1916_v22  ;;  %3869 = vrot.lane.b32.xlu1 %v3832_v15, %s5853_s7  ;;  %v3778_v17 = vpop.f32.mrb[113].mxu1 }
 0x30f   :  { %v3779_v23 = vadd.f32 %v6825_v14, %v3778_v17  ;;  %3867 = vrot.lane.b32.xlu0 %v3831_v9, %s5853_s7 }
 0x310   :  { %v3834_v24 = vmax.f32 %v3784_v30, 0.0  ;;  %v1922_v47 = vpop.permute.xlu1 %1921 }
 0x311   :  { %v3833_v18 = vmax.f32 %v3779_v23, 0.0  ;;  %1957 = vst.msk [vmem:[#allocation5 + $0x68] sm:$0xff] %vm1943_vm4, %v1922_v47  ;;  %v5181_v32 = vpop.f32.mrb[114].mxu1  ;;  %v1920_v25 = vpop.permute.xlu0 %1919 }
 0x312   :  { %v3794_v28 = vadd.f32 %v6825_v14, %v5181_v32  ;;  %1956 = vst.msk [vmem:[#allocation5 + $0x60] sm:$0xff] %vm1943_vm4, %v1920_v25  ;;  %3873 = vrot.lane.b32.xlu1 %v3834_v24, %s5853_s7  ;;  %v3788_v20 = vpop.f32.mrb[115].mxu1 }
 0x313   :  { %v3789_v19 = vadd.f32 %v6825_v14, %v3788_v20  ;;  %3871 = vrot.lane.b32.xlu0 %v3833_v18, %s5853_s7 }
 0x314   :  { %v3836_v31 = vmax.f32 %v3794_v28, 0.0  ;;  %v1926_v34 = vpop.permute.xlu1 %1925 }
 0x315   :  { %v3835_v6 = vmax.f32 %v3789_v19, 0.0  ;;  %1959 = vst.msk [vmem:[#allocation5 + $0x78] sm:$0xff] %vm1943_vm4, %v1926_v34  ;;  %v5184_v35 = vpop.f32.mrb[116].mxu1  ;;  %v1924_v8 = vpop.permute.xlu0 %1923 }
 0x316   :  { %v3804_v36 = vadd.f32 %v6825_v14, %v5184_v35  ;;  %1958 = vst.msk [vmem:[#allocation5 + $0x70] sm:$0xff] %vm1943_vm4, %v1924_v8  ;;  %3877 = vrot.lane.b32.xlu1 %v3836_v31, %s5853_s7  ;;  %v3798_v33 = vpop.f32.mrb[117].mxu1 }
 0x317   :  { %v3799_v38 = vadd.f32 %v6825_v14, %v3798_v33  ;;  %3875 = vrot.lane.b32.xlu0 %v3835_v6, %s5853_s7 }
 0x318   :  { %v3838_v11 = vmax.f32 %v3804_v36, 0.0  ;;  %v2365_v37 = vpop.permute.xlu1 %2364 }
 0x319   :  { %v3837_v44 = vmax.f32 %v3799_v38, 0.0  ;;  %2412 = vst.msk [vmem:[#allocation5 + $0x8] sm:$0xff] %vm2410_vm5, %v2365_v37  ;;  %v5187_v58 = vpop.f32.mrb[118].mxu1  ;;  %v2363_v45 = vpop.permute.xlu0 %2362 }
 0x31a   :  { %v3814_v46 = vadd.f32 %v6825_v14, %v5187_v58  ;;  %2411 = vst.msk [vmem:[#allocation5] sm:$0xff] %vm2410_vm5, %v2363_v45  ;;  %3881 = vrot.lane.b32.xlu1 %v3838_v11, %s5853_s7  ;;  %v3808_v26 = vpop.f32.mrb[119].mxu1 }
 0x31b   :  { %v3809_v39 = vadd.f32 %v6825_v14, %v3808_v26  ;;  %3879 = vrot.lane.b32.xlu0 %v3837_v44, %s5853_s7 }
 0x31c   :  { %v3840_v42 = vmax.f32 %v3814_v46, 0.0  ;;  %v2369_v63 = vpop.permute.xlu1 %2368 }
 0x31d   :  { %v3839_v48 = vmax.f32 %v3809_v39, 0.0  ;;  %2414 = vst.msk [vmem:[#allocation5 + $0x18] sm:$0xff] %vm2410_vm5, %v2369_v63  ;;  %v5190_v49 = vpop.f32.mrb[120].mxu1  ;;  %v2367_v41 = vpop.permute.xlu0 %2366 }
 0x31e   :  { %v3824_v50 = vadd.f32 %v6825_v14, %v5190_v49  ;;  %2413 = vst.msk [vmem:[#allocation5 + $0x10] sm:$0xff] %vm2410_vm5, %v2367_v41  ;;  %3885 = vrot.lane.b32.xlu1 %v3840_v42, %s5853_s7  ;;  %v3818_v51 = vpop.f32.mrb[121].mxu1 }
 0x31f   :  { %v3819_v52 = vadd.f32 %v6825_v14, %v3818_v51  ;;  %3883 = vrot.lane.b32.xlu0 %v3839_v48, %s5853_s7 }
 0x320   :  { %v3842_v4 = vmax.f32 %v3824_v50, 0.0  ;;  %v2373_v43 = vpop.permute.xlu1 %2372 }
 0x321   :  { %v3841_v53 = vmax.f32 %v3819_v52, 0.0  ;;  %2416 = vst.msk [vmem:[#allocation5 + $0x28] sm:$0xff] %vm2410_vm5, %v2373_v43  ;;  %v2371_v54 = vpop.permute.xlu0 %2370 }
 0x322   :  { %2415 = vst.msk [vmem:[#allocation5 + $0x20] sm:$0xff] %vm2410_vm5, %v2371_v54  ;;  %3889 = vrot.lane.b32.xlu1 %v3842_v4, %s5853_s7 }
 0x323   :  { %3887 = vrot.lane.b32.xlu0 %v3841_v53, %s5853_s7 }
 0x324   :  { %v2377_v55 = vpop.permute.xlu1 %2376 }
 0x325   :  { %2418 = vst.msk [vmem:[#allocation5 + $0x38] sm:$0xff] %vm2410_vm5, %v2377_v55  ;;  %v2375_v56 = vpop.permute.xlu0 %2374 }
 0x326   :  { %2417 = vst.msk [vmem:[#allocation5 + $0x30] sm:$0xff] %vm2410_vm5, %v2375_v56 }
 0x328   :  { %v2381_v14 = vpop.permute.xlu1 %2380 }
 0x329   :  { %2420 = vst.msk [vmem:[#allocation5 + $0x48] sm:$0xff] %vm2410_vm5, %v2381_v14  ;;  %v2379_v10 = vpop.permute.xlu0 %2378 }
 0x32a   :  { %2419 = vst.msk [vmem:[#allocation5 + $0x40] sm:$0xff] %vm2410_vm5, %v2379_v10 }
 0x32c   :  { %v2385_v57 = vpop.permute.xlu1 %2384 }
 0x32d   :  { %2422 = vst.msk [vmem:[#allocation5 + $0x58] sm:$0xff] %vm2410_vm5, %v2385_v57  ;;  %v2383_v59 = vpop.permute.xlu0 %2382 }
 0x32e   :  { %2421 = vst.msk [vmem:[#allocation5 + $0x50] sm:$0xff] %vm2410_vm5, %v2383_v59 }
 0x330   :  { %v2389_v60 = vpop.permute.xlu1 %2388 }
 0x331   :  { %2424 = vst.msk [vmem:[#allocation5 + $0x68] sm:$0xff] %vm2410_vm5, %v2389_v60  ;;  %v2387_v61 = vpop.permute.xlu0 %2386 }
 0x332   :  { %2423 = vst.msk [vmem:[#allocation5 + $0x60] sm:$0xff] %vm2410_vm5, %v2387_v61 }
 0x334   :  { %v2393_v62 = vpop.permute.xlu1 %2392 }
 0x335   :  { %2426 = vst.msk [vmem:[#allocation5 + $0x78] sm:$0xff] %vm2410_vm5, %v2393_v62  ;;  %v2391_v16 = vpop.permute.xlu0 %2390 }
 0x336   :  { %2425 = vst.msk [vmem:[#allocation5 + $0x70] sm:$0xff] %vm2410_vm5, %v2391_v16 }
 0x338   :  { %v2864_v0 = vpop.permute.xlu1 %2863 }
 0x339   :  { %2911 = vst.msk [vmem:[#allocation5 + $0x8] sm:$0xff] %vm2909_vm6, %v2864_v0  ;;  %v2862_v1 = vpop.permute.xlu0 %2861 }
 0x33a   :  { %2910 = vst.msk [vmem:[#allocation5] sm:$0xff] %vm2909_vm6, %v2862_v1 }
 0x33c   :  { %v2868_v2 = vpop.permute.xlu1 %2867 }
 0x33d   :  { %2913 = vst.msk [vmem:[#allocation5 + $0x18] sm:$0xff] %vm2909_vm6, %v2868_v2  ;;  %v2866_v3 = vpop.permute.xlu0 %2865 }
 0x33e   :  { %2912 = vst.msk [vmem:[#allocation5 + $0x10] sm:$0xff] %vm2909_vm6, %v2866_v3 }
 0x340   :  { %v2872_v5 = vpop.permute.xlu1 %2871 }
 0x341   :  { %2915 = vst.msk [vmem:[#allocation5 + $0x28] sm:$0xff] %vm2909_vm6, %v2872_v5  ;;  %v2870_v21 = vpop.permute.xlu0 %2869 }
 0x342   :  { %2914 = vst.msk [vmem:[#allocation5 + $0x20] sm:$0xff] %vm2909_vm6, %v2870_v21 }
 0x344   :  { %v2876_v7 = vpop.permute.xlu1 %2875 }
 0x345   :  { %2917 = vst.msk [vmem:[#allocation5 + $0x38] sm:$0xff] %vm2909_vm6, %v2876_v7  ;;  %v2874_v12 = vpop.permute.xlu0 %2873 }
 0x346   :  { %2916 = vst.msk [vmem:[#allocation5 + $0x30] sm:$0xff] %vm2909_vm6, %v2874_v12 }
 0x348   :  { %v2880_v27 = vpop.permute.xlu1 %2879 }
 0x349   :  { %2919 = vst.msk [vmem:[#allocation5 + $0x48] sm:$0xff] %vm2909_vm6, %v2880_v27  ;;  %v2878_v13 = vpop.permute.xlu0 %2877 }
 0x34a   :  { %2918 = vst.msk [vmem:[#allocation5 + $0x40] sm:$0xff] %vm2909_vm6, %v2878_v13 }
 0x34c   :  { %v2884_v15 = vpop.permute.xlu1 %2883 }
 0x34d   :  { %2921 = vst.msk [vmem:[#allocation5 + $0x58] sm:$0xff] %vm2909_vm6, %v2884_v15  ;;  %v2882_v40 = vpop.permute.xlu0 %2881 }
 0x34e   :  { %2920 = vst.msk [vmem:[#allocation5 + $0x50] sm:$0xff] %vm2909_vm6, %v2882_v40 }
 0x350   :  { %v2888_v9 = vpop.permute.xlu1 %2887 }
 0x351   :  { %2923 = vst.msk [vmem:[#allocation5 + $0x68] sm:$0xff] %vm2909_vm6, %v2888_v9  ;;  %v2886_v29 = vpop.permute.xlu0 %2885 }
 0x352   :  { %2922 = vst.msk [vmem:[#allocation5 + $0x60] sm:$0xff] %vm2909_vm6, %v2886_v29 }
 0x354   :  { %v2892_v22 = vpop.permute.xlu1 %2891 }
 0x355   :  { %2925 = vst.msk [vmem:[#allocation5 + $0x78] sm:$0xff] %vm2909_vm6, %v2892_v22  ;;  %v2890_v30 = vpop.permute.xlu0 %2889 }
 0x356   :  { %2924 = vst.msk [vmem:[#allocation5 + $0x70] sm:$0xff] %vm2909_vm6, %v2890_v30 }
 0x358   :  { %v3363_v17 = vpop.permute.xlu1 %3362 }
 0x359   :  { %3410 = vst.msk [vmem:[#allocation5 + $0x8] sm:$0xff] %vm3408_vm7, %v3363_v17  ;;  %v3361_v23 = vpop.permute.xlu0 %3360 }
 0x35a   :  { %3409 = vst.msk [vmem:[#allocation5] sm:$0xff] %vm3408_vm7, %v3361_v23 }
 0x35c   :  { %v3367_v24 = vpop.permute.xlu1 %3366 }
 0x35d   :  { %3412 = vst.msk [vmem:[#allocation5 + $0x18] sm:$0xff] %vm3408_vm7, %v3367_v24  ;;  %v3365_v47 = vpop.permute.xlu0 %3364 }
 0x35e   :  { %3411 = vst.msk [vmem:[#allocation5 + $0x10] sm:$0xff] %vm3408_vm7, %v3365_v47 }
 0x360   :  { %v3371_v18 = vpop.permute.xlu1 %3370 }
 0x361   :  { %3414 = vst.msk [vmem:[#allocation5 + $0x28] sm:$0xff] %vm3408_vm7, %v3371_v18  ;;  %v3369_v32 = vpop.permute.xlu0 %3368 }
 0x362   :  { %3413 = vst.msk [vmem:[#allocation5 + $0x20] sm:$0xff] %vm3408_vm7, %v3369_v32 }
 0x364   :  { %v3375_v25 = vpop.permute.xlu1 %3374 }
 0x365   :  { %3416 = vst.msk [vmem:[#allocation5 + $0x38] sm:$0xff] %vm3408_vm7, %v3375_v25  ;;  %v3373_v28 = vpop.permute.xlu0 %3372 }
 0x366   :  { %3415 = vst.msk [vmem:[#allocation5 + $0x30] sm:$0xff] %vm3408_vm7, %v3373_v28 }
 0x368   :  { %v3379_v20 = vpop.permute.xlu1 %3378 }
 0x369   :  { %3418 = vst.msk [vmem:[#allocation5 + $0x48] sm:$0xff] %vm3408_vm7, %v3379_v20  ;;  %v3377_v19 = vpop.permute.xlu0 %3376 }
 0x36a   :  { %3417 = vst.msk [vmem:[#allocation5 + $0x40] sm:$0xff] %vm3408_vm7, %v3377_v19 }
 0x36c   :  { %v3383_v31 = vpop.permute.xlu1 %3382 }
 0x36d   :  { %3420 = vst.msk [vmem:[#allocation5 + $0x58] sm:$0xff] %vm3408_vm7, %v3383_v31  ;;  %v3381_v34 = vpop.permute.xlu0 %3380 }
 0x36e   :  { %3419 = vst.msk [vmem:[#allocation5 + $0x50] sm:$0xff] %vm3408_vm7, %v3381_v34 }
 0x370   :  { %v3387_v6 = vpop.permute.xlu1 %3386 }
 0x371   :  { %3422 = vst.msk [vmem:[#allocation5 + $0x68] sm:$0xff] %vm3408_vm7, %v3387_v6  ;;  %v3385_v35 = vpop.permute.xlu0 %3384 }
 0x372   :  { %3421 = vst.msk [vmem:[#allocation5 + $0x60] sm:$0xff] %vm3408_vm7, %v3385_v35 }
 0x374   :  { %v3391_v8 = vpop.permute.xlu1 %3390 }
 0x375   :  { %3424 = vst.msk [vmem:[#allocation5 + $0x78] sm:$0xff] %vm3408_vm7, %v3391_v8  ;;  %v3389_v36 = vpop.permute.xlu0 %3388 }
 0x376   :  { %3423 = vst.msk [vmem:[#allocation5 + $0x70] sm:$0xff] %vm3408_vm7, %v3389_v36 }
 0x378   :  { %v3862_v33 = vpop.permute.xlu1 %3861 }
 0x379   :  { %3909 = vst.msk [vmem:[#allocation5 + $0x8] sm:$0xff] %vm3907_vm8, %v3862_v33  ;;  %v3860_v38 = vpop.permute.xlu0 %3859 }
 0x37a   :  { %3908 = vst.msk [vmem:[#allocation5] sm:$0xff] %vm3907_vm8, %v3860_v38 }
 0x37c   :  { %v3866_v11 = vpop.permute.xlu1 %3865 }
 0x37d   :  { %3911 = vst.msk [vmem:[#allocation5 + $0x18] sm:$0xff] %vm3907_vm8, %v3866_v11  ;;  %v3864_v37 = vpop.permute.xlu0 %3863 }
 0x37e   :  { %3910 = vst.msk [vmem:[#allocation5 + $0x10] sm:$0xff] %vm3907_vm8, %v3864_v37 }
 0x380   :  { %v3870_v44 = vpop.permute.xlu1 %3869 }
 0x381   :  { %3913 = vst.msk [vmem:[#allocation5 + $0x28] sm:$0xff] %vm3907_vm8, %v3870_v44  ;;  %v3868_v58 = vpop.permute.xlu0 %3867 }
 0x382   :  { %3912 = vst.msk [vmem:[#allocation5 + $0x20] sm:$0xff] %vm3907_vm8, %v3868_v58 }
 0x384   :  { %v3874_v45 = vpop.permute.xlu1 %3873 }
 0x385   :  { %3915 = vst.msk [vmem:[#allocation5 + $0x38] sm:$0xff] %vm3907_vm8, %v3874_v45  ;;  %v3872_v46 = vpop.permute.xlu0 %3871 }
 0x386   :  { %3914 = vst.msk [vmem:[#allocation5 + $0x30] sm:$0xff] %vm3907_vm8, %v3872_v46 }
 0x388   :  { %v3878_v26 = vpop.permute.xlu1 %3877 }
 0x389   :  { %3917 = vst.msk [vmem:[#allocation5 + $0x48] sm:$0xff] %vm3907_vm8, %v3878_v26  ;;  %v3876_v39 = vpop.permute.xlu0 %3875 }
 0x38a   :  { %3916 = vst.msk [vmem:[#allocation5 + $0x40] sm:$0xff] %vm3907_vm8, %v3876_v39 }
 0x38c   :  { %v3882_v42 = vpop.permute.xlu1 %3881 }
 0x38d   :  { %3919 = vst.msk [vmem:[#allocation5 + $0x58] sm:$0xff] %vm3907_vm8, %v3882_v42  ;;  %v3880_v63 = vpop.permute.xlu0 %3879 }
 0x38e   :  { %3918 = vst.msk [vmem:[#allocation5 + $0x50] sm:$0xff] %vm3907_vm8, %v3880_v63 }
 0x390   :  { %v3886_v48 = vpop.permute.xlu1 %3885 }
 0x391   :  { %3921 = vst.msk [vmem:[#allocation5 + $0x68] sm:$0xff] %vm3907_vm8, %v3886_v48  ;;  %v3884_v49 = vpop.permute.xlu0 %3883 }
 0x392   :  { %3920 = vst.msk [vmem:[#allocation5 + $0x60] sm:$0xff] %vm3907_vm8, %v3884_v49 }
 0x394   :  { %v3890_v41 = vpop.permute.xlu1 %3889 }
 0x395   :  { %3923 = vst.msk [vmem:[#allocation5 + $0x78] sm:$0xff] %vm3907_vm8, %v3890_v41  ;;  %v3888_v50 = vpop.permute.xlu0 %3887 }
 0x396   :  { %3922 = vst.msk [vmem:[#allocation5 + $0x70] sm:$0xff] %vm3907_vm8, %v3888_v50 }
 0x397   :  { %5830 = shalt.err (!%p5827_p12)
}
 0x398   :  { %s5831_s28 = scalar_lea.hbm %s7108_s3, 2048 }
 0x399   :  { %p5832_p13 = scmp.ne.s32.totalorder %s7108_s3, %s5831_s28  ;;  %p5835_p0 = scmp.lt.u32.totalorder %s5831_s28, %s7108_s3 }
 0x39b   :  { %p5837_p1 = pnand %p5835_p0, %p5832_p13 }
 0x39d   :  { %5840 = shalt.err (!%p5837_p1)
}
 0x39e   :  { %s5855_s6 = smov 128   ;;  %s5856_s9 = smov 8  }
 0x39f   :  { %3935 = dma.vmem_to_hbm [thread:$0]  %s3930_s8, 2048, %s7108_s3, [#allocation4], %s5855_s6, %s5855_s6, %s5856_s9  }
 0x3a0   :  { %5843 = dma.done.wait [#allocation4], 2048  }
 0x3a1   :  { %5844 = vsyncadd [#allocation4], 4294965248 }
 0x3a2   :  { %3939 = vsyncpa [#allocation3], 1 }
 0x3a3   :  { %3940 = vsyncpa [#allocation4], 1 }

</bundles_post_ra>
